<compile_context>
chip_gen: v5e
topology: v5e:2x2
jax: 0.10.0
libtpu: 0.0.40
codegen_flags: <defaults>
</compile_context>

<pallas_src>
import math
from functools import partial

import jax
import jax.numpy as jnp
import numpy as np
from jax.experimental import pallas as pl
from jax.experimental.pallas import tpu as pltpu

_LN_EPS = 1e-5


# ---------------------------------------------------------------------------
# frequency-mode selection (same semantics as the torch reference)
# ---------------------------------------------------------------------------
def get_frequency_modes(seq_len, modes=None, mode_select_method='random', seed=0):
    modes = min(modes, seq_len // 2)
    if mode_select_method == 'random':
        rng = np.random.RandomState(seed)          # deterministic "random"
        index = list(range(0, seq_len // 2))
        rng.shuffle(index)
        index = index[:modes]
    else:
        index = list(range(0, modes))
    index.sort()
    return index


# ---------------------------------------------------------------------------
# Pallas kernel: one transformer encoder layer on a (TBn, 2*L*D) slab.
#   lane layout: slots s = 0..2L-1 ; slots [0, L)   = real parts of the L modes
#                                    slots [L, 2L)  = imag parts of the L modes
#   attention runs over the L modes *within* each (real / imag) group.
# ---------------------------------------------------------------------------
def encoder_layer_kernel(x_ref, wqkv_ref, hm_ref, wo_ref, w1_ref, w2_ref,
                         avg_ref, p_ref, o_ref, *, L, D, d_ff):
    W = x_ref.shape[1]          # 2*L*D lanes
    S = W // D                  # 2*L mode slots
    QW = L * W                  # replicated q/k/v width

    x = x_ref[...]              # (T, W) f32 (residual stream kept in f32)
    x_bf = x.astype(jnp.bfloat16)
    p = p_ref[...]              # packed bias / LayerNorm constant slab

    bqkv = p[0:1, :3 * QW]
    bo = p[1:2, :W]
    b1 = p[2:3, :S * d_ff]
    b2 = p[3:4, :W]
    g1 = p[4:5, :W]
    be1 = p[5:6, :W]
    g2 = p[6:7, :W]
    be2 = p[7:8, :W]

    # fused QKV projection (single K=W matmul, lane-replicated output layout):
    #   cols [0, QW)     : q of slot s, repeated for every key mode m
    #   cols [QW, 2QW)   : k of key mode m within slot-s's group, per (m, s)
    #   cols [2QW, 3QW)  : v, same layout as k
    qkv = jnp.dot(x_bf, wqkv_ref[...], preferred_element_type=jnp.float32) + bqkv
    q_rep = qkv[:, 0:QW]
    k_rep = qkv[:, QW:2 * QW]

    # per-head attention scores: one block-diagonal head-mask matmul (K = QW).
    # 1/sqrt(dh) scale is already folded into the Q weights.
    prod = (q_rep * k_rep).astype(jnp.bfloat16)
    s_rep = jnp.dot(prod, hm_ref[...], preferred_element_type=jnp.float32)

    s_m = [s_rep[:, m * W:(m + 1) * W] for m in range(L)]
    v_m = [qkv[:, 2 * QW + m * W:2 * QW + (m + 1) * W] for m in range(L)]

    # softmax over key modes m (full-width, head-replicated lanes)
    mx = s_m[0]
    for m in range(1, L):
        mx = jnp.maximum(mx, s_m[m])
    e_m = [jnp.exp(s_m[m] - mx) for m in range(L)]
    den = e_m[0]
    for m in range(1, L):
        den = den + e_m[m]
    inv = pl.reciprocal(den, approx=True)

    ctx = e_m[0] * v_m[0]
    for m in range(1, L):
        ctx = ctx + e_m[m] * v_m[m]
    ctx = ctx * inv                                           # (T, W)

    attn = jnp.dot(ctx.astype(jnp.bfloat16), wo_ref[...],
                   preferred_element_type=jnp.float32) + bo

    # per-slot LayerNorm stats via block-averaging matmuls (f32 accumulation)
    avg = avg_ref[...]
    h = x + attn
    mu = jnp.dot(h, avg, preferred_element_type=jnp.float32)
    c = h - mu
    var = jnp.dot(c * c, avg, preferred_element_type=jnp.float32)
    h1 = c * jax.lax.rsqrt(var + _LN_EPS) * g1 + be1

    # FFN: Linear -> ReLU -> Linear (block-diag fused across all 2L slots)
    f = jnp.dot(h1.astype(jnp.bfloat16), w1_ref[...],
                preferred_element_type=jnp.float32) + b1
    f = jnp.maximum(f, 0.0)
    f2 = jnp.dot(f.astype(jnp.bfloat16), w2_ref[...],
                 preferred_element_type=jnp.float32) + b2

    h2 = h1 + f2
    mu2 = jnp.dot(h2, avg, preferred_element_type=jnp.float32)
    c2 = h2 - mu2
    var2 = jnp.dot(c2 * c2, avg, preferred_element_type=jnp.float32)
    y = c2 * jax.lax.rsqrt(var2 + _LN_EPS) * g2 + be2

    o_ref[...] = y.astype(o_ref.dtype)        # single full-width store


# ---------------------------------------------------------------------------
# host-side fusion of the per-mode weights into block-diag / replicated slabs
# ---------------------------------------------------------------------------
def _build_fused_weights(params, L, D, n_heads):
    d_ff = params['w1'].shape[1]
    S = 2 * L
    W = S * D
    QW = L * W
    dh = D // n_heads
    scale = 1.0 / math.sqrt(dh)

    eyeS = jnp.eye(S, dtype=jnp.float32)
    eyeLS = jnp.eye(L * S, dtype=jnp.float32)

    wq = params['wq'].astype(jnp.float32) * scale
    wk = params['wk'].astype(jnp.float32)
    wv = params['wv'].astype(jnp.float32)

    # Q region: every key-mode block m sees q of slot s  -> tile kron(I_S, wq)
    q_region = jnp.tile(jnp.kron(eyeS, wq), (1, L))                    # (W, QW)

    # K / V regions: output block (m, s) is fed by input slot (s // L)*L + m
    sels = []
    for m in range(L):
        sel = np.zeros((S, S), np.float32)
        for s in range(S):
            sel[(s // L) * L + m, s] = 1.0
        sels.append(jnp.asarray(sel))
    k_region = jnp.concatenate([jnp.kron(sel, wk) for sel in sels], axis=1)
    v_region = jnp.concatenate([jnp.kron(sel, wv) for sel in sels], axis=1)

    wqkv_bd = jnp.concatenate([q_region, k_region, v_region],
                              axis=1).astype(jnp.bfloat16)             # (W, 3QW)

    head_ids = np.arange(D) // dh
    hmask = (head_ids[:, None] == head_ids[None, :]).astype(np.float32)
    hm_bd = jnp.kron(eyeLS, jnp.asarray(hmask)).astype(jnp.bfloat16)   # (QW, QW)

    wo_bd = jnp.kron(eyeS, params['wo'].astype(jnp.float32)).astype(jnp.bfloat16)
    w1_bd = jnp.kron(eyeS, params['w1'].astype(jnp.float32)).astype(jnp.bfloat16)
    w2_bd = jnp.kron(eyeS, params['w2'].astype(jnp.float32)).astype(jnp.bfloat16)

    # block-averaging matrix for per-slot LayerNorm statistics (f32)
    avg_bd = jnp.kron(eyeS, jnp.full((D, D), 1.0 / D, jnp.float32))    # (W, W)

    def tile_row(v, reps):
        return jnp.tile(v.reshape(1, -1).astype(jnp.float32), (1, reps))

    bqkv_rep = jnp.concatenate([tile_row(params['bq'] * scale, L * S),
                                tile_row(params['bk'], L * S),
                                tile_row(params['bv'], L * S)], axis=1)  # (1, 3QW)
    rows = [bqkv_rep,
            tile_row(params['bo'], S),
            tile_row(params['b1'], S),
            tile_row(params['b2'], S),
            tile_row(params['g1'], S),
            tile_row(params['beta1'], S),
            tile_row(params['g2'], S),
            tile_row(params['beta2'], S)]
    maxw = max(r.shape[1] for r in rows)
    maxw = ((maxw + 127) // 128) * 128
    pslab = jnp.concatenate(
        [jnp.pad(r, ((0, 0), (0, maxw - r.shape[1]))) for r in rows], axis=0)

    return dict(wqkv=wqkv_bd, hm=hm_bd, wo=wo_bd, w1=w1_bd, w2=w2_bd,
                avg=avg_bd, pslab=pslab)


def _choose_block_rows(n_rows, lane_w, qkv_w, dff_w):
    """Row tile: multiple of 8, VMEM-budgeted, >=2 grid steps when possible."""
    per_row = 4 * (6 * lane_w + 2 * qkv_w + 2 * dff_w)   # rough f32 bytes / row
    budget = 12 * 1024 * 1024                            # safe on v5e/v6e/v7x
    cap = max(8, min(2048, (budget // max(per_row, 1)) // 8 * 8))
    half = max(8, (((n_rows + 1) // 2) + 7) // 8 * 8)    # keep v7x's 2nd TC busy
    rows = min(cap, half, ((n_rows + 7) // 8) * 8)
    return max(8, rows)


def encoder_layer(x_slab, params, n_heads, L, D):
    """x_slab: (N, 2*L*D) f32 -> (N, 2*L*D) f32 via the Pallas kernel."""
    N, W = x_slab.shape
    assert W == 2 * L * D and D % n_heads == 0
    d_ff = params['w1'].shape[1]
    S = 2 * L
    QW = L * W

    fused = _build_fused_weights(params, L, D, n_heads)

    TBn = _choose_block_rows(N, W, 3 * QW, S * d_ff)
    N_pad = ((N + TBn - 1) // TBn) * TBn
    if N_pad != N:
        x_slab = jnp.pad(x_slab, ((0, N_pad - N), (0, 0)))
    grid = (N_pad // TBn,)

    def whole(a):
        return pl.BlockSpec(a.shape, lambda i: (0, 0))

    weights = (fused['wqkv'], fused['hm'], fused['wo'], fused['w1'],
               fused['w2'], fused['avg'], fused['pslab'])
    in_specs = [pl.BlockSpec((TBn, W), lambda i: (i, 0))]
    in_specs += [whole(a) for a in weights]

    out = pl.pallas_call(
        partial(encoder_layer_kernel, L=L, D=D, d_ff=d_ff),
        out_shape=jax.ShapeDtypeStruct((N_pad, W), jnp.float32),
        grid_spec=pltpu.PrefetchScalarGridSpec(
            num_scalar_prefetch=0,
            grid=grid,
            in_specs=in_specs,
            out_specs=pl.BlockSpec((TBn, W), lambda i: (i, 0))),
        compiler_params=pltpu.CompilerParams(
            dimension_semantics=("parallel",),
            vmem_limit_bytes=32 * 1024 * 1024),
    )(x_slab, *weights)

    return out[:N]


# ---------------------------------------------------------------------------
# CEM / TEM / Block forward (FFT glue in JAX, attention in Pallas)
# ---------------------------------------------------------------------------
def _process_selected_modes(x_sel_complex, params, n_heads):
    """Real & imag halves folded into lanes; one kernel pass, shared weights."""
    N, L, D = x_sel_complex.shape
    xr = jnp.real(x_sel_complex).astype(jnp.float32).reshape(N, L * D)
    xi = jnp.imag(x_sel_complex).astype(jnp.float32).reshape(N, L * D)
    slab = jnp.concatenate([xr, xi], axis=-1)                 # (N, 2*L*D)
    out = encoder_layer(slab, params, n_heads, L, D)
    yr = out[:, :L * D].reshape(N, L, D)
    yi = out[:, L * D:].reshape(N, L, D)
    return jax.lax.complex(yr, yi)


def cem_forward(x, params, n_heads, modes, mode_select_method):
    B, nvar, seq_len, D = x.shape
    xp = jnp.transpose(x, (0, 2, 1, 3)).reshape(B * seq_len, nvar, D)
    x_ft = jnp.fft.rfft(xp, axis=1)                                   # (B*S, nvar//2+1, D)
    index = get_frequency_modes(nvar + 1, modes=modes,
                                mode_select_method=mode_select_method)
    idx = jnp.array(index, dtype=jnp.int32)
    x_sel = x_ft[:, idx, :]
    x_new = _process_selected_modes(x_sel, params, n_heads)
    y_ft = jnp.zeros_like(x_ft).at[:, idx, :].set(x_new.astype(x_ft.dtype))
    y = jnp.fft.irfft(y_ft, n=nvar, axis=1)
    y = y.reshape(B, seq_len, nvar, D).transpose(0, 2, 1, 3)
    return y.astype(x.dtype)


def tem_forward(x, params, n_heads, modes, mode_select_method):
    B, nvar, seq_len, D = x.shape
    xp = x.reshape(B * nvar, seq_len, D)
    x_ft = jnp.fft.rfft(xp, axis=1)                                   # (B*V, S//2+1, D)
    index = get_frequency_modes(seq_len, modes=modes,
                                mode_select_method=mode_select_method)
    idx = jnp.array(index, dtype=jnp.int32)
    x_sel = x_ft[:, idx, :]
    x_new = _process_selected_modes(x_sel, params, n_heads)
    y_ft = jnp.zeros_like(x_ft).at[:, idx, :].set(x_new.astype(x_ft.dtype))
    y = jnp.fft.irfft(y_ft, n=seq_len, axis=1)
    return y.reshape(B, nvar, seq_len, D).astype(x.dtype)


@partial(jax.jit, static_argnames=('n_heads', 'modes', 'mode_select_method'))
def block_forward(x, cem_params, tem_params, n_heads,
                  modes=2, mode_select_method='low'):
    x = cem_forward(x, cem_params, n_heads, modes, mode_select_method)
    x = tem_forward(x, tem_params, n_heads, modes, mode_select_method)
    return x


# ---------------------------------------------------------------------------
# deterministic parameter init (synthetic; shapes from EncoderLayer(d_model, H))
# raw per-mode weights in f32; fusion/casting happens in encoder_layer.
# ---------------------------------------------------------------------------
def init_encoder_params(key, d_model, d_ff):
    ks = jax.random.split(key, 6)
    s_in = 1.0 / math.sqrt(d_model)
    s_ff = 1.0 / math.sqrt(d_ff)
    return {
        'wq': jax.random.normal(ks[0], (d_model, d_model), jnp.float32) * s_in,
        'wk': jax.random.normal(ks[1], (d_model, d_model), jnp.float32) * s_in,
        'wv': jax.random.normal(ks[2], (d_model, d_model), jnp.float32) * s_in,
        'wo': jax.random.normal(ks[3], (d_model, d_model), jnp.float32) * s_in,
        'w1': jax.random.normal(ks[4], (d_model, d_ff), jnp.float32) * s_in,
        'w2': jax.random.normal(ks[5], (d_ff, d_model), jnp.float32) * s_ff,
        'bq': jnp.zeros((d_model,), jnp.float32),
        'bk': jnp.zeros((d_model,), jnp.float32),
        'bv': jnp.zeros((d_model,), jnp.float32),
        'bo': jnp.zeros((d_model,), jnp.float32),
        'b1': jnp.zeros((d_ff,), jnp.float32),
        'b2': jnp.zeros((d_model,), jnp.float32),
        'g1': jnp.ones((d_model,), jnp.float32),
        'beta1': jnp.zeros((d_model,), jnp.float32),
        'g2': jnp.ones((d_model,), jnp.float32),
        'beta2': jnp.zeros((d_model,), jnp.float32),
    }


if __name__ == "__main__":
    B, nvar, seq_len, d_model, n_heads = 2, 4, 8, 32, 4
    key = jax.random.PRNGKey(0)
    kx, kc, kt = jax.random.split(key, 3)

    x = jax.random.normal(kx, (B, nvar, seq_len, d_model), jnp.float32)
    cem_params = init_encoder_params(kc, d_model, 4 * d_model)
    tem_params = init_encoder_params(kt, d_model, 4 * d_model)

    y = block_forward(x, cem_params, tem_params, n_heads=n_heads,
                      modes=2, mode_select_method='low')
    y = jax.block_until_ready(y)
    assert y.shape == x.shape and y.dtype == x.dtype
    assert bool(jnp.all(jnp.isfinite(y)))
    print("KERNEL_OK")
</pallas_src>

<mosaic_0001>
module attributes {stable_mosaic.version = 11 : i64} {
  func.func @encoder_layer_kernel(%arg0: i32, %arg1: memref<8x128xf32, #tpu.memory_space<vmem>>, %arg2: memref<128x768xbf16, #tpu.memory_space<vmem>>, %arg3: memref<256x256xbf16, #tpu.memory_space<vmem>>, %arg4: memref<128x128xbf16, #tpu.memory_space<vmem>>, %arg5: memref<128x512xbf16, #tpu.memory_space<vmem>>, %arg6: memref<512x128xbf16, #tpu.memory_space<vmem>>, %arg7: memref<128x128xf32, #tpu.memory_space<vmem>>, %arg8: memref<8x768xf32, #tpu.memory_space<vmem>>, %arg9: memref<8x128xf32, #tpu.memory_space<vmem>>) attributes {dimension_semantics = [#tpu.dimension_semantics<parallel>], iteration_bounds = array<i64: 2>, scalar_prefetch = 0 : i64, scratch_operands = 0 : i64, tpu.core_type = #tpu.core_type<tc>, window_params = [{transform_indices = @transform_0, window_bounds = array<i64: 8, 128>}, {pipeline_mode = #tpu.pipeline_mode<synchronous>, transform_indices = @transform_1, window_bounds = array<i64: 128, 768>}, {pipeline_mode = #tpu.pipeline_mode<synchronous>, transform_indices = @transform_2, window_bounds = array<i64: 256, 256>}, {pipeline_mode = #tpu.pipeline_mode<synchronous>, transform_indices = @transform_3, window_bounds = array<i64: 128, 128>}, {pipeline_mode = #tpu.pipeline_mode<synchronous>, transform_indices = @transform_4, window_bounds = array<i64: 128, 512>}, {pipeline_mode = #tpu.pipeline_mode<synchronous>, transform_indices = @transform_5, window_bounds = array<i64: 512, 128>}, {pipeline_mode = #tpu.pipeline_mode<synchronous>, transform_indices = @transform_6, window_bounds = array<i64: 128, 128>}, {pipeline_mode = #tpu.pipeline_mode<synchronous>, transform_indices = @transform_7, window_bounds = array<i64: 8, 768>}, {transform_indices = @transform_8, window_bounds = array<i64: 8, 128>}]} {
    %c0 = arith.constant 0 : index
    %c0_0 = arith.constant 0 : index
    %0 = vector.load %arg1[%c0, %c0_0] : memref<8x128xf32, #tpu.memory_space<vmem>>, vector<8x128xf32>
    %1 = arith.truncf %0 : vector<8x128xf32> to vector<8x128xbf16>
    %c0_1 = arith.constant 0 : index
    %c0_2 = arith.constant 0 : index
    %2 = vector.load %arg8[%c0_1, %c0_2] : memref<8x768xf32, #tpu.memory_space<vmem>>, vector<8x768xf32>
    %3 = vector.extract_strided_slice %2 {offsets = [0, 0], sizes = [1, 768], strides = [1, 1]} : vector<8x768xf32> to vector<1x768xf32>
    %4 = vector.extract_strided_slice %2 {offsets = [1, 0], sizes = [1, 128], strides = [1, 1]} : vector<8x768xf32> to vector<1x128xf32>
    %5 = vector.extract_strided_slice %2 {offsets = [2, 0], sizes = [1, 512], strides = [1, 1]} : vector<8x768xf32> to vector<1x512xf32>
    %6 = vector.extract_strided_slice %2 {offsets = [3, 0], sizes = [1, 128], strides = [1, 1]} : vector<8x768xf32> to vector<1x128xf32>
    %7 = vector.extract_strided_slice %2 {offsets = [4, 0], sizes = [1, 128], strides = [1, 1]} : vector<8x768xf32> to vector<1x128xf32>
    %8 = vector.extract_strided_slice %2 {offsets = [5, 0], sizes = [1, 128], strides = [1, 1]} : vector<8x768xf32> to vector<1x128xf32>
    %9 = vector.extract_strided_slice %2 {offsets = [6, 0], sizes = [1, 128], strides = [1, 1]} : vector<8x768xf32> to vector<1x128xf32>
    %10 = vector.extract_strided_slice %2 {offsets = [7, 0], sizes = [1, 128], strides = [1, 1]} : vector<8x768xf32> to vector<1x128xf32>
    %c0_3 = arith.constant 0 : index
    %c0_4 = arith.constant 0 : index
    %11 = vector.load %arg2[%c0_3, %c0_4] : memref<128x768xbf16, #tpu.memory_space<vmem>>, vector<128x768xbf16>
    %cst = arith.constant dense<0.000000e+00> : vector<8x768xf32>
    %12 = tpu.matmul %1, %11, %cst {dimension_numbers = #tpu.dot_dimension_numbers<[1], [0], [0], [1], [0, 0, 1, 1], [], []>} : vector<8x128xbf16>, vector<128x768xbf16>, vector<8x768xf32> -> vector<8x768xf32>
    %13 = vector.broadcast %3 : vector<1x768xf32> to vector<8x768xf32>
    %14 = arith.addf %12, %13 : vector<8x768xf32>
    %15 = vector.extract_strided_slice %14 {offsets = [0, 0], sizes = [8, 256], strides = [1, 1]} : vector<8x768xf32> to vector<8x256xf32>
    %16 = vector.extract_strided_slice %14 {offsets = [0, 256], sizes = [8, 256], strides = [1, 1]} : vector<8x768xf32> to vector<8x256xf32>
    %17 = arith.mulf %15, %16 : vector<8x256xf32>
    %18 = arith.truncf %17 : vector<8x256xf32> to vector<8x256xbf16>
    %c0_5 = arith.constant 0 : index
    %c0_6 = arith.constant 0 : index
    %19 = vector.load %arg3[%c0_5, %c0_6] : memref<256x256xbf16, #tpu.memory_space<vmem>>, vector<256x256xbf16>
    %cst_7 = arith.constant dense<0.000000e+00> : vector<8x256xf32>
    %20 = tpu.matmul %18, %19, %cst_7 {dimension_numbers = #tpu.dot_dimension_numbers<[1], [0], [0], [1], [0, 0, 1, 1], [], []>} : vector<8x256xbf16>, vector<256x256xbf16>, vector<8x256xf32> -> vector<8x256xf32>
    %21 = vector.extract_strided_slice %20 {offsets = [0, 0], sizes = [8, 128], strides = [1, 1]} : vector<8x256xf32> to vector<8x128xf32>
    %22 = vector.extract_strided_slice %20 {offsets = [0, 128], sizes = [8, 128], strides = [1, 1]} : vector<8x256xf32> to vector<8x128xf32>
    %23 = vector.extract_strided_slice %14 {offsets = [0, 512], sizes = [8, 128], strides = [1, 1]} : vector<8x768xf32> to vector<8x128xf32>
    %24 = vector.extract_strided_slice %14 {offsets = [0, 640], sizes = [8, 128], strides = [1, 1]} : vector<8x768xf32> to vector<8x128xf32>
    %25 = arith.maximumf %21, %22 : vector<8x128xf32>
    %26 = arith.subf %21, %25 : vector<8x128xf32>
    %27 = math.exp %26 : vector<8x128xf32>
    %28 = arith.subf %22, %25 : vector<8x128xf32>
    %29 = math.exp %28 : vector<8x128xf32>
    %30 = arith.addf %27, %29 : vector<8x128xf32>
    %31 = tpu.reciprocal %30 {approx = true} : vector<8x128xf32> -> vector<8x128xf32>
    %32 = arith.mulf %27, %23 : vector<8x128xf32>
    %33 = arith.mulf %29, %24 : vector<8x128xf32>
    %34 = arith.addf %32, %33 : vector<8x128xf32>
    %35 = arith.mulf %34, %31 : vector<8x128xf32>
    %36 = arith.truncf %35 : vector<8x128xf32> to vector<8x128xbf16>
    %c0_8 = arith.constant 0 : index
    %c0_9 = arith.constant 0 : index
    %37 = vector.load %arg4[%c0_8, %c0_9] : memref<128x128xbf16, #tpu.memory_space<vmem>>, vector<128x128xbf16>
    %cst_10 = arith.constant dense<0.000000e+00> : vector<8x128xf32>
    %38 = tpu.matmul %36, %37, %cst_10 {dimension_numbers = #tpu.dot_dimension_numbers<[1], [0], [0], [1], [0, 0, 1, 1], [], []>} : vector<8x128xbf16>, vector<128x128xbf16>, vector<8x128xf32> -> vector<8x128xf32>
    %39 = vector.broadcast %4 : vector<1x128xf32> to vector<8x128xf32>
    %40 = arith.addf %38, %39 : vector<8x128xf32>
    %c0_11 = arith.constant 0 : index
    %c0_12 = arith.constant 0 : index
    %41 = vector.load %arg7[%c0_11, %c0_12] : memref<128x128xf32, #tpu.memory_space<vmem>>, vector<128x128xf32>
    %42 = arith.addf %0, %40 : vector<8x128xf32>
    %cst_13 = arith.constant dense<0.000000e+00> : vector<8x128xf32>
    %43 = tpu.matmul %42, %41, %cst_13 {dimension_numbers = #tpu.dot_dimension_numbers<[1], [0], [0], [1], [0, 0, 1, 1], [], []>} : vector<8x128xf32>, vector<128x128xf32>, vector<8x128xf32> -> vector<8x128xf32>
    %44 = arith.subf %42, %43 : vector<8x128xf32>
    %45 = arith.mulf %44, %44 : vector<8x128xf32>
    %cst_14 = arith.constant dense<0.000000e+00> : vector<8x128xf32>
    %46 = tpu.matmul %45, %41, %cst_14 {dimension_numbers = #tpu.dot_dimension_numbers<[1], [0], [0], [1], [0, 0, 1, 1], [], []>} : vector<8x128xf32>, vector<128x128xf32>, vector<8x128xf32> -> vector<8x128xf32>
    %cst_15 = arith.constant 9.99999974E-6 : f32
    %47 = vector.broadcast %cst_15 : f32 to vector<8x128xf32>
    %48 = arith.addf %46, %47 : vector<8x128xf32>
    %49 = math.rsqrt %48 : vector<8x128xf32>
    %50 = arith.mulf %44, %49 : vector<8x128xf32>
    %51 = vector.broadcast %7 : vector<1x128xf32> to vector<8x128xf32>
    %52 = arith.mulf %50, %51 : vector<8x128xf32>
    %53 = vector.broadcast %8 : vector<1x128xf32> to vector<8x128xf32>
    %54 = arith.addf %52, %53 : vector<8x128xf32>
    %55 = arith.truncf %54 : vector<8x128xf32> to vector<8x128xbf16>
    %c0_16 = arith.constant 0 : index
    %c0_17 = arith.constant 0 : index
    %56 = vector.load %arg5[%c0_16, %c0_17] : memref<128x512xbf16, #tpu.memory_space<vmem>>, vector<128x512xbf16>
    %cst_18 = arith.constant dense<0.000000e+00> : vector<8x512xf32>
    %57 = tpu.matmul %55, %56, %cst_18 {dimension_numbers = #tpu.dot_dimension_numbers<[1], [0], [0], [1], [0, 0, 1, 1], [], []>} : vector<8x128xbf16>, vector<128x512xbf16>, vector<8x512xf32> -> vector<8x512xf32>
    %58 = vector.broadcast %5 : vector<1x512xf32> to vector<8x512xf32>
    %59 = arith.addf %57, %58 : vector<8x512xf32>
    %cst_19 = arith.constant 0.000000e+00 : f32
    %60 = vector.broadcast %cst_19 : f32 to vector<8x512xf32>
    %61 = arith.maximumf %59, %60 : vector<8x512xf32>
    %62 = arith.truncf %61 : vector<8x512xf32> to vector<8x512xbf16>
    %c0_20 = arith.constant 0 : index
    %c0_21 = arith.constant 0 : index
    %63 = vector.load %arg6[%c0_20, %c0_21] : memref<512x128xbf16, #tpu.memory_space<vmem>>, vector<512x128xbf16>
    %cst_22 = arith.constant dense<0.000000e+00> : vector<8x128xf32>
    %64 = tpu.matmul %62, %63, %cst_22 {dimension_numbers = #tpu.dot_dimension_numbers<[1], [0], [0], [1], [0, 0, 1, 1], [], []>} : vector<8x512xbf16>, vector<512x128xbf16>, vector<8x128xf32> -> vector<8x128xf32>
    %65 = vector.broadcast %6 : vector<1x128xf32> to vector<8x128xf32>
    %66 = arith.addf %64, %65 : vector<8x128xf32>
    %67 = arith.addf %54, %66 : vector<8x128xf32>
    %cst_23 = arith.constant dense<0.000000e+00> : vector<8x128xf32>
    %68 = tpu.matmul %67, %41, %cst_23 {dimension_numbers = #tpu.dot_dimension_numbers<[1], [0], [0], [1], [0, 0, 1, 1], [], []>} : vector<8x128xf32>, vector<128x128xf32>, vector<8x128xf32> -> vector<8x128xf32>
    %69 = arith.subf %67, %68 : vector<8x128xf32>
    %70 = arith.mulf %69, %69 : vector<8x128xf32>
    %cst_24 = arith.constant dense<0.000000e+00> : vector<8x128xf32>
    %71 = tpu.matmul %70, %41, %cst_24 {dimension_numbers = #tpu.dot_dimension_numbers<[1], [0], [0], [1], [0, 0, 1, 1], [], []>} : vector<8x128xf32>, vector<128x128xf32>, vector<8x128xf32> -> vector<8x128xf32>
    %cst_25 = arith.constant 9.99999974E-6 : f32
    %72 = vector.broadcast %cst_25 : f32 to vector<8x128xf32>
    %73 = arith.addf %71, %72 : vector<8x128xf32>
    %74 = math.rsqrt %73 : vector<8x128xf32>
    %75 = arith.mulf %69, %74 : vector<8x128xf32>
    %76 = vector.broadcast %9 : vector<1x128xf32> to vector<8x128xf32>
    %77 = arith.mulf %75, %76 : vector<8x128xf32>
    %78 = vector.broadcast %10 : vector<1x128xf32> to vector<8x128xf32>
    %79 = arith.addf %77, %78 : vector<8x128xf32>
    %c0_26 = arith.constant 0 : index
    %c0_27 = arith.constant 0 : index
    %80 = vector.load %arg9[%c0_26, %c0_27] : memref<8x128xf32, #tpu.memory_space<vmem>>, vector<8x128xf32>
    tpu.vector_store %arg9[%c0_26, %c0_27], %79 {strides = array<i32>} : memref<8x128xf32, #tpu.memory_space<vmem>>, vector<8x128xf32>,
    return
  }
  func.func @transform_0(%arg0: i32) -> (i32, i32) {
    %c0_i32 = arith.constant 0 : i32
    %c0_i32_0 = arith.constant 0 : i32
    return %arg0, %c0_i32 : i32, i32
  }
  func.func @transform_1(%arg0: i32) -> (i32, i32) {
    %c0_i32 = arith.constant 0 : i32
    %c0_i32_0 = arith.constant 0 : i32
    %c0_i32_1 = arith.constant 0 : i32
    return %c0_i32, %c0_i32_0 : i32, i32
  }
  func.func @transform_2(%arg0: i32) -> (i32, i32) {
    %c0_i32 = arith.constant 0 : i32
    %c0_i32_0 = arith.constant 0 : i32
    %c0_i32_1 = arith.constant 0 : i32
    return %c0_i32, %c0_i32_0 : i32, i32
  }
  func.func @transform_3(%arg0: i32) -> (i32, i32) {
    %c0_i32 = arith.constant 0 : i32
    %c0_i32_0 = arith.constant 0 : i32
    %c0_i32_1 = arith.constant 0 : i32
    return %c0_i32, %c0_i32_0 : i32, i32
  }
  func.func @transform_4(%arg0: i32) -> (i32, i32) {
    %c0_i32 = arith.constant 0 : i32
    %c0_i32_0 = arith.constant 0 : i32
    %c0_i32_1 = arith.constant 0 : i32
    return %c0_i32, %c0_i32_0 : i32, i32
  }
  func.func @transform_5(%arg0: i32) -> (i32, i32) {
    %c0_i32 = arith.constant 0 : i32
    %c0_i32_0 = arith.constant 0 : i32
    %c0_i32_1 = arith.constant 0 : i32
    return %c0_i32, %c0_i32_0 : i32, i32
  }
  func.func @transform_6(%arg0: i32) -> (i32, i32) {
    %c0_i32 = arith.constant 0 : i32
    %c0_i32_0 = arith.constant 0 : i32
    %c0_i32_1 = arith.constant 0 : i32
    return %c0_i32, %c0_i32_0 : i32, i32
  }
  func.func @transform_7(%arg0: i32) -> (i32, i32) {
    %c0_i32 = arith.constant 0 : i32
    %c0_i32_0 = arith.constant 0 : i32
    %c0_i32_1 = arith.constant 0 : i32
    return %c0_i32, %c0_i32_0 : i32, i32
  }
  func.func @transform_8(%arg0: i32) -> (i32, i32) {
    %c0_i32 = arith.constant 0 : i32
    %c0_i32_0 = arith.constant 0 : i32
    return %arg0, %c0_i32 : i32, i32
  }
}

module attributes {stable_mosaic.version = 11 : i64} {
  func.func @encoder_layer_kernel(%arg0: i32, %arg1: memref<8x128xf32, #tpu.memory_space<vmem>>, %arg2: memref<128x768xbf16, #tpu.memory_space<vmem>>, %arg3: memref<256x256xbf16, #tpu.memory_space<vmem>>, %arg4: memref<128x128xbf16, #tpu.memory_space<vmem>>, %arg5: memref<128x512xbf16, #tpu.memory_space<vmem>>, %arg6: memref<512x128xbf16, #tpu.memory_space<vmem>>, %arg7: memref<128x128xf32, #tpu.memory_space<vmem>>, %arg8: memref<8x768xf32, #tpu.memory_space<vmem>>, %arg9: memref<8x128xf32, #tpu.memory_space<vmem>>) attributes {dimension_semantics = [#tpu.dimension_semantics<parallel>], iteration_bounds = array<i64: 1>, scalar_prefetch = 0 : i64, scratch_operands = 0 : i64, tpu.core_type = #tpu.core_type<tc>, window_params = [{transform_indices = @transform_0, window_bounds = array<i64: 8, 128>}, {pipeline_mode = #tpu.pipeline_mode<synchronous>, transform_indices = @transform_1, window_bounds = array<i64: 128, 768>}, {pipeline_mode = #tpu.pipeline_mode<synchronous>, transform_indices = @transform_2, window_bounds = array<i64: 256, 256>}, {pipeline_mode = #tpu.pipeline_mode<synchronous>, transform_indices = @transform_3, window_bounds = array<i64: 128, 128>}, {pipeline_mode = #tpu.pipeline_mode<synchronous>, transform_indices = @transform_4, window_bounds = array<i64: 128, 512>}, {pipeline_mode = #tpu.pipeline_mode<synchronous>, transform_indices = @transform_5, window_bounds = array<i64: 512, 128>}, {pipeline_mode = #tpu.pipeline_mode<synchronous>, transform_indices = @transform_6, window_bounds = array<i64: 128, 128>}, {pipeline_mode = #tpu.pipeline_mode<synchronous>, transform_indices = @transform_7, window_bounds = array<i64: 8, 768>}, {transform_indices = @transform_8, window_bounds = array<i64: 8, 128>}]} {
    %c0 = arith.constant 0 : index
    %c0_0 = arith.constant 0 : index
    %0 = vector.load %arg1[%c0, %c0_0] : memref<8x128xf32, #tpu.memory_space<vmem>>, vector<8x128xf32>
    %1 = arith.truncf %0 : vector<8x128xf32> to vector<8x128xbf16>
    %c0_1 = arith.constant 0 : index
    %c0_2 = arith.constant 0 : index
    %2 = vector.load %arg8[%c0_1, %c0_2] : memref<8x768xf32, #tpu.memory_space<vmem>>, vector<8x768xf32>
    %3 = vector.extract_strided_slice %2 {offsets = [0, 0], sizes = [1, 768], strides = [1, 1]} : vector<8x768xf32> to vector<1x768xf32>
    %4 = vector.extract_strided_slice %2 {offsets = [1, 0], sizes = [1, 128], strides = [1, 1]} : vector<8x768xf32> to vector<1x128xf32>
    %5 = vector.extract_strided_slice %2 {offsets = [2, 0], sizes = [1, 512], strides = [1, 1]} : vector<8x768xf32> to vector<1x512xf32>
    %6 = vector.extract_strided_slice %2 {offsets = [3, 0], sizes = [1, 128], strides = [1, 1]} : vector<8x768xf32> to vector<1x128xf32>
    %7 = vector.extract_strided_slice %2 {offsets = [4, 0], sizes = [1, 128], strides = [1, 1]} : vector<8x768xf32> to vector<1x128xf32>
    %8 = vector.extract_strided_slice %2 {offsets = [5, 0], sizes = [1, 128], strides = [1, 1]} : vector<8x768xf32> to vector<1x128xf32>
    %9 = vector.extract_strided_slice %2 {offsets = [6, 0], sizes = [1, 128], strides = [1, 1]} : vector<8x768xf32> to vector<1x128xf32>
    %10 = vector.extract_strided_slice %2 {offsets = [7, 0], sizes = [1, 128], strides = [1, 1]} : vector<8x768xf32> to vector<1x128xf32>
    %c0_3 = arith.constant 0 : index
    %c0_4 = arith.constant 0 : index
    %11 = vector.load %arg2[%c0_3, %c0_4] : memref<128x768xbf16, #tpu.memory_space<vmem>>, vector<128x768xbf16>
    %cst = arith.constant dense<0.000000e+00> : vector<8x768xf32>
    %12 = tpu.matmul %1, %11, %cst {dimension_numbers = #tpu.dot_dimension_numbers<[1], [0], [0], [1], [0, 0, 1, 1], [], []>} : vector<8x128xbf16>, vector<128x768xbf16>, vector<8x768xf32> -> vector<8x768xf32>
    %13 = vector.broadcast %3 : vector<1x768xf32> to vector<8x768xf32>
    %14 = arith.addf %12, %13 : vector<8x768xf32>
    %15 = vector.extract_strided_slice %14 {offsets = [0, 0], sizes = [8, 256], strides = [1, 1]} : vector<8x768xf32> to vector<8x256xf32>
    %16 = vector.extract_strided_slice %14 {offsets = [0, 256], sizes = [8, 256], strides = [1, 1]} : vector<8x768xf32> to vector<8x256xf32>
    %17 = arith.mulf %15, %16 : vector<8x256xf32>
    %18 = arith.truncf %17 : vector<8x256xf32> to vector<8x256xbf16>
    %c0_5 = arith.constant 0 : index
    %c0_6 = arith.constant 0 : index
    %19 = vector.load %arg3[%c0_5, %c0_6] : memref<256x256xbf16, #tpu.memory_space<vmem>>, vector<256x256xbf16>
    %cst_7 = arith.constant dense<0.000000e+00> : vector<8x256xf32>
    %20 = tpu.matmul %18, %19, %cst_7 {dimension_numbers = #tpu.dot_dimension_numbers<[1], [0], [0], [1], [0, 0, 1, 1], [], []>} : vector<8x256xbf16>, vector<256x256xbf16>, vector<8x256xf32> -> vector<8x256xf32>
    %21 = vector.extract_strided_slice %20 {offsets = [0, 0], sizes = [8, 128], strides = [1, 1]} : vector<8x256xf32> to vector<8x128xf32>
    %22 = vector.extract_strided_slice %20 {offsets = [0, 128], sizes = [8, 128], strides = [1, 1]} : vector<8x256xf32> to vector<8x128xf32>
    %23 = vector.extract_strided_slice %14 {offsets = [0, 512], sizes = [8, 128], strides = [1, 1]} : vector<8x768xf32> to vector<8x128xf32>
    %24 = vector.extract_strided_slice %14 {offsets = [0, 640], sizes = [8, 128], strides = [1, 1]} : vector<8x768xf32> to vector<8x128xf32>
    %25 = arith.maximumf %21, %22 : vector<8x128xf32>
    %26 = arith.subf %21, %25 : vector<8x128xf32>
    %27 = math.exp %26 : vector<8x128xf32>
    %28 = arith.subf %22, %25 : vector<8x128xf32>
    %29 = math.exp %28 : vector<8x128xf32>
    %30 = arith.addf %27, %29 : vector<8x128xf32>
    %31 = tpu.reciprocal %30 {approx = true} : vector<8x128xf32> -> vector<8x128xf32>
    %32 = arith.mulf %27, %23 : vector<8x128xf32>
    %33 = arith.mulf %29, %24 : vector<8x128xf32>
    %34 = arith.addf %32, %33 : vector<8x128xf32>
    %35 = arith.mulf %34, %31 : vector<8x128xf32>
    %36 = arith.truncf %35 : vector<8x128xf32> to vector<8x128xbf16>
    %c0_8 = arith.constant 0 : index
    %c0_9 = arith.constant 0 : index
    %37 = vector.load %arg4[%c0_8, %c0_9] : memref<128x128xbf16, #tpu.memory_space<vmem>>, vector<128x128xbf16>
    %cst_10 = arith.constant dense<0.000000e+00> : vector<8x128xf32>
    %38 = tpu.matmul %36, %37, %cst_10 {dimension_numbers = #tpu.dot_dimension_numbers<[1], [0], [0], [1], [0, 0, 1, 1], [], []>} : vector<8x128xbf16>, vector<128x128xbf16>, vector<8x128xf32> -> vector<8x128xf32>
    %39 = vector.broadcast %4 : vector<1x128xf32> to vector<8x128xf32>
    %40 = arith.addf %38, %39 : vector<8x128xf32>
    %c0_11 = arith.constant 0 : index
    %c0_12 = arith.constant 0 : index
    %41 = vector.load %arg7[%c0_11, %c0_12] : memref<128x128xf32, #tpu.memory_space<vmem>>, vector<128x128xf32>
    %42 = arith.addf %0, %40 : vector<8x128xf32>
    %cst_13 = arith.constant dense<0.000000e+00> : vector<8x128xf32>
    %43 = tpu.matmul %42, %41, %cst_13 {dimension_numbers = #tpu.dot_dimension_numbers<[1], [0], [0], [1], [0, 0, 1, 1], [], []>} : vector<8x128xf32>, vector<128x128xf32>, vector<8x128xf32> -> vector<8x128xf32>
    %44 = arith.subf %42, %43 : vector<8x128xf32>
    %45 = arith.mulf %44, %44 : vector<8x128xf32>
    %cst_14 = arith.constant dense<0.000000e+00> : vector<8x128xf32>
    %46 = tpu.matmul %45, %41, %cst_14 {dimension_numbers = #tpu.dot_dimension_numbers<[1], [0], [0], [1], [0, 0, 1, 1], [], []>} : vector<8x128xf32>, vector<128x128xf32>, vector<8x128xf32> -> vector<8x128xf32>
    %cst_15 = arith.constant 9.99999974E-6 : f32
    %47 = vector.broadcast %cst_15 : f32 to vector<8x128xf32>
    %48 = arith.addf %46, %47 : vector<8x128xf32>
    %49 = math.rsqrt %48 : vector<8x128xf32>
    %50 = arith.mulf %44, %49 : vector<8x128xf32>
    %51 = vector.broadcast %7 : vector<1x128xf32> to vector<8x128xf32>
    %52 = arith.mulf %50, %51 : vector<8x128xf32>
    %53 = vector.broadcast %8 : vector<1x128xf32> to vector<8x128xf32>
    %54 = arith.addf %52, %53 : vector<8x128xf32>
    %55 = arith.truncf %54 : vector<8x128xf32> to vector<8x128xbf16>
    %c0_16 = arith.constant 0 : index
    %c0_17 = arith.constant 0 : index
    %56 = vector.load %arg5[%c0_16, %c0_17] : memref<128x512xbf16, #tpu.memory_space<vmem>>, vector<128x512xbf16>
    %cst_18 = arith.constant dense<0.000000e+00> : vector<8x512xf32>
    %57 = tpu.matmul %55, %56, %cst_18 {dimension_numbers = #tpu.dot_dimension_numbers<[1], [0], [0], [1], [0, 0, 1, 1], [], []>} : vector<8x128xbf16>, vector<128x512xbf16>, vector<8x512xf32> -> vector<8x512xf32>
    %58 = vector.broadcast %5 : vector<1x512xf32> to vector<8x512xf32>
    %59 = arith.addf %57, %58 : vector<8x512xf32>
    %cst_19 = arith.constant 0.000000e+00 : f32
    %60 = vector.broadcast %cst_19 : f32 to vector<8x512xf32>
    %61 = arith.maximumf %59, %60 : vector<8x512xf32>
    %62 = arith.truncf %61 : vector<8x512xf32> to vector<8x512xbf16>
    %c0_20 = arith.constant 0 : index
    %c0_21 = arith.constant 0 : index
    %63 = vector.load %arg6[%c0_20, %c0_21] : memref<512x128xbf16, #tpu.memory_space<vmem>>, vector<512x128xbf16>
    %cst_22 = arith.constant dense<0.000000e+00> : vector<8x128xf32>
    %64 = tpu.matmul %62, %63, %cst_22 {dimension_numbers = #tpu.dot_dimension_numbers<[1], [0], [0], [1], [0, 0, 1, 1], [], []>} : vector<8x512xbf16>, vector<512x128xbf16>, vector<8x128xf32> -> vector<8x128xf32>
    %65 = vector.broadcast %6 : vector<1x128xf32> to vector<8x128xf32>
    %66 = arith.addf %64, %65 : vector<8x128xf32>
    %67 = arith.addf %54, %66 : vector<8x128xf32>
    %cst_23 = arith.constant dense<0.000000e+00> : vector<8x128xf32>
    %68 = tpu.matmul %67, %41, %cst_23 {dimension_numbers = #tpu.dot_dimension_numbers<[1], [0], [0], [1], [0, 0, 1, 1], [], []>} : vector<8x128xf32>, vector<128x128xf32>, vector<8x128xf32> -> vector<8x128xf32>
    %69 = arith.subf %67, %68 : vector<8x128xf32>
    %70 = arith.mulf %69, %69 : vector<8x128xf32>
    %cst_24 = arith.constant dense<0.000000e+00> : vector<8x128xf32>
    %71 = tpu.matmul %70, %41, %cst_24 {dimension_numbers = #tpu.dot_dimension_numbers<[1], [0], [0], [1], [0, 0, 1, 1], [], []>} : vector<8x128xf32>, vector<128x128xf32>, vector<8x128xf32> -> vector<8x128xf32>
    %cst_25 = arith.constant 9.99999974E-6 : f32
    %72 = vector.broadcast %cst_25 : f32 to vector<8x128xf32>
    %73 = arith.addf %71, %72 : vector<8x128xf32>
    %74 = math.rsqrt %73 : vector<8x128xf32>
    %75 = arith.mulf %69, %74 : vector<8x128xf32>
    %76 = vector.broadcast %9 : vector<1x128xf32> to vector<8x128xf32>
    %77 = arith.mulf %75, %76 : vector<8x128xf32>
    %78 = vector.broadcast %10 : vector<1x128xf32> to vector<8x128xf32>
    %79 = arith.addf %77, %78 : vector<8x128xf32>
    %c0_26 = arith.constant 0 : index
    %c0_27 = arith.constant 0 : index
    %80 = vector.load %arg9[%c0_26, %c0_27] : memref<8x128xf32, #tpu.memory_space<vmem>>, vector<8x128xf32>
    tpu.vector_store %arg9[%c0_26, %c0_27], %79 {strides = array<i32>} : memref<8x128xf32, #tpu.memory_space<vmem>>, vector<8x128xf32>,
    return
  }
  func.func @transform_0(%arg0: i32) -> (i32, i32) {
    %c0_i32 = arith.constant 0 : i32
    %c0_i32_0 = arith.constant 0 : i32
    return %arg0, %c0_i32 : i32, i32
  }
  func.func @transform_1(%arg0: i32) -> (i32, i32) {
    %c0_i32 = arith.constant 0 : i32
    %c0_i32_0 = arith.constant 0 : i32
    %c0_i32_1 = arith.constant 0 : i32
    return %c0_i32, %c0_i32_0 : i32, i32
  }
  func.func @transform_2(%arg0: i32) -> (i32, i32) {
    %c0_i32 = arith.constant 0 : i32
    %c0_i32_0 = arith.constant 0 : i32
    %c0_i32_1 = arith.constant 0 : i32
    return %c0_i32, %c0_i32_0 : i32, i32
  }
  func.func @transform_3(%arg0: i32) -> (i32, i32) {
    %c0_i32 = arith.constant 0 : i32
    %c0_i32_0 = arith.constant 0 : i32
    %c0_i32_1 = arith.constant 0 : i32
    return %c0_i32, %c0_i32_0 : i32, i32
  }
  func.func @transform_4(%arg0: i32) -> (i32, i32) {
    %c0_i32 = arith.constant 0 : i32
    %c0_i32_0 = arith.constant 0 : i32
    %c0_i32_1 = arith.constant 0 : i32
    return %c0_i32, %c0_i32_0 : i32, i32
  }
  func.func @transform_5(%arg0: i32) -> (i32, i32) {
    %c0_i32 = arith.constant 0 : i32
    %c0_i32_0 = arith.constant 0 : i32
    %c0_i32_1 = arith.constant 0 : i32
    return %c0_i32, %c0_i32_0 : i32, i32
  }
  func.func @transform_6(%arg0: i32) -> (i32, i32) {
    %c0_i32 = arith.constant 0 : i32
    %c0_i32_0 = arith.constant 0 : i32
    %c0_i32_1 = arith.constant 0 : i32
    return %c0_i32, %c0_i32_0 : i32, i32
  }
  func.func @transform_7(%arg0: i32) -> (i32, i32) {
    %c0_i32 = arith.constant 0 : i32
    %c0_i32_0 = arith.constant 0 : i32
    %c0_i32_1 = arith.constant 0 : i32
    return %c0_i32, %c0_i32_0 : i32, i32
  }
  func.func @transform_8(%arg0: i32) -> (i32, i32) {
    %c0_i32 = arith.constant 0 : i32
    %c0_i32_0 = arith.constant 0 : i32
    return %arg0, %c0_i32 : i32, i32
  }
}

</mosaic_0001>

<bundles_post_ra>
// kernel: reverse.1
= control target key start
LH: loop header
LB: loop body
LE: loop exit
PB: predicated region body
PF: predicated region fallthrough
CT: control target
= control target key end

     0   :  { %v79_v8 = vld [vmem:[#allocation1 + $0x38] sm:$0xf]  ;;  %v87_v9 = vld [vmem:[#allocation1 + $0x30] sm:$0xf]  ;;  %v95_v10 = vld [vmem:[#allocation1 + $0x28] sm:$0xf]  ;;  %v144_v16 = vlaneseq  ;;  %s447_s0 = inlined_call_operand.vmem [shape: f32[8,32,3], index: 0, kind: input, shape index: {}]   ;;  %s448_s1 = inlined_call_operand.vmem [shape: f32[8,32,3], index: 1, kind: output, shape index: {}]  }
   0x1   :  { %v19_v0 = vld [vmem:[%s447_s0] sm:$0xf]  ;;  %v21_v1 = vld [vmem:[%s447_s0 + $0x4] sm:$0xf]  ;;  %v23_v2 = vld [vmem:[%s447_s0 + $0x8] sm:$0xf] }
   0x2   :  { %20 = vst [vmem:[#allocation1 + $0x4] sm:$0xf] %v19_v0  ;;  %v25_v3 = vld [vmem:[%s447_s0 + $0xc] sm:$0xf]  ;;  %v27_v4 = vld [vmem:[%s447_s0 + $0x10] sm:$0xf] }
   0x3   :  { %22 = vst [vmem:[#allocation1 + $0xc] sm:$0xf] %v21_v1  ;;  %v29_v5 = vld [vmem:[%s447_s0 + $0x14] sm:$0xf]  ;;  %v31_v6 = vld [vmem:[%s447_s0 + $0x18] sm:$0xf] }
   0x4   :  { %24 = vst [vmem:[#allocation1 + $0x14] sm:$0xf] %v23_v2  ;;  %v33_v7 = vld [vmem:[%s447_s0 + $0x1c] sm:$0xf]  ;;  %v103_v11 = vld [vmem:[#allocation1 + $0x20] sm:$0xf] }
   0x5   :  { %26 = vst [vmem:[#allocation1 + $0x1c] sm:$0xf] %v25_v3  ;;  %v111_v18 = vld [vmem:[#allocation1 + $0x18] sm:$0xf]  ;;  %v119_v20 = vld [vmem:[#allocation1 + $0x10] sm:$0xf] }
   0x6   :  { %28 = vst [vmem:[#allocation1 + $0x24] sm:$0xf] %v27_v4  ;;  %v127_v21 = vld [vmem:[#allocation1 + $0x8] sm:$0xf]  ;;  %v145_v23 = vshrl.u32 %v144_v16, 7 }
   0x7   :  { %30 = vst [vmem:[#allocation1 + $0x2c] sm:$0xf] %v29_v5  ;;  %v134_v28 = vld [vmem:[#allocation1] sm:$0xf] }
   0x8   :  { %32 = vst [vmem:[#allocation1 + $0x34] sm:$0xf] %v31_v6  ;;  %vm146_vm0 = vcmp.lt.s32.totalorder %v145_v23, 3 }
   0x9   :  { %34 = vst [vmem:[#allocation1 + $0x3c] sm:$0xf] %v33_v7  ;;  %v131_v24 = vld [vmem:[#allocation1 + $0x4] sm:$0xf] }
   0xa   :  { %81 = vst [vmem:[#allocation0 + $0x70] sm:$0xf] %v79_v8  ;;  %v123_v22 = vld [vmem:[#allocation1 + $0xc] sm:$0xf] }
   0xb   :  { %89 = vst [vmem:[#allocation0 + $0x60] sm:$0xf] %v87_v9  ;;  %v115_v19 = vld [vmem:[#allocation1 + $0x14] sm:$0xf] }
   0xc   :  { %97 = vst [vmem:[#allocation0 + $0x50] sm:$0xf] %v95_v10  ;;  %v107_v15 = vld [vmem:[#allocation1 + $0x1c] sm:$0xf] }
   0xd   :  { %v99_v12 = vld [vmem:[#allocation1 + $0x24] sm:$0xf]  ;;  %105 = vst [vmem:[#allocation0 + $0x40] sm:$0xf] %v103_v11 }
   0xe   :  { %v91_v13 = vld [vmem:[#allocation1 + $0x2c] sm:$0xf]  ;;  %101 = vst [vmem:[#allocation0 + $0x48] sm:$0xf] %v99_v12 }
   0xf   :  { %v83_v14 = vld [vmem:[#allocation1 + $0x34] sm:$0xf]  ;;  %93 = vst [vmem:[#allocation0 + $0x58] sm:$0xf] %v91_v13 }
  0x10   :  { %v75_v17 = vld [vmem:[#allocation1 + $0x3c] sm:$0xf]  ;;  %85 = vst [vmem:[#allocation0 + $0x68] sm:$0xf] %v83_v14 }
  0x11   :  { %77 = vst [vmem:[#allocation0 + $0x78] sm:$0xf] %v75_v17  ;;  %v235_v52 = vld [vmem:[#allocation0 + $0x77] ss:$-1 sm:$0xff] }
  0x12   :  { %109 = vst [vmem:[#allocation0 + $0x38] sm:$0xf] %v107_v15  ;;  %v221_v46 = vld [vmem:[#allocation0 + $0x67] ss:$-1 sm:$0xff]  ;;  %v236_v56 = vrot.slane %v235_v52, 5 }
  0x13   :  { %113 = vst [vmem:[#allocation0 + $0x30] sm:$0xf] %v111_v18  ;;  %v207_v27 = vld [vmem:[#allocation0 + $0x57] ss:$-1 sm:$0xff]  ;;  %v222_v53 = vrot.slane %v221_v46, 5 }
  0x14   :  { %117 = vst [vmem:[#allocation0 + $0x28] sm:$0xf] %v115_v19  ;;  %v193_v25 = vld [vmem:[#allocation0 + $0x47] ss:$-1 sm:$0xff]  ;;  %v208_v31 = vrot.slane %v207_v27, 5 }
  0x15   :  { %121 = vst [vmem:[#allocation0 + $0x20] sm:$0xf] %v119_v20  ;;  %v198_v26 = vld [vmem:[#allocation0 + $0x4f] ss:$-1 sm:$0xff]  ;;  %v194_v29 = vrot.slane %v193_v25, 5 }
  0x16   :  { %125 = vst [vmem:[#allocation0 + $0x18] sm:$0xf] %v123_v22  ;;  %v199_v30 = vrot.slane %v198_v26, 5  ;;  %v212_v43 = vld [vmem:[#allocation0 + $0x5f] ss:$-1 sm:$0xff] }
  0x17   :  { %129 = vst [vmem:[#allocation0 + $0x10] sm:$0xf] %v127_v21  ;;  %v226_v49 = vld [vmem:[#allocation0 + $0x6f] ss:$-1 sm:$0xff]  ;;  %v213_v51 = vrot.slane %v212_v43, 5 }
  0x18   :  { %133 = vst [vmem:[#allocation0 + $0x8] sm:$0xf] %v131_v24  ;;  %v240_v54 = vld [vmem:[#allocation0 + $0x7f] ss:$-1 sm:$0xff]  ;;  %v227_v55 = vrot.slane %v226_v49, 5 }
  0x19   :  { %135 = vst [vmem:[#allocation0] sm:$0xf] %v134_v28  ;;  %v184_v32 = vld [vmem:[#allocation0 + $0x3f] ss:$-1 sm:$0xff]  ;;  %v241_v57 = vrot.slane %v240_v54, 5 }
  0x1a   :  { %v179_v33 = vld [vmem:[#allocation0 + $0x37] ss:$-1 sm:$0xff]  ;;  %v185_v34 = vrot.slane %v184_v32, 5  ;;  %195 = vst [vmem:[#allocation2 + $0x20] sm:$0xff] %v194_v29 }
  0x1b   :  { %v170_v35 = vld [vmem:[#allocation0 + $0x2f] ss:$-1 sm:$0xff]  ;;  %v180_v36 = vrot.slane %v179_v33, 5  ;;  %203 = vst.msk [vmem:[#allocation2 + $0x20] sm:$0xff] %vm146_vm0, %v199_v30 }
  0x1c   :  { %v165_v37 = vld [vmem:[#allocation0 + $0x27] ss:$-1 sm:$0xff]  ;;  %v171_v38 = vrot.slane %v170_v35, 5  ;;  %209 = vst [vmem:[#allocation2 + $0x28] sm:$0xff] %v208_v31 }
  0x1d   :  { %v156_v39 = vld [vmem:[#allocation0 + $0x1f] ss:$-1 sm:$0xff]  ;;  %v166_v40 = vrot.slane %v165_v37, 5  ;;  %181 = vst [vmem:[#allocation2 + $0x18] sm:$0xff] %v180_v36 }
  0x1e   :  { %v151_v41 = vld [vmem:[#allocation0 + $0x17] ss:$-1 sm:$0xff]  ;;  %v157_v42 = vrot.slane %v156_v39, 5  ;;  %189 = vst.msk [vmem:[#allocation2 + $0x18] sm:$0xff] %vm146_vm0, %v185_v34 }
  0x1f   :  { %v142_v44 = vld [vmem:[#allocation0 + $0xf] ss:$-1 sm:$0xff]  ;;  %v152_v45 = vrot.slane %v151_v41, 5  ;;  %167 = vst [vmem:[#allocation2 + $0x10] sm:$0xff] %v166_v40 }
  0x20   :  { %v137_v47 = vld [vmem:[#allocation0 + $0x7] ss:$-1 sm:$0xff]  ;;  %v143_v48 = vrot.slane %v142_v44, 5  ;;  %175 = vst.msk [vmem:[#allocation2 + $0x10] sm:$0xff] %vm146_vm0, %v171_v38 }
  0x21   :  { %v138_v50 = vrot.slane %v137_v47, 5  ;;  %153 = vst [vmem:[#allocation2 + $0x8] sm:$0xff] %v152_v45 }
  0x22   :  { %161 = vst.msk [vmem:[#allocation2 + $0x8] sm:$0xff] %vm146_vm0, %v157_v42  ;;  %v271_v62 = vld [vmem:[#allocation2 + $0x20] sm:$0xf] }
  0x23   :  { %139 = vst [vmem:[#allocation2] sm:$0xff] %v138_v50 }
  0x24   :  { %147 = vst.msk [vmem:[#allocation2] sm:$0xff] %vm146_vm0, %v143_v48 }
  0x25   :  { %217 = vst.msk [vmem:[#allocation2 + $0x28] sm:$0xff] %vm146_vm0, %v213_v51  ;;  %v265_v60 = vld [vmem:[#allocation2 + $0x18] sm:$0xf] }
  0x26   :  { %223 = vst [vmem:[#allocation2 + $0x30] sm:$0xff] %v222_v53 }
  0x27   :  { %231 = vst.msk [vmem:[#allocation2 + $0x30] sm:$0xff] %vm146_vm0, %v227_v55  ;;  %v259_v58 = vld [vmem:[#allocation2 + $0x10] sm:$0xf] }
  0x28   :  { %237 = vst [vmem:[#allocation2 + $0x38] sm:$0xff] %v236_v56 }
  0x29   :  { %245 = vst.msk [vmem:[#allocation2 + $0x38] sm:$0xff] %vm146_vm0, %v241_v57  ;;  %v253_v59 = vld [vmem:[#allocation2 + $0x8] sm:$0xf] }
  0x2a   :  { %257 = vst [vmem:[#allocation3 + $0x4] sm:$0xf] %v253_v59 }
  0x2b   :  { %v248_v61 = vld [vmem:[#allocation2] sm:$0xf]  ;;  %263 = vst [vmem:[#allocation3 + $0x8] sm:$0xf] %v259_v58 }
  0x2c   :  { %251 = vst [vmem:[#allocation3] sm:$0xf] %v248_v61  ;;  %v277_v63 = vld [vmem:[#allocation2 + $0x28] sm:$0xf] }
  0x2d   :  { %269 = vst [vmem:[#allocation3 + $0xc] sm:$0xf] %v265_v60 }
  0x2e   :  { %275 = vst [vmem:[#allocation3 + $0x10] sm:$0xf] %v271_v62  ;;  %v283_v0 = vld [vmem:[#allocation2 + $0x30] sm:$0xf] }
  0x2f   :  { %281 = vst [vmem:[#allocation3 + $0x14] sm:$0xf] %v277_v63 }
  0x30   :  { %287 = vst [vmem:[#allocation3 + $0x18] sm:$0xf] %v283_v0  ;;  %v289_v1 = vld [vmem:[#allocation2 + $0x38] sm:$0xf] }
  0x31   :  { %293 = vst [vmem:[#allocation3 + $0x1c] sm:$0xf] %v289_v1 }
  0x33   :  { %v310_v2 = vld [vmem:[#allocation3] sm:$0xff]  }
  0x34   :  { %311 = vst [vmem:[%s448_s1] sm:$0xff] %v310_v2   ;;  %v314_v3 = vld [vmem:[#allocation3 + $0x8] sm:$0xff]  }
  0x35   :  { %315 = vst [vmem:[%s448_s1 + $0x8] sm:$0xff] %v314_v3  }
  0x36   :  { %v318_v4 = vld [vmem:[#allocation3 + $0x10] sm:$0xff]  }
  0x37   :  { %319 = vst [vmem:[%s448_s1 + $0x10] sm:$0xff] %v318_v4  }
  0x38   :  { %v322_v5 = vld [vmem:[#allocation3 + $0x18] sm:$0xff]  }
  0x39   :  { %323 = vst [vmem:[%s448_s1 + $0x18] sm:$0xff] %v322_v5  }

// kernel: block_forward.2
= control target key start
LH: loop header
LB: loop body
LE: loop exit
PB: predicated region body
PF: predicated region fallthrough
CT: control target
= control target key end

     0   :  { %s2613_s27 = smov 0   ;;  %s3646_s0 = inlined_call_operand.vmem [shape: f32[16,128], index: 0, kind: input, shape index: {}]   ;;  %s3647_s1 = inlined_call_operand.vmem [shape: bf16[128,768], index: 1, kind: input, shape index: {}]   ;;  %s3648_s2 = inlined_call_operand.vmem [shape: bf16[256,256], index: 2, kind: input, shape index: {}]   ;;  %s3649_s3 = inlined_call_operand.vmem [shape: bf16[128,128], index: 3, kind: input, shape index: {}]   ;;  %s3650_s4 = inlined_call_operand.vmem [shape: bf16[128,512], index: 4, kind: input, shape index: {}]   ;;  %s3651_s5 = inlined_call_operand.vmem [shape: bf16[512,128], index: 5, kind: input, shape index: {}]   ;;  %s3652_s6 = inlined_call_operand.vmem [shape: f32[128,128], index: 6, kind: input, shape index: {}]   ;;  %s3653_s7 = inlined_call_operand.vmem [shape: f32[8,768], index: 7, kind: input, shape index: {}]   ;;  %s3654_s8 = inlined_call_operand.vmem [shape: f32[16,128], index: 8, kind: output, shape index: {}]  }
   0x1 LB: > { %s1773_s28 = sadd.s32 4294967295, %s2566_s27   ;;  %p1777_p0 = scmp.ge.s32.totalorder %s2566_s27, 1  ;;  %s2566_s27 = sphi %s2613_s27, %s18_s27  }
   0x2   : > { %p261_p1 = scmp.lt.s32.totalorder %s2566_s27, 3 }
   0x4   : > { %p262_p2 = pnand %p1777_p0, %p261_p1 }
   0x5   : > { %p293_p3 = scmp.lt.s32.totalorder (!%p262_p2), %s1773_s28, 1 }
   0x6   : > { %265 = sbr.rel (%p262_p2) target bundleno = 1340 (0x53c), region = 52 }
   0xb   : > { %v1950_v0 = vld [vmem:[%s3647_s1 + $0x150] sm:$0xf]  ;;  %v2435_v1 = vld [vmem:[%s3647_s1 + $0x164] sm:$0xf0]  ;;  %v2432_v2 = vld [vmem:[%s3647_s1 + $0x154] sm:$0xf] }
   0xc   : > { %v1951_v3 = vor.u32 %v2435_v1, %v1950_v0  ;;  %v1952_v4 = vld [vmem:[%s3647_s1 + $0x168] sm:$0xf0]  ;;  %v1958_v5 = vld [vmem:[%s3647_s1 + $0x158] sm:$0xf]  ;;  %v2436_v6 = vld [vmem:[%s3647_s1 + $0x16c] sm:$0xf0] }
   0xd   : > { %v1955_v7 = vor.u32 %v2432_v2, %v1952_v4  ;;  %v1959_v8 = vor.u32 %v2436_v6, %v1958_v5  ;;  %v2433_v9 = vld [vmem:[%s3647_s1 + $0x15c] sm:$0xf]  ;;  %v1960_v10 = vld [vmem:[%s3647_s1 + $0x170] sm:$0xf0]  ;;  %v1926_v11 = vld [vmem:[%s3647_s1 + $0x120] sm:$0xf] }
   0xe   : > { %603 = vmatpush.bf16.msra.mxu0 %v1951_v3  ;;  %v1963_v12 = vor.u32 %v2433_v9, %v1960_v10  ;;  %v2429_v13 = vld [vmem:[%s3647_s1 + $0x134] sm:$0xf0]  ;;  %v2426_v14 = vld [vmem:[%s3647_s1 + $0x124] sm:$0xf]  ;;  %v1928_v15 = vld [vmem:[%s3647_s1 + $0x138] sm:$0xf0] }
   0xf   : > { %616 = vmatpush.bf16.msra.mxu1 %v1955_v7  ;;  %629 = vmatpush.bf16.msra.mxu2 %v1959_v8  ;;  %v1927_v16 = vor.u32 %v2429_v13, %v1926_v11  ;;  %v1931_v17 = vor.u32 %v2426_v14, %v1928_v15  ;;  %v1934_v18 = vld [vmem:[%s3647_s1 + $0x128] sm:$0xf]  ;;  %v2430_v19 = vld [vmem:[%s3647_s1 + $0x13c] sm:$0xf0]  ;;  %v2427_v20 = vld [vmem:[%s3647_s1 + $0x12c] sm:$0xf] }
  0x10   : > { %642 = vmatpush.bf16.msra.mxu3 %v1963_v12  ;;  %v1935_v21 = vor.u32 %v2430_v19, %v1934_v18  ;;  %v1936_v22 = vld [vmem:[%s3647_s1 + $0x140] sm:$0xf0]  ;;  %v1902_v23 = vld [vmem:[%s3647_s1 + $0xf0] sm:$0xf]  ;;  %v2423_v24 = vld [vmem:[%s3647_s1 + $0x104] sm:$0xf0] }
  0x11   : > { %v1939_v25 = vor.u32 %v2427_v20, %v1936_v22  ;;  %v2420_v26 = vld [vmem:[%s3647_s1 + $0xf4] sm:$0xf]  ;;  %v1904_v27 = vld [vmem:[%s3647_s1 + $0x108] sm:$0xf0]  ;;  %v1910_v28 = vld [vmem:[%s3647_s1 + $0xf8] sm:$0xf]  ;;  %v1903_v29 = vor.u32 %v2423_v24, %v1902_v23 }
  0x12   : > { %604 = vmatpush.bf16.msra.mxu0 %v1927_v16  ;;  %v2424_v30 = vld [vmem:[%s3647_s1 + $0x10c] sm:$0xf0]  ;;  %v2421_v31 = vld [vmem:[%s3647_s1 + $0xfc] sm:$0xf]  ;;  %v1912_v32 = vld [vmem:[%s3647_s1 + $0x110] sm:$0xf0]  ;;  %v1907_v33 = vor.u32 %v2420_v26, %v1904_v27 }
  0x13   : > { %617 = vmatpush.bf16.msra.mxu1 %v1931_v17  ;;  %630 = vmatpush.bf16.msra.mxu2 %v1935_v21  ;;  %v1911_v34 = vor.u32 %v2424_v30, %v1910_v28  ;;  %v1878_v35 = vld [vmem:[%s3647_s1 + $0xc0] sm:$0xf]  ;;  %v2417_v36 = vld [vmem:[%s3647_s1 + $0xd4] sm:$0xf0]  ;;  %v2414_v37 = vld [vmem:[%s3647_s1 + $0xc4] sm:$0xf]  ;;  %v1915_v38 = vor.u32 %v2421_v31, %v1912_v32 }
  0x14   : > { %643 = vmatpush.bf16.msra.mxu3 %v1939_v25  ;;  %v1880_v39 = vld [vmem:[%s3647_s1 + $0xd8] sm:$0xf0]  ;;  %v1886_v40 = vld [vmem:[%s3647_s1 + $0xc8] sm:$0xf]  ;;  %v2418_v41 = vld [vmem:[%s3647_s1 + $0xdc] sm:$0xf0]  ;;  %v1879_v44 = vor.u32 %v2417_v36, %v1878_v35 }
  0x15   : > { %v2415_v42 = vld [vmem:[%s3647_s1 + $0xcc] sm:$0xf]  ;;  %v1888_v43 = vld [vmem:[%s3647_s1 + $0xe0] sm:$0xf0]  ;;  %v1883_v45 = vor.u32 %v2414_v37, %v1880_v39  ;;  %v1887_v46 = vor.u32 %v2418_v41, %v1886_v40  ;;  %v1854_v47 = vld [vmem:[%s3647_s1 + $0x90] sm:$0xf] }
  0x16   : > { %605 = vmatpush.bf16.msra.mxu0 %v1903_v29  ;;  %v2411_v48 = vld [vmem:[%s3647_s1 + $0xa4] sm:$0xf0]  ;;  %v2408_v49 = vld [vmem:[%s3647_s1 + $0x94] sm:$0xf]  ;;  %v1891_v50 = vor.u32 %v2415_v42, %v1888_v43  ;;  %v1856_v51 = vld [vmem:[%s3647_s1 + $0xa8] sm:$0xf0] }
  0x17   : > { %618 = vmatpush.bf16.msra.mxu1 %v1907_v33  ;;  %631 = vmatpush.bf16.msra.mxu2 %v1911_v34  ;;  %v1862_v52 = vld [vmem:[%s3647_s1 + $0x98] sm:$0xf]  ;;  %v2412_v53 = vld [vmem:[%s3647_s1 + $0xac] sm:$0xf0]  ;;  %v2409_v54 = vld [vmem:[%s3647_s1 + $0x9c] sm:$0xf]  ;;  %v1855_v56 = vor.u32 %v2411_v48, %v1854_v47  ;;  %v1859_v57 = vor.u32 %v2408_v49, %v1856_v51 }
  0x18   : > { %644 = vmatpush.bf16.msra.mxu3 %v1915_v38  ;;  %v1864_v55 = vld [vmem:[%s3647_s1 + $0xb0] sm:$0xf0]  ;;  %v1863_v58 = vor.u32 %v2412_v53, %v1862_v52  ;;  %v1830_v59 = vld [vmem:[%s3647_s1 + $0x60] sm:$0xf]  ;;  %v2405_v60 = vld [vmem:[%s3647_s1 + $0x74] sm:$0xf0] }
  0x19   : > { %v2402_v61 = vld [vmem:[%s3647_s1 + $0x64] sm:$0xf]  ;;  %v1867_v62 = vor.u32 %v2409_v54, %v1864_v55  ;;  %v1832_v63 = vld [vmem:[%s3647_s1 + $0x78] sm:$0xf0]  ;;  %v1838_v0 = vld [vmem:[%s3647_s1 + $0x68] sm:$0xf]  ;;  %v1831_v4 = vor.u32 %v2405_v60, %v1830_v59 }
  0x1a   : > { %606 = vmatpush.bf16.msra.mxu0 %v1879_v44  ;;  %v2406_v1 = vld [vmem:[%s3647_s1 + $0x7c] sm:$0xf0]  ;;  %v2403_v2 = vld [vmem:[%s3647_s1 + $0x6c] sm:$0xf]  ;;  %v1840_v3 = vld [vmem:[%s3647_s1 + $0x80] sm:$0xf0]  ;;  %v1835_v6 = vor.u32 %v2402_v61, %v1832_v63 }
  0x1b   : > { %619 = vmatpush.bf16.msra.mxu1 %v1883_v45  ;;  %632 = vmatpush.bf16.msra.mxu2 %v1887_v46  ;;  %v1806_v5 = vld [vmem:[%s3647_s1 + $0x30] sm:$0xf]  ;;  %v1839_v7 = vor.u32 %v2406_v1, %v1838_v0  ;;  %v2399_v8 = vld [vmem:[%s3647_s1 + $0x44] sm:$0xf0]  ;;  %v2396_v9 = vld [vmem:[%s3647_s1 + $0x34] sm:$0xf]  ;;  %v1843_v11 = vor.u32 %v2403_v2, %v1840_v3 }
  0x1c   : > { %645 = vmatpush.bf16.msra.mxu3 %v1891_v50  ;;  %v1808_v10 = vld [vmem:[%s3647_s1 + $0x48] sm:$0xf0]  ;;  %v1814_v12 = vld [vmem:[%s3647_s1 + $0x38] sm:$0xf]  ;;  %v2400_v13 = vld [vmem:[%s3647_s1 + $0x4c] sm:$0xf0]  ;;  %v1807_v16 = vor.u32 %v2399_v8, %v1806_v5 }
  0x1d   : > { %v2397_v14 = vld [vmem:[%s3647_s1 + $0x3c] sm:$0xf]  ;;  %v1816_v15 = vld [vmem:[%s3647_s1 + $0x50] sm:$0xf0]  ;;  %v1782_v17 = vld [vmem:[%s3647_s1] sm:$0xf]  ;;  %v1811_v19 = vor.u32 %v2396_v9, %v1808_v10  ;;  %v1815_v20 = vor.u32 %v2400_v13, %v1814_v12 }
  0x1e   : > { %607 = vmatpush.bf16.msra.mxu0 %v1855_v56  ;;  %v2393_v18 = vld [vmem:[%s3647_s1 + $0x14] sm:$0xf0]  ;;  %s3656_s28 = smov (!%p293_p3, %s1773_s28), 1  ;;  %v2390_v21 = vld [vmem:[%s3647_s1 + $0x4] sm:$0xf]  ;;  %v1819_v24 = vor.u32 %v2397_v14, %v1816_v15 }
  0x1f   : > { %620 = vmatpush.bf16.msra.mxu1 %v1859_v57  ;;  %633 = vmatpush.bf16.msra.mxu2 %v1863_v58  ;;  %v1784_v22 = vld [vmem:[%s3647_s1 + $0x18] sm:$0xf0]  ;;  %v1790_v23 = vld [vmem:[%s3647_s1 + $0x8] sm:$0xf]  ;;  %v2394_v25 = vld [vmem:[%s3647_s1 + $0x1c] sm:$0xf0]  ;;  %v1783_v30 = vor.u32 %v2393_v18, %v1782_v17 }
  0x20   : > { %646 = vmatpush.bf16.msra.mxu3 %v1867_v62  ;;  %v2391_v26 = vld [vmem:[%s3647_s1 + $0xc] sm:$0xf]  ;;  %s1778_s13 = sshll.u32 %s3656_s28, 3  ;;  %v1792_v27 = vld [vmem:[%s3647_s1 + $0x20] sm:$0xf0]  ;;  %v1787_v34 = vor.u32 %v2390_v21, %v1784_v22  ;;  %v1791_v35 = vor.u32 %v2394_v25, %v1790_v23 }
  0x21   : > { %s296_s18 = scalar_lea.vmem %s3646_s0, %s1778_s13  ;;  %v1966_v28 = vld [vmem:[%s3647_s1 + $0x160] sm:$0xf]  ;;  %v2437_v29 = vld [vmem:[%s3647_s1 + $0x174] sm:$0xf0]  ;;  %v2434_v32 = vld [vmem:[%s3647_s1 + $0x164] sm:$0xf]  ;;  %v1795_v36 = vor.u32 %v2391_v26, %v1792_v27  ;;  %s300_s30 = scalar_lea.vmem %s3654_s8, %s1778_s13 }
  0x22   : > { %608 = vmatpush.bf16.msra.mxu0 %v1831_v4  ;;  %v2831_v31 = vld [vmem:[%s296_s18] sm:$0xff]  ;;  %v1968_v33 = vld [vmem:[%s3647_s1 + $0x178] sm:$0xf0]  ;;  %v1967_v37 = vor.u32 %v2437_v29, %v1966_v28  ;;  %v1942_v40 = vld [vmem:[%s3647_s1 + $0x130] sm:$0xf] }
  0x23   : > { %621 = vmatpush.bf16.msra.mxu1 %v1835_v6  ;;  %634 = vmatpush.bf16.msra.mxu2 %v1839_v7  ;;  %v2841_v38 = vpack.c.bf16 %v2831_v31, %v2831_v31  ;;  %v1971_v39 = vor.u32 %v2434_v32, %v1968_v33  ;;  %v2431_v41 = vld [vmem:[%s3647_s1 + $0x144] sm:$0xf0]  ;;  %v2428_v42 = vld [vmem:[%s3647_s1 + $0x134] sm:$0xf]  ;;  %v1944_v43 = vld [vmem:[%s3647_s1 + $0x148] sm:$0xf0] }
  0x24   : > { %647 = vmatpush.bf16.msra.mxu3 %v1843_v11  ;;  %v1943_v44 = vor.u32 %v2431_v41, %v1942_v40  ;;  %v1918_v45 = vld [vmem:[%s3647_s1 + $0x100] sm:$0xf]  ;;  %v2030_v46 = vld [vmem:[%s3648_s2 + $0x70] sm:$0xf]  ;;  %v2453_v47 = vld [vmem:[%s3648_s2 + $0x74] sm:$0xf0]  ;;  %v1947_v48 = vor.u32 %v2428_v42, %v1944_v43 }
  0x25   : > { %v2425_v49 = vld [vmem:[%s3647_s1 + $0x114] sm:$0xf0]  ;;  %v2031_v50 = vor.u32 %v2453_v47, %v2030_v46  ;;  %v2094_v51 = vld [vmem:[%s3648_s2 + $0xf0] sm:$0xf]  ;;  %v2422_v53 = vld [vmem:[%s3647_s1 + $0x104] sm:$0xf] }
  0x26   : > { %609 = vmatpush.bf16.msra.mxu0 %v1807_v16  ;;  %v2469_v52 = vld [vmem:[%s3648_s2 + $0xf4] sm:$0xf0]  ;;  %v1920_v54 = vld [vmem:[%s3647_s1 + $0x118] sm:$0xf0]  ;;  %v2022_v56 = vld [vmem:[%s3648_s2 + $0x60] sm:$0xf]  ;;  %v1919_v59 = vor.u32 %v2425_v49, %v1918_v45 }
  0x27   : > { %622 = vmatpush.bf16.msra.mxu1 %v1811_v19  ;;  %635 = vmatpush.bf16.msra.mxu2 %v1815_v20  ;;  %v2095_v55 = vor.u32 %v2469_v52, %v2094_v51  ;;  %v2451_v57 = vld [vmem:[%s3648_s2 + $0x64] sm:$0xf0]  ;;  %v2086_v58 = vld [vmem:[%s3648_s2 + $0xe0] sm:$0xf]  ;;  %v1894_v60 = vld [vmem:[%s3647_s1 + $0xd0] sm:$0xf]  ;;  %v1923_v0 = vor.u32 %v2422_v53, %v1920_v54 }
  0x28   : > { %648 = vmatpush.bf16.msra.mxu3 %v1819_v24  ;;  %v2419_v61 = vld [vmem:[%s3647_s1 + $0xe4] sm:$0xf0]  ;;  %v2023_v62 = vor.u32 %v2451_v57, %v2022_v56  ;;  %v2416_v1 = vld [vmem:[%s3647_s1 + $0xd4] sm:$0xf]  ;;  %v1896_v2 = vld [vmem:[%s3647_s1 + $0xe8] sm:$0xf0] }
  0x29   : > { %v2467_v63 = vld [vmem:[%s3648_s2 + $0xe4] sm:$0xf0]  ;;  %v2014_v4 = vld [vmem:[%s3648_s2 + $0x50] sm:$0xf]  ;;  %v2449_v5 = vld [vmem:[%s3648_s2 + $0x54] sm:$0xf0]  ;;  %v1895_v9 = vor.u32 %v2419_v61, %v1894_v60  ;;  %v1899_v14 = vor.u32 %v2416_v1, %v1896_v2 }
  0x2a   : > { %610 = vmatpush.bf16.msra.mxu0 %v1783_v30  ;;  %v2087_v3 = vor.u32 %v2467_v63, %v2086_v58  ;;  %v2078_v6 = vld [vmem:[%s3648_s2 + $0xd0] sm:$0xf]  ;;  %v2465_v7 = vld [vmem:[%s3648_s2 + $0xd4] sm:$0xf0]  ;;  %v2015_v8 = vor.u32 %v2449_v5, %v2014_v4  ;;  %v1870_v10 = vld [vmem:[%s3647_s1 + $0xa0] sm:$0xf] }
  0x2b   : > { %623 = vmatpush.bf16.msra.mxu1 %v1787_v34  ;;  %636 = vmatpush.bf16.msra.mxu2 %v1791_v35  ;;  %v2079_v11 = vor.u32 %v2465_v7, %v2078_v6  ;;  %v2006_v12 = vld [vmem:[%s3648_s2 + $0x40] sm:$0xf]  ;;  %v2447_v13 = vld [vmem:[%s3648_s2 + $0x44] sm:$0xf0]  ;;  %v2413_v15 = vld [vmem:[%s3647_s1 + $0xb4] sm:$0xf0] }
  0x2c   : > { %649 = vmatpush.bf16.msra.mxu3 %v1795_v36  ;;  %v2070_v16 = vld [vmem:[%s3648_s2 + $0xc0] sm:$0xf]  ;;  %v2463_v17 = vld [vmem:[%s3648_s2 + $0xc4] sm:$0xf0]  ;;  %v2410_v18 = vld [vmem:[%s3647_s1 + $0xa4] sm:$0xf]  ;;  %v2007_v20 = vor.u32 %v2447_v13, %v2006_v12  ;;  %v1871_v21 = vor.u32 %v2413_v15, %v1870_v10 }
  0x2d   : > { %611 = vmatmul.bf16.vlgmr.msra.gmra.mxu0 %v2841_v38  ;;  %v1872_v19 = vld [vmem:[%s3647_s1 + $0xb8] sm:$0xf0]  ;;  %v1846_v22 = vld [vmem:[%s3647_s1 + $0x70] sm:$0xf]  ;;  %v2071_v23 = vor.u32 %v2463_v17, %v2070_v16  ;;  %v2445_v25 = vld [vmem:[%s3648_s2 + $0x34] sm:$0xf0] }
  0x2e   : > { %655 = vmatpush.bf16.msrb.mxu0 %v1967_v37  ;;  %624 = vmatmul.bf16.vlgmr.msra.gmra.mxu1 %v2841_v38  ;;  %v1998_v24 = vld [vmem:[%s3648_s2 + $0x30] sm:$0xf]  ;;  %v1875_v26 = vor.u32 %v2410_v18, %v1872_v19  ;;  %v2407_v27 = vld [vmem:[%s3647_s1 + $0x84] sm:$0xf0]  ;;  %v2461_v29 = vld [vmem:[%s3648_s2 + $0xb4] sm:$0xf0] }
  0x2f   : > { %668 = vmatpush.bf16.msrb.mxu1 %v1971_v39  ;;  %637 = vmatmul.bf16.vlgmr.msra.gmra.mxu2 %v2841_v38  ;;  %v2062_v28 = vld [vmem:[%s3648_s2 + $0xb0] sm:$0xf]  ;;  %v2404_v30 = vld [vmem:[%s3647_s1 + $0x74] sm:$0xf]  ;;  %v1848_v32 = vld [vmem:[%s3647_s1 + $0x88] sm:$0xf0]  ;;  %v1999_v33 = vor.u32 %v2445_v25, %v1998_v24  ;;  %v1847_v34 = vor.u32 %v2407_v27, %v1846_v22 }
  0x30   : > { %650 = vmatmul.bf16.vlgmr.msra.gmra.mxu3 %v2841_v38  ;;  %877 = vmatpush.bf16.msrb.mxu2 %v2031_v50  ;;  %v2063_v35 = vor.u32 %v2461_v29, %v2062_v28  ;;  %v1851_v36 = vor.u32 %v2404_v30, %v1848_v32  ;;  %v1822_v37 = vld [vmem:[%s3647_s1 + $0x40] sm:$0xf]  ;;  %v2401_v39 = vld [vmem:[%s3647_s1 + $0x54] sm:$0xf0]  ;;  %v2398_v40 = vld [vmem:[%s3647_s1 + $0x44] sm:$0xf] }
  0x31   : > { %890 = vmatpush.bf16.msrb.mxu3 %v2095_v55  ;;  %v1824_v41 = vld [vmem:[%s3647_s1 + $0x58] sm:$0xf0]  ;;  %v1823_v42 = vor.u32 %v2401_v39, %v1822_v37  ;;  %v2395_v45 = vld [vmem:[%s3647_s1 + $0x24] sm:$0xf0]  ;;  %v2392_v46 = vld [vmem:[%s3647_s1 + $0x14] sm:$0xf] }
  0x32   : > { %656 = vmatpush.bf16.msrb.mxu0 %v1943_v44  ;;  %v1827_v43 = vor.u32 %v2398_v40, %v1824_v41  ;;  %v1798_v44 = vld [vmem:[%s3647_s1 + $0x10] sm:$0xf]  ;;  %v1800_v47 = vld [vmem:[%s3647_s1 + $0x28] sm:$0xf0]  ;;  %v2032_v49 = vld [vmem:[%s3648_s2 + $0x78] sm:$0xf0] }
  0x33   : > { %669 = vmatpush.bf16.msrb.mxu1 %v1947_v48  ;;  %v2452_v48 = vld [vmem:[%s3648_s2 + $0x74] sm:$0xf]  ;;  %v2096_v51 = vld [vmem:[%s3648_s2 + $0xf8] sm:$0xf0]  ;;  %v1799_v52 = vor.u32 %v2395_v45, %v1798_v44  ;;  %v1803_v53 = vor.u32 %v2392_v46, %v1800_v47  ;;  %v2450_v56 = vld [vmem:[%s3648_s2 + $0x64] sm:$0xf] }
  0x34   : > { %878 = vmatpush.bf16.msrb.mxu2 %v2023_v62  ;;  %v2468_v50 = vld [vmem:[%s3648_s2 + $0xf4] sm:$0xf]  ;;  %v2035_v54 = vor.u32 %v2452_v48, %v2032_v49  ;;  %v2024_v57 = vld [vmem:[%s3648_s2 + $0x68] sm:$0xf0]  ;;  %v2466_v58 = vld [vmem:[%s3648_s2 + $0xe4] sm:$0xf] }
  0x35   : > { %891 = vmatpush.bf16.msrb.mxu3 %v2087_v3  ;;  %v2099_v55 = vor.u32 %v2468_v50, %v2096_v51  ;;  %v2027_v60 = vor.u32 %v2450_v56, %v2024_v57  ;;  %v2448_v62 = vld [vmem:[%s3648_s2 + $0x54] sm:$0xf]  ;;  %v2016_v63 = vld [vmem:[%s3648_s2 + $0x58] sm:$0xf0]  ;;  %v2446_v4 = vld [vmem:[%s3648_s2 + $0x44] sm:$0xf] }
  0x36   : > { %657 = vmatpush.bf16.msrb.mxu0 %v1919_v59  ;;  %v2088_v59 = vld [vmem:[%s3648_s2 + $0xe8] sm:$0xf0]  ;;  %v2080_v1 = vld [vmem:[%s3648_s2 + $0xd8] sm:$0xf0]  ;;  %v2019_v2 = vor.u32 %v2448_v62, %v2016_v63  ;;  %v2462_v6 = vld [vmem:[%s3648_s2 + $0xc4] sm:$0xf] }
  0x37   : > { %670 = vmatpush.bf16.msrb.mxu1 %v1923_v0  ;;  %v2091_v61 = vor.u32 %v2466_v58, %v2088_v59  ;;  %v2464_v0 = vld [vmem:[%s3648_s2 + $0xd4] sm:$0xf]  ;;  %v2008_v5 = vld [vmem:[%s3648_s2 + $0x48] sm:$0xf0]  ;;  %v2000_v10 = vld [vmem:[%s3648_s2 + $0x38] sm:$0xf0] }
  0x38   : > { %879 = vmatpush.bf16.msrb.mxu2 %v2015_v8  ;;  %v2083_v3 = vor.u32 %v2464_v0, %v2080_v1  ;;  %v2011_v7 = vor.u32 %v2446_v4, %v2008_v5  ;;  %v2064_v12 = vld [vmem:[%s3648_s2 + $0xb8] sm:$0xf0]  ;;  %v1990_v15 = vld [vmem:[%s3648_s2 + $0x20] sm:$0xf]  ;;  %v2443_v16 = vld [vmem:[%s3648_s2 + $0x24] sm:$0xf0] }
  0x39   : > { %892 = vmatpush.bf16.msrb.mxu3 %v2079_v11  ;;  %v2460_v11 = vld [vmem:[%s3648_s2 + $0xb4] sm:$0xf]  ;;  %v1991_v17 = vor.u32 %v2443_v16, %v1990_v15  ;;  %v2054_v18 = vld [vmem:[%s3648_s2 + $0xa0] sm:$0xf]  ;;  %v2459_v19 = vld [vmem:[%s3648_s2 + $0xa4] sm:$0xf0] }
  0x3a   : > { %658 = vmatpush.bf16.msrb.mxu0 %v1895_v9  ;;  %v2444_v9 = vld [vmem:[%s3648_s2 + $0x34] sm:$0xf]  ;;  %v1992_v22 = vld [vmem:[%s3648_s2 + $0x28] sm:$0xf0]  ;;  %v1982_v27 = vld [vmem:[%s3648_s2 + $0x10] sm:$0xf] }
  0x3b   : > { %671 = vmatpush.bf16.msrb.mxu1 %v1899_v14  ;;  %v2003_v13 = vor.u32 %v2444_v9, %v2000_v10  ;;  %v2067_v14 = vor.u32 %v2460_v11, %v2064_v12  ;;  %v2056_v25 = vld [vmem:[%s3648_s2 + $0xa8] sm:$0xf0]  ;;  %v2441_v28 = vld [vmem:[%s3648_s2 + $0x14] sm:$0xf0]  ;;  %v2046_v29 = vld [vmem:[%s3648_s2 + $0x90] sm:$0xf] }
  0x3c   : > { %880 = vmatpush.bf16.msrb.mxu2 %v2007_v20  ;;  %v2055_v20 = vor.u32 %v2459_v19, %v2054_v18  ;;  %v1983_v30 = vor.u32 %v2441_v28, %v1982_v27  ;;  %v2457_v32 = vld [vmem:[%s3648_s2 + $0x94] sm:$0xf0]  ;;  %v2048_v39 = vld [vmem:[%s3648_s2 + $0x98] sm:$0xf0]  ;;  %v1974_v41 = vld [vmem:[%s3648_s2] sm:$0xf] }
  0x3d   : > { %893 = vmatpush.bf16.msrb.mxu3 %v2071_v23  ;;  %v2458_v23 = vld [vmem:[%s3648_s2 + $0xa4] sm:$0xf]  ;;  %v2455_v45 = vld [vmem:[%s3648_s2 + $0x84] sm:$0xf0]  ;;  %v1976_v47 = vld [vmem:[%s3648_s2 + $0x8] sm:$0xf0] }
  0x3e   : > { %659 = vmatpush.bf16.msrb.mxu0 %v1871_v21  ;;  %v2442_v21 = vld [vmem:[%s3648_s2 + $0x24] sm:$0xf]  ;;  %v2040_v51 = vld [vmem:[%s3648_s2 + $0x88] sm:$0xf0]  ;;  %v3138_v57 = vld [vmem:[%s3653_s7 + $0x10] sm:$0xff] }
  0x3f   : > { %672 = vmatpush.bf16.msrb.mxu1 %v1875_v26  ;;  %v1995_v24 = vor.u32 %v2442_v21, %v1992_v22  ;;  %v2059_v26 = vor.u32 %v2458_v23, %v2056_v25  ;;  %v2438_v46 = vld [vmem:[%s3648_s2 + $0x4] sm:$0xf]  ;;  %v3144_v59 = vld [vmem:[%s3653_s7 + $0x18] sm:$0xff]  ;;  %v2475_v18 = vld [vmem:[%s3649_s3 + $0x28] sm:$0xff] }
  0x40   : > { %881 = vmatpush.bf16.msrb.mxu2 %v1999_v33  ;;  %v2440_v33 = vld [vmem:[%s3648_s2 + $0x14] sm:$0xf]  ;;  %v1979_v49 = vor.u32 %v2438_v46, %v1976_v47  ;;  %v2454_v50 = vld [vmem:[%s3648_s2 + $0x84] sm:$0xf]  ;;  %v360_v62 = vperm.slane %v3144_v59, 0  ;;  %v2477_v16 = vld [vmem:[%s3649_s3 + $0x38] sm:$0xff] }
  0x41   : > { %894 = vmatpush.bf16.msrb.mxu3 %v2063_v35  ;;  %v1984_v35 = vld [vmem:[%s3648_s2 + $0x18] sm:$0xf0]  ;;  %v2474_v19 = vld [vmem:[%s3649_s3 + $0x20] sm:$0xff]  ;;  %v2472_v21 = vld [vmem:[%s3649_s3 + $0x10] sm:$0xff] }
  0x42   : > { %660 = vmatpush.bf16.msrb.mxu0 %v1847_v34  ;;  %v2047_v34 = vor.u32 %v2457_v32, %v2046_v29  ;;  %v1987_v37 = vor.u32 %v2440_v33, %v1984_v35  ;;  %v2471_v22 = vld [vmem:[%s3649_s3 + $0x8] sm:$0xff]  ;;  %v2470_v23 = vld [vmem:[%s3649_s3] sm:$0xff]  ;;  %v3185_v27 = vld [vmem:[%s3652_s6 + $0x70] sm:$0xff] }
  0x43   : > { %673 = vmatpush.bf16.msrb.mxu1 %v1851_v36  ;;  %v2456_v36 = vld [vmem:[%s3648_s2 + $0x94] sm:$0xf]  ;;  %v308_v47 = vld [vmem:[%s3653_s7 + $0x28] sm:$0xff] }
  0x44   : > { %882 = vmatpush.bf16.msrb.mxu2 %v1991_v17  ;;  %v2051_v40 = vor.u32 %v2456_v36, %v2048_v39  ;;  %v2476_v17 = vld [vmem:[%s3649_s3 + $0x30] sm:$0xff]  ;;  %v3199_v36 = vld [vmem:[%s3652_s6 + $0x60] sm:$0xff]  ;;  %v3206_v39 = vld [vmem:[%s3652_s6 + $0x58] sm:$0xff] }
  0x45   : > { %895 = vmatpush.bf16.msrb.mxu3 %v2055_v20  ;;  %v2473_v20 = vld [vmem:[%s3649_s3 + $0x18] sm:$0xff] }
  0x46   : > { %661 = vmatpush.bf16.msrb.mxu0 %v1823_v42  ;;  %v2439_v42 = vld [vmem:[%s3648_s2 + $0x4] sm:$0xf0] }
  0x47   : > { %674 = vmatpush.bf16.msrb.mxu1 %v1827_v43  ;;  %v2038_v43 = vld [vmem:[%s3648_s2 + $0x80] sm:$0xf]  ;;  %v1975_v44 = vor.u32 %v2439_v42, %v1974_v41  ;;  %v3213_v42 = vld [vmem:[%s3652_s6 + $0x50] sm:$0xff] }
  0x48   : > { %883 = vmatpush.bf16.msrb.mxu2 %v1983_v30  ;;  %v2039_v48 = vor.u32 %v2455_v45, %v2038_v43  ;;  %v3192_v30 = vld [vmem:[%s3652_s6 + $0x68] sm:$0xff]  ;;  %v307_v43 = vld [vmem:[%s3653_s7 + $0x20] sm:$0xff] }
  0x49   : > { %896 = vmatpush.bf16.msrb.mxu3 %v2047_v34 }
  0x4a   : > { %662 = vmatpush.bf16.msrb.mxu0 %v1799_v52  ;;  %v2043_v52 = vor.u32 %v2454_v50, %v2040_v51  ;;  %v361_v50 = vperm.slane %v307_v43, 0  ;;  %v3233_v51 = vld [vmem:[%s3652_s6 + $0x40] sm:$0xff]  ;;  %v2238_v43 = vld [vmem:[%s3650_s4 + $0xc8] sm:$0xf] }
  0x4b   : > { %675 = vmatpush.bf16.msrb.mxu1 %v1803_v53  ;;  %v3128_v53 = vld [vmem:[%s3653_s7] sm:$0xff] }
  0x4c   : > { %884 = vmatpush.bf16.msrb.mxu2 %v1975_v44  ;;  %v357_v58 = vperm.slane %v3128_v53, 0 }
  0x4d   : > { %663 = vmatmul.bf16.vlgmr.msrb.gmra.mxu0 %v2841_v38  ;;  %897 = vmatpush.bf16.msrb.mxu3 %v2039_v48 }
  0x4e   : > { %903 = vmatpush.bf16.msra.mxu0 %v2035_v54  ;;  %676 = vmatmul.bf16.vlgmr.msrb.gmra.mxu1 %v2841_v38  ;;  %v2072_v38 = vld [vmem:[%s3648_s2 + $0xc8] sm:$0xf0] }
  0x4f   : > { %916 = vmatpush.bf16.msra.mxu1 %v2099_v55  ;;  %v2075_v8 = vor.u32 %v2462_v6, %v2072_v38  ;;  %v3133_v55 = vld [vmem:[%s3653_s7 + $0x8] sm:$0xff] }
  0x50   : > { %1008 = vmatpush.bf16.msra.mxu2 %v2477_v16  ;;  %v2246_v16 = vld [vmem:[%s3650_s4 + $0xe0] sm:$0xf] }
  0x52   : > { %904 = vmatpush.bf16.msra.mxu0 %v2027_v60  ;;  %v358_v60 = vperm.slane %v3133_v55, 0 }
  0x53   : > { %917 = vmatpush.bf16.msra.mxu1 %v2091_v61  ;;  %v359_v61 = vperm.slane %v3138_v57, 0 }
  0x54   : > { %1009 = vmatpush.bf16.msra.mxu2 %v2476_v17  ;;  %v2508_v17 = vld [vmem:[%s3650_s4 + $0xec] sm:$0xf0] }
  0x56   : > { %905 = vmatpush.bf16.msra.mxu0 %v2019_v2 }
  0x57   : > { %918 = vmatpush.bf16.msra.mxu1 %v2083_v3 }
  0x58   : > { %1010 = vmatpush.bf16.msra.mxu2 %v2475_v18  ;;  %v2506_v18 = vld [vmem:[%s3650_s4 + $0xe4] sm:$0xf] }
  0x5a   : > { %906 = vmatpush.bf16.msra.mxu0 %v2011_v7 }
  0x5b   : > { %919 = vmatpush.bf16.msra.mxu1 %v2075_v8 }
  0x5c   : > { %1011 = vmatpush.bf16.msra.mxu2 %v2474_v19  ;;  %v2247_v19 = vor.u32 %v2508_v17, %v2246_v16  ;;  %v2206_v16 = vld [vmem:[%s3650_s4 + $0x88] sm:$0xf]  ;;  %v2497_v17 = vld [vmem:[%s3650_s4 + $0x94] sm:$0xf0] }
  0x5e   : > { %907 = vmatpush.bf16.msra.mxu0 %v2003_v13 }
  0x5f   : > { %920 = vmatpush.bf16.msra.mxu1 %v2067_v14 }
  0x60   : > { %1012 = vmatpush.bf16.msra.mxu2 %v2473_v20  ;;  %v2248_v20 = vld [vmem:[%s3650_s4 + $0xf0] sm:$0xf0] }
  0x62   : > { %908 = vmatpush.bf16.msra.mxu0 %v1995_v24 }
  0x63   : > { %921 = vmatpush.bf16.msra.mxu1 %v2059_v26  ;;  %v3180_v26 = vld [vmem:[%s3652_s6 + $0x78] sm:$0xff] }
  0x64   : > { %1013 = vmatpush.bf16.msra.mxu2 %v2472_v21  ;;  %1038 = vmatpush.msra.mxu3 %v3180_v26  ;;  %v2509_v21 = vld [vmem:[%s3650_s4 + $0xf4] sm:$0xf0] }
  0x66   : > { %909 = vmatpush.bf16.msra.mxu0 %v1987_v37  ;;  %1039 = vmatpush.msra.mxu3 %v3185_v27 }
  0x67   : > { %922 = vmatpush.bf16.msra.mxu1 %v2051_v40 }
  0x68   : > { %1014 = vmatpush.bf16.msra.mxu2 %v2471_v22  ;;  %1040 = vmatpush.msra.mxu3 %v3192_v30  ;;  %v2251_v22 = vor.u32 %v2506_v18, %v2248_v20  ;;  %v2495_v20 = vld [vmem:[%s3650_s4 + $0x8c] sm:$0xf] }
  0x6a   : > { %910 = vmatpush.bf16.msra.mxu0 %v1979_v49  ;;  %1041 = vmatpush.msra.mxu3 %v3199_v36  ;;  %v3226_v49 = vld [vmem:[%s3652_s6 + $0x48] sm:$0xff] }
  0x6b   : > { %923 = vmatpush.bf16.msra.mxu1 %v2043_v52  ;;  %v362_v52 = vperm.slane %v308_v47, 0  ;;  %v2503_v47 = vld [vmem:[%s3650_s4 + $0xcc] sm:$0xf] }
  0x6c   : > { %1015 = vmatpush.bf16.msra.mxu2 %v2470_v23  ;;  %1042 = vmatpush.msra.mxu3 %v3206_v39 }
  0x6e   : > { %1060 = vmatpush.msrb.mxu0 %v3180_v26  ;;  %1043 = vmatpush.msra.mxu3 %v3213_v42 }
  0x6f   : > { %1292 = vmatpush.bf16.msrb.mxu1 %v2247_v19  ;;  %v2207_v19 = vor.u32 %v2497_v17, %v2206_v16  ;;  %v2134_v16 = vld [vmem:[%s3650_s4] sm:$0xf]  ;;  %v2480_v17 = vld [vmem:[%s3650_s4 + $0xc] sm:$0xf0] }
  0x70   : > { %1061 = vmatpush.msrb.mxu0 %v3185_v27  ;;  %1044 = vmatpush.msra.mxu3 %v3226_v49 }
  0x72   : > { %1062 = vmatpush.msrb.mxu0 %v3192_v30  ;;  %1045 = vmatpush.msra.mxu3 %v3233_v51 }
  0x74   : > { %1063 = vmatpush.msrb.mxu0 %v3199_v36 }
  0x76   : > { %1064 = vmatpush.msrb.mxu0 %v3206_v39 }
  0x78   : > { %1065 = vmatpush.msrb.mxu0 %v3213_v42 }
  0x7a   : > { %1066 = vmatpush.msrb.mxu0 %v3226_v49 }
  0x7c   : > { %1067 = vmatpush.msrb.mxu0 %v3233_v51 }
  0xaa   : > { %v612_v54 = vpop.f32.mrf.mxu0 }
  0xab   : > { %v625_v56 = vpop.f32.mrf.mxu1  ;;  %v613_v63 = vadd.f32 %v612_v54, %v357_v58  ;;  %v3240_v54 = vld [vmem:[%s3652_s6 + $0x38] sm:$0xff]  ;;  %v3248_v58 = vld [vmem:[%s3652_s6 + $0x30] sm:$0xff] }
  0xac   : > { %v626_v0 = vadd.f32 %v625_v56, %v358_v60  ;;  %1046 = vmatpush.msra.mxu3 %v3240_v54  ;;  %1068 = vmatpush.msrb.mxu0 %v3240_v54 }
  0xae   : > { %1047 = vmatpush.msra.mxu3 %v3248_v58  ;;  %1069 = vmatpush.msrb.mxu0 %v3248_v58 }
  0xb2   : > { %v638_v1 = vpop.f32.mrf.mxu2  ;;  %v614_v4 = vpop.f32.mrf.mxu0 }
  0xb3   : > { %v639_v2 = vadd.f32 %v638_v1, %v359_v61  ;;  %v651_v3 = vpop.f32.mrf.mxu3  ;;  %v627_v6 = vpop.f32.mrf.mxu1 }
  0xb4   : > { %v652_v5 = vadd.f32 %v651_v3, %v360_v62  ;;  %v3263_v3 = vld [vmem:[%s3652_s6 + $0x20] sm:$0xff] }
  0xb5   : > { %v681_v38 = vmul.f32 %v639_v2, %v613_v63 }
  0xb6   : > { %v682_v7 = vmul.f32 %v652_v5, %v626_v0  ;;  %v3256_v0 = vld [vmem:[%s3652_s6 + $0x28] sm:$0xff]  ;;  %v3270_v5 = vld [vmem:[%s3652_s6 + $0x18] sm:$0xff] }
  0xb7   : > { %v683_v8 = vpack.c.bf16 %v681_v38, %v681_v38  ;;  %1048 = vmatpush.msra.mxu3 %v3256_v0  ;;  %1070 = vmatpush.msrb.mxu0 %v3256_v0 }
  0xb8   : > { %v684_v9 = vpack.c.bf16 %v682_v7, %v682_v7 }
  0xb9   : > { %885 = vmatmul.bf16.vlgmr.msrb.gmra.mxu2 %v683_v8  ;;  %911 = vmatmul.bf16.vlgmr.msra.gmra.mxu0 %v683_v8  ;;  %v3279_v8 = vld [vmem:[%s3652_s6 + $0x10] sm:$0xff] }
  0xba   : > { %898 = vmatmul.bf16.vlgmr.msrb.gmra.mxu3 %v684_v9  ;;  %924 = vmatmul.bf16.vlgmr.msra.gmra.mxu1 %v684_v9  ;;  %v640_v10 = vpop.f32.mrf.mxu2  ;;  %v3286_v9 = vld [vmem:[%s3652_s6 + $0x8] sm:$0xff] }
  0xbb   : > { %v653_v11 = vpop.f32.mrf.mxu3  ;;  %1049 = vmatpush.msra.mxu3 %v3263_v3  ;;  %1071 = vmatpush.msrb.mxu0 %v3263_v3  ;;  %v3293_v10 = vld [vmem:[%s3652_s6] sm:$0xff] }
  0xbc   : > { %v959_v11 = vperm.slane %v3128_v53, 1  ;;  %1305 = vmatpush.bf16.msrb.mxu2 %v2251_v22  ;;  %v2182_v22 = vld [vmem:[%s3650_s4 + $0x60] sm:$0xf] }
  0xbd   : > { %1050 = vmatpush.msra.mxu3 %v3270_v5  ;;  %1072 = vmatpush.msrb.mxu0 %v3270_v5 }
  0xbf   : > { %1051 = vmatpush.msra.mxu3 %v3279_v8  ;;  %1073 = vmatpush.msrb.mxu0 %v3279_v8 }
  0xc1   : > { %1052 = vmatpush.msra.mxu3 %v3286_v9  ;;  %1074 = vmatpush.msrb.mxu0 %v3286_v9 }
  0xc3   : > { %1053 = vmatpush.msra.mxu3 %v3293_v10  ;;  %1075 = vmatpush.msrb.mxu0 %v3293_v10 }
  0xca   : > { %v3149_v12 = vpop.f32.mrf.mxu0 }
  0xcb   : > { %v3151_v13 = vpop.f32.mrf.mxu1  ;;  %v665_v56 = vadd.f32 %v3149_v12, %v361_v50 }
  0xcc   : > { %v678_v61 = vadd.f32 %v3151_v13, %v362_v52  ;;  %v2214_v52 = vld [vmem:[%s3650_s4 + $0xa0] sm:$0xf] }
  0xd2   : > { %v666_v14 = vpop.f32.mrf.mxu0 }
  0xd3   : > { %v679_v15 = vpop.f32.mrf.mxu1 }
 0x136   : > { %v912_v24 = vpop.f32.mrf.mxu0 }
 0x137   : > { %v925_v25 = vpop.f32.mrf.mxu1 }
 0x138   : > { %v926_v32 = vadd.f32 %v925_v25, %v912_v24  ;;  %v2507_v24 = vld [vmem:[%s3650_s4 + $0xec] sm:$0xf]  ;;  %v2256_v25 = vld [vmem:[%s3650_s4 + $0xf8] sm:$0xf0] }
 0x13c   : > { %v886_v28 = vpop.f32.mrf.mxu2 }
 0x13d   : > { %v899_v29 = vpop.f32.mrf.mxu3 }
 0x13e   : > { %v900_v33 = vadd.f32 %v899_v29, %v886_v28  ;;  %v914_v34 = vpop.f32.mrf.mxu0  ;;  %v2259_v28 = vor.u32 %v2507_v24, %v2256_v25  ;;  %v2490_v24 = vld [vmem:[%s3650_s4 + $0x64] sm:$0xf] }
 0x13f   : > { %v927_v35 = vpop.f32.mrf.mxu1  ;;  %v2230_v34 = vld [vmem:[%s3650_s4 + $0xc0] sm:$0xf] }
 0x140   : > { %v929_v37 = vmax.f32 %v900_v33, %v926_v32  ;;  %1331 = vmatpush.bf16.msra.mxu0 %v2259_v28  ;;  %v2504_v35 = vld [vmem:[%s3650_s4 + $0xcc] sm:$0xf0]  ;;  %v2184_v28 = vld [vmem:[%s3650_s4 + $0x70] sm:$0xf0] }
 0x142   : > { %v930_v40 = vsub.f32 %v900_v33, %v929_v37  ;;  %v933_v41 = vsub.f32 %v926_v32, %v929_v37  ;;  %v2502_v37 = vld [vmem:[%s3650_s4 + $0xc4] sm:$0xf] }
 0x144   : > { %v931_v44 = vmul.f32 1.442695, %v930_v40  ;;  %v934_v45 = vmul.f32 1.442695, %v933_v41  ;;  %v888_v46 = vpop.f32.mrf.mxu2  ;;  %v2231_v40 = vor.u32 %v2504_v35, %v2230_v34  ;;  %v2232_v41 = vld [vmem:[%s3650_s4 + $0xd0] sm:$0xf0]  ;;  %v2187_v34 = vor.u32 %v2490_v24, %v2184_v28 }
 0x145   : > { %v901_v48 = vpop.f32.mrf.mxu3  ;;  %v2479_v24 = vld [vmem:[%s3650_s4 + $0xc] sm:$0xf] }
 0x146   : > { %2550 = vpow2.f32 %v931_v44  ;;  %v2505_v44 = vld [vmem:[%s3650_s4 + $0xd4] sm:$0xf0]  ;;  %v2240_v48 = vld [vmem:[%s3650_s4 + $0xd8] sm:$0xf0]  ;;  %1293 = vmatpush.bf16.msrb.mxu1 %v2231_v40 }
 0x147   : > { %2552 = vpow2.f32 %v934_v45  ;;  %v2235_v45 = vor.u32 %v2502_v37, %v2232_v41  ;;  %v2239_v46 = vor.u32 %v2505_v44, %v2238_v43  ;;  %v2243_v50 = vor.u32 %v2503_v47, %v2240_v48  ;;  %v2491_v37 = vld [vmem:[%s3650_s4 + $0x6c] sm:$0xf]  ;;  %v2192_v40 = vld [vmem:[%s3650_s4 + $0x78] sm:$0xf0]  ;;  %v2166_v43 = vld [vmem:[%s3650_s4 + $0x40] sm:$0xf] }
 0x148   : > { %v2195_v41 = vor.u32 %v2491_v37, %v2192_v40  ;;  %v2488_v44 = vld [vmem:[%s3650_s4 + $0x4c] sm:$0xf0]  ;;  %v2168_v47 = vld [vmem:[%s3650_s4 + $0x50] sm:$0xf0]  ;;  %v2174_v48 = vld [vmem:[%s3650_s4 + $0x48] sm:$0xf] }
 0x149   : > { %1306 = vmatpush.bf16.msrb.mxu2 %v2235_v45  ;;  %1332 = vmatpush.bf16.msra.mxu0 %v2243_v50  ;;  %v2486_v45 = vld [vmem:[%s3650_s4 + $0x44] sm:$0xf]  ;;  %v2489_v50 = vld [vmem:[%s3650_s4 + $0x54] sm:$0xf0]  ;;  %v2516_v40 = vld [vmem:[%s3651_s5 + $0x30] sm:$0xff] }
 0x14c   : > { %v2551_v60 = vpop.eup %2550 }
 0x14d   : > { %v2553_v62 = vpop.eup %2552  ;;  %v938_v63 = vmul.f32 %v2551_v60, %v665_v56  ;;  %v2500_v56 = vld [vmem:[%s3650_s4 + $0xac] sm:$0xf0] }
 0x14e   : > { %v936_v1 = vadd.f32 %v2553_v62, %v2551_v60  ;;  %v939_v2 = vmul.f32 %v2553_v62, %v678_v61  ;;  %v2498_v60 = vld [vmem:[%s3650_s4 + $0xa4] sm:$0xf]  ;;  %v2215_v61 = vor.u32 %v2500_v56, %v2214_v52  ;;  %v2216_v62 = vld [vmem:[%s3650_s4 + $0xb0] sm:$0xf0]  ;;  %v2171_v52 = vor.u32 %v2486_v45, %v2168_v47  ;;  %v2539_v47 = vld [vmem:[%s3651_s5 + $0xe8] sm:$0xff] }
 0x14f   : > { %v2175_v56 = vor.u32 %v2489_v50, %v2174_v48  ;;  %v2532_v45 = vld [vmem:[%s3651_s5 + $0xb0] sm:$0xff]  ;;  %v2523_v48 = vld [vmem:[%s3651_s5 + $0x68] sm:$0xff] }
 0x150   : > { %2554 = vrcp.f32 %v936_v1  ;;  %v940_v4 = vadd.f32 %v939_v2, %v938_v63  ;;  %v2222_v63 = vld [vmem:[%s3650_s4 + $0xa8] sm:$0xf]  ;;  %v2501_v1 = vld [vmem:[%s3650_s4 + $0xb4] sm:$0xf0]  ;;  %v2219_v2 = vor.u32 %v2498_v60, %v2216_v62  ;;  %1294 = vmatpush.bf16.msrb.mxu1 %v2215_v61  ;;  %v2487_v60 = vld [vmem:[%s3650_s4 + $0x4c] sm:$0xf] }
 0x151   : > { %v2176_v61 = vld [vmem:[%s3650_s4 + $0x58] sm:$0xf0]  ;;  %v2531_v50 = vld [vmem:[%s3651_s5 + $0xa8] sm:$0xff] }
 0x152   : > { %1307 = vmatpush.bf16.msrb.mxu2 %v2219_v2  ;;  %v2179_v62 = vor.u32 %v2487_v60, %v2176_v61  ;;  %v2482_v2 = vld [vmem:[%s3650_s4 + $0x24] sm:$0xf] }
 0x153   : > { %v2522_v61 = vld [vmem:[%s3651_s5 + $0x60] sm:$0xff] }
 0x156   : > { %v2555_v6 = vpop.eup %2554 }
 0x157   : > { %v941_v38 = vmul.f32 %v2555_v6, %v940_v4  ;;  %v2223_v4 = vor.u32 %v2501_v1, %v2222_v63  ;;  %v2499_v6 = vld [vmem:[%s3650_s4 + $0xac] sm:$0xf]  ;;  %v2150_v63 = vld [vmem:[%s3650_s4 + $0x20] sm:$0xf]  ;;  %v2484_v1 = vld [vmem:[%s3650_s4 + $0x2c] sm:$0xf0] }
 0x159   : > { %v942_v7 = vpack.c.bf16 %v941_v38, %v941_v38  ;;  %v2224_v38 = vld [vmem:[%s3650_s4 + $0xb8] sm:$0xf0] }
 0x15b   : > { %1016 = vmatmul.bf16.vlgmr.msra.gmra.mxu2 %v942_v7  ;;  %v2227_v7 = vor.u32 %v2499_v6, %v2224_v38  ;;  %v2152_v6 = vld [vmem:[%s3650_s4 + $0x30] sm:$0xf0]  ;;  %v2158_v38 = vld [vmem:[%s3650_s4 + $0x28] sm:$0xf] }
 0x15d   : > { %1333 = vmatpush.bf16.msra.mxu0 %v2227_v7  ;;  %v2485_v7 = vld [vmem:[%s3650_s4 + $0x34] sm:$0xf0] }
 0x1de   : > { %v1017_v12 = vpop.f32.mrf.mxu2 }
 0x1df   : > { %v1018_v13 = vadd.f32 %v1017_v12, %v959_v11  ;;  %v2198_v11 = vld [vmem:[%s3650_s4 + $0x80] sm:$0xf]  ;;  %v2496_v12 = vld [vmem:[%s3650_s4 + $0x8c] sm:$0xf0] }
 0x1e1   : > { %v1037_v14 = vadd.f32 %v1018_v13, %v2831_v31  ;;  %v2254_v31 = vld [vmem:[%s3650_s4 + $0xe8] sm:$0xf]  ;;  %v2494_v13 = vld [vmem:[%s3650_s4 + $0x84] sm:$0xf] }
 0x1e2   : > { %v2255_v23 = vor.u32 %v2509_v21, %v2254_v31  ;;  %v2208_v31 = vld [vmem:[%s3650_s4 + $0x98] sm:$0xf0] }
 0x1e3   : > { %1054 = vmatmul.f32.vlgmr.msra.gmra.mxu3 %v1037_v14  ;;  %v2211_v21 = vor.u32 %v2495_v20, %v2208_v31  ;;  %v2136_v20 = vld [vmem:[%s3650_s4 + $0x10] sm:$0xf0]  ;;  %v2142_v31 = vld [vmem:[%s3650_s4 + $0x8] sm:$0xf] }
 0x1e4   : > { %1318 = vmatpush.bf16.msrb.mxu3 %v2255_v23  ;;  %v2492_v23 = vld [vmem:[%s3650_s4 + $0x6c] sm:$0xf0] }
 0x1e5   : > { %1334 = vmatpush.bf16.msra.mxu0 %v2211_v21  ;;  %v2183_v25 = vor.u32 %v2492_v23, %v2182_v22  ;;  %v2481_v21 = vld [vmem:[%s3650_s4 + $0x14] sm:$0xf0] }
 0x1e6   : > { %v1019_v15 = vpop.f32.mrf.mxu2  ;;  %v2143_v23 = vor.u32 %v2481_v21, %v2142_v31  ;;  %v2511_v21 = vld [vmem:[%s3651_s5 + $0x8] sm:$0xff] }
 0x1e7   : > { %v2200_v15 = vld [vmem:[%s3650_s4 + $0x90] sm:$0xf0] }
 0x1e8   : > { %1319 = vmatpush.bf16.msrb.mxu3 %v2239_v46  ;;  %v2203_v18 = vor.u32 %v2494_v13, %v2200_v15  ;;  %v2167_v46 = vor.u32 %v2488_v44, %v2166_v43  ;;  %v2483_v13 = vld [vmem:[%s3650_s4 + $0x2c] sm:$0xf]  ;;  %v2524_v44 = vld [vmem:[%s3651_s5 + $0x70] sm:$0xff] }
 0x1e9   : > { %1335 = vmatpush.bf16.msra.mxu0 %v2195_v41  ;;  %v2540_v41 = vld [vmem:[%s3651_s5 + $0xf0] sm:$0xff] }
 0x1ea   : > { %1308 = vmatpush.bf16.msrb.mxu2 %v2203_v18  ;;  %v2478_v18 = vld [vmem:[%s3650_s4 + $0x4] sm:$0xf] }
 0x1eb   : > { %v2139_v22 = vor.u32 %v2478_v18, %v2136_v20  ;;  %v1093_v18 = vperm.slane %v3128_v53, 5 }
 0x1ec   : > { %1320 = vmatpush.bf16.msrb.mxu3 %v2223_v4  ;;  %v2151_v4 = vor.u32 %v2484_v1, %v2150_v63 }
 0x1ed   : > { %1336 = vmatpush.bf16.msra.mxu0 %v2179_v62  ;;  %v2530_v62 = vld [vmem:[%s3651_s5 + $0xa0] sm:$0xff] }
 0x1ee   : > { %1309 = vmatpush.bf16.msrb.mxu2 %v2187_v34  ;;  %v2525_v34 = vld [vmem:[%s3651_s5 + $0x78] sm:$0xff] }
 0x1f0   : > { %1321 = vmatpush.bf16.msrb.mxu3 %v2207_v19  ;;  %v2135_v19 = vor.u32 %v2480_v17, %v2134_v16 }
 0x1f2   : > { %1310 = vmatpush.bf16.msrb.mxu2 %v2171_v52  ;;  %v2514_v52 = vld [vmem:[%s3651_s5 + $0x20] sm:$0xff] }
 0x266   : > { %v1055_v29 = vpop.f32.mrf.mxu3 }
 0x267   : > { %v3323_v32 = vsub.f32 %v1037_v14, %v1055_v29  ;;  %v2199_v14 = vor.u32 %v2496_v12, %v2198_v11  ;;  %v2190_v29 = vld [vmem:[%s3650_s4 + $0x68] sm:$0xf]  ;;  %v2155_v11 = vor.u32 %v2482_v2, %v2152_v6  ;;  %v2159_v12 = vor.u32 %v2485_v7, %v2158_v38  ;;  %v2513_v2 = vld [vmem:[%s3651_s5 + $0x18] sm:$0xff] }
 0x268   : > { %v2521_v6 = vld [vmem:[%s3651_s5 + $0x58] sm:$0xff] }
 0x269   : > { %v1059_v33 = vmul.f32 %v3323_v32, %v3323_v32  ;;  %1295 = vmatpush.bf16.msrb.mxu1 %v2199_v14  ;;  %v2160_v14 = vld [vmem:[%s3650_s4 + $0x38] sm:$0xf0]  ;;  %1311 = vmatpush.bf16.msrb.mxu2 %v2155_v11 }
 0x26a   : > { %v2163_v15 = vor.u32 %v2483_v13, %v2160_v14  ;;  %v2529_v38 = vld [vmem:[%s3651_s5 + $0x98] sm:$0xff]  ;;  %v2536_v13 = vld [vmem:[%s3651_s5 + $0xd0] sm:$0xff] }
 0x26b   : > { %1076 = vmatmul.f32.vlgmr.msrb.gmra.mxu0 %v1059_v33  ;;  %v2493_v33 = vld [vmem:[%s3650_s4 + $0x74] sm:$0xf0] }
 0x26c   : > { %v2191_v35 = vor.u32 %v2493_v33, %v2190_v29  ;;  %1337 = vmatpush.bf16.msra.mxu0 %v2163_v15  ;;  %v2517_v29 = vld [vmem:[%s3651_s5 + $0x38] sm:$0xff]  ;;  %v1091_v15 = vperm.slane %v3128_v53, 4 }
 0x26d   : > { %1296 = vmatpush.bf16.msrb.mxu1 %v2183_v25  ;;  %v2144_v25 = vld [vmem:[%s3650_s4 + $0x18] sm:$0xf0]  ;;  %1312 = vmatpush.bf16.msrb.mxu2 %v2139_v22  ;;  %v2520_v22 = vld [vmem:[%s3651_s5 + $0x50] sm:$0xff] }
 0x26e   : > { %1322 = vmatpush.bf16.msrb.mxu3 %v2191_v35  ;;  %v2147_v28 = vor.u32 %v2479_v24, %v2144_v25  ;;  %v2541_v33 = vld [vmem:[%s3651_s5 + $0xf8] sm:$0xff]  ;;  %v2510_v24 = vld [vmem:[%s3651_s5] sm:$0xff] }
 0x26f   : > { %v2533_v35 = vld [vmem:[%s3651_s5 + $0xb8] sm:$0xff]  ;;  %v2534_v25 = vld [vmem:[%s3651_s5 + $0xc0] sm:$0xff] }
 0x270   : > { %1338 = vmatpush.bf16.msra.mxu0 %v2147_v28  ;;  %v2519_v28 = vld [vmem:[%s3651_s5 + $0x48] sm:$0xff] }
 0x271   : > { %1297 = vmatpush.bf16.msrb.mxu1 %v2167_v46  ;;  %1622 = vmatpush.bf16.msra.mxu2 %v2525_v34  ;;  %v2515_v46 = vld [vmem:[%s3651_s5 + $0x28] sm:$0xff]  ;;  %v2526_v34 = vld [vmem:[%s3651_s5 + $0x80] sm:$0xff] }
 0x272   : > { %1323 = vmatpush.bf16.msrb.mxu3 %v2175_v56  ;;  %v2538_v56 = vld [vmem:[%s3651_s5 + $0xe0] sm:$0xff] }
 0x274   : > { %1648 = vmatpush.bf16.msrb.mxu0 %v2541_v33  ;;  %v2518_v33 = vld [vmem:[%s3651_s5 + $0x40] sm:$0xff] }
 0x275   : > { %1298 = vmatpush.bf16.msrb.mxu1 %v2151_v4  ;;  %1623 = vmatpush.bf16.msra.mxu2 %v2524_v44  ;;  %v2537_v4 = vld [vmem:[%s3651_s5 + $0xd8] sm:$0xff] }
 0x276   : > { %1324 = vmatpush.bf16.msrb.mxu3 %v2159_v12  ;;  %v2512_v12 = vld [vmem:[%s3651_s5 + $0x10] sm:$0xff] }
 0x278   : > { %1649 = vmatpush.bf16.msrb.mxu0 %v2540_v41 }
 0x279   : > { %1299 = vmatpush.bf16.msrb.mxu1 %v2135_v19  ;;  %1624 = vmatpush.bf16.msra.mxu2 %v2523_v48  ;;  %v1416_v48 = vperm.slane %v3128_v53, 3 }
 0x27a   : > { %1325 = vmatpush.bf16.msrb.mxu3 %v2143_v23  ;;  %v2528_v23 = vld [vmem:[%s3651_s5 + $0x90] sm:$0xff] }
 0x27c   : > { %1650 = vmatpush.bf16.msrb.mxu0 %v2539_v47 }
 0x27d   : > { %1609 = vmatpush.bf16.msra.mxu1 %v2517_v29  ;;  %1625 = vmatpush.bf16.msra.mxu2 %v2522_v61  ;;  %v2527_v29 = vld [vmem:[%s3651_s5 + $0x88] sm:$0xff] }
 0x27e   : > { %1635 = vmatpush.bf16.msra.mxu3 %v2533_v35 }
 0x280   : > { %1651 = vmatpush.bf16.msrb.mxu0 %v2538_v56 }
 0x281   : > { %1610 = vmatpush.bf16.msra.mxu1 %v2516_v40  ;;  %1626 = vmatpush.bf16.msra.mxu2 %v2521_v6 }
 0x282   : > { %1636 = vmatpush.bf16.msra.mxu3 %v2532_v45 }
 0x284   : > { %1652 = vmatpush.bf16.msrb.mxu0 %v2537_v4 }
 0x285   : > { %1611 = vmatpush.bf16.msra.mxu1 %v2515_v46  ;;  %1627 = vmatpush.bf16.msra.mxu2 %v2520_v22 }
 0x286   : > { %1637 = vmatpush.bf16.msra.mxu3 %v2531_v50 }
 0x288   : > { %1653 = vmatpush.bf16.msrb.mxu0 %v2536_v13 }
 0x289   : > { %1612 = vmatpush.bf16.msra.mxu1 %v2514_v52  ;;  %1628 = vmatpush.bf16.msra.mxu2 %v2519_v28 }
 0x28a   : > { %1638 = vmatpush.bf16.msra.mxu3 %v2530_v62 }
 0x28d   : > { %1613 = vmatpush.bf16.msra.mxu1 %v2513_v2  ;;  %1629 = vmatpush.bf16.msra.mxu2 %v2518_v33 }
 0x28e   : > { %1639 = vmatpush.bf16.msra.mxu3 %v2529_v38 }
 0x291   : > { %1614 = vmatpush.bf16.msra.mxu1 %v2512_v12 }
 0x292   : > { %1640 = vmatpush.bf16.msra.mxu3 %v2528_v23 }
 0x295   : > { %1615 = vmatpush.bf16.msra.mxu1 %v2511_v21 }
 0x296   : > { %1641 = vmatpush.bf16.msra.mxu3 %v2527_v29 }
 0x299   : > { %1616 = vmatpush.bf16.msra.mxu1 %v2510_v24 }
 0x29a   : > { %1642 = vmatpush.bf16.msra.mxu3 %v2526_v34 }
 0x2e8   : > { %v1077_v37 = vpop.f32.mrf.mxu0 }
 0x2e9   : > { %v1078_v43 = vadd.f32 1e-05, %v1077_v37 }
 0x2eb   : > { %2556 = vrsqrt.f32 %v1078_v43  ;;  %vm1086_vm1 = vweird.f32 %v1078_v43 }
 0x2f1   : > { %v2557_v60 = vpop.eup %2556 }
 0x2f2   : > { %v1081_v63 = vmul.f32 %v2557_v60, %v1078_v43  ;;  %vm1087_vm0 = vweird.f32 %v2557_v60 }
 0x2f3   : > { %vm1088_vm2 = vmor %vm1086_vm1, %vm1087_vm0 }
 0x2f4   : > { %v1082_v1 = vmul.f32 %v2557_v60, %v1081_v63 }
 0x2f6   : > { %v1083_v7 = vmul.f32 0.5, %v1082_v1 }
 0x2f8   : > { %v1084_v11 = vsub.f32 1.5, %v1083_v7 }
 0x2fa   : > { %v1085_v14 = vmul.f32 %v2557_v60, %v1084_v11 }
 0x2fc   : > { %v1089_v16 = vsel %vm1088_vm2, %v2557_v60, %v1085_v14 }
 0x2fd   : > { %v1090_v17 = vmul.f32 %v1089_v16, %v3323_v32  ;;  %v2535_v32 = vld [vmem:[%s3651_s5 + $0xc8] sm:$0xff] }
 0x2fe   : > { %1654 = vmatpush.bf16.msrb.mxu0 %v2535_v32 }
 0x2ff   : > { %v1092_v19 = vmul.f32 %v1091_v15, %v1090_v17 }
 0x301   : > { %v3564_v20 = vadd.f32 %v1093_v18, %v1092_v19  ;;  %v1715_v18 = vperm.slane %v3128_v53, 6 }
 0x302   : > { %1655 = vmatpush.bf16.msrb.mxu0 %v2534_v25 }
 0x303   : > { %v1095_v31 = vpack.c.bf16 %v3564_v20, %v3564_v20 }
 0x305   : > { %1300 = vmatmul.bf16.vlgmr.msrb.gmra.mxu1 %v1095_v31  ;;  %1313 = vmatmul.bf16.vlgmr.msrb.gmra.mxu2 %v1095_v31 }
 0x306   : > { %1326 = vmatmul.bf16.vlgmr.msrb.gmra.mxu3 %v1095_v31  ;;  %1339 = vmatmul.bf16.vlgmr.msra.gmra.mxu0 %v1095_v31  ;;  %v1717_v31 = vperm.slane %v3128_v53, 7 }
 0x307   : > { %1662 = vmatpush.msrb.mxu1 %v3180_v26  ;;  %1684 = vmatpush.msrb.mxu2 %v3180_v26  ;;  %v1128_v26 = vperm.slane %v3128_v53, 2 }
 0x309   : > { %1663 = vmatpush.msrb.mxu1 %v3185_v27  ;;  %1685 = vmatpush.msrb.mxu2 %v3185_v27  ;;  %v1131_v27 = vperm.slane %v3144_v59, 2 }
 0x30b   : > { %1664 = vmatpush.msrb.mxu1 %v3192_v30  ;;  %1686 = vmatpush.msrb.mxu2 %v3192_v30 }
 0x30d   : > { %1665 = vmatpush.msrb.mxu1 %v3199_v36  ;;  %1687 = vmatpush.msrb.mxu2 %v3199_v36 }
 0x30f   : > { %1666 = vmatpush.msrb.mxu1 %v3206_v39  ;;  %1688 = vmatpush.msrb.mxu2 %v3206_v39 }
 0x311   : > { %1667 = vmatpush.msrb.mxu1 %v3213_v42  ;;  %1689 = vmatpush.msrb.mxu2 %v3213_v42 }
 0x313   : > { %1668 = vmatpush.msrb.mxu1 %v3226_v49  ;;  %1690 = vmatpush.msrb.mxu2 %v3226_v49 }
 0x315   : > { %1669 = vmatpush.msrb.mxu1 %v3233_v51  ;;  %1691 = vmatpush.msrb.mxu2 %v3233_v51  ;;  %v1129_v51 = vperm.slane %v3133_v55, 2 }
 0x317   : > { %1670 = vmatpush.msrb.mxu1 %v3240_v54  ;;  %1692 = vmatpush.msrb.mxu2 %v3240_v54  ;;  %v1130_v54 = vperm.slane %v3138_v57, 2 }
 0x319   : > { %1671 = vmatpush.msrb.mxu1 %v3248_v58  ;;  %1693 = vmatpush.msrb.mxu2 %v3248_v58 }
 0x31b   : > { %1672 = vmatpush.msrb.mxu1 %v3256_v0  ;;  %1694 = vmatpush.msrb.mxu2 %v3256_v0 }
 0x31d   : > { %1673 = vmatpush.msrb.mxu1 %v3263_v3  ;;  %1695 = vmatpush.msrb.mxu2 %v3263_v3 }
 0x31f   : > { %1674 = vmatpush.msrb.mxu1 %v3270_v5  ;;  %1696 = vmatpush.msrb.mxu2 %v3270_v5 }
 0x321   : > { %1675 = vmatpush.msrb.mxu1 %v3279_v8  ;;  %1697 = vmatpush.msrb.mxu2 %v3279_v8 }
 0x323   : > { %1676 = vmatpush.msrb.mxu1 %v3286_v9  ;;  %1698 = vmatpush.msrb.mxu2 %v3286_v9 }
 0x325   : > { %1677 = vmatpush.msrb.mxu1 %v3293_v10  ;;  %1699 = vmatpush.msrb.mxu2 %v3293_v10 }
 0x382   : > { %v1301_v30 = vpop.f32.mrf.mxu1 }
 0x383   : > { %v1302_v36 = vadd.f32 %v1301_v30, %v1128_v26  ;;  %v1340_v39 = vpop.f32.mrf.mxu0 }
 0x384   : > { %v1341_v42 = vadd.f32 %v1340_v39, %v1131_v27 }
 0x385   : > { %v1344_v49 = vmax.f32 %v1302_v36, 0.0 }
 0x386   : > { %v1347_v59 = vmax.f32 %v1341_v42, 0.0 }
 0x387   : > { %v1348_v58 = vpack.c.bf16 %v1344_v49, %v1344_v49 }
 0x388   : > { %v1351_v35 = vpack.c.bf16 %v1347_v59, %v1347_v59  ;;  %v1314_v0 = vpop.f32.mrf.mxu2 }
 0x389   : > { %v1315_v37 = vadd.f32 %v1314_v0, %v1129_v51  ;;  %v1327_v40 = vpop.f32.mrf.mxu3  ;;  %1617 = vmatmul.bf16.vlgmr.msra.gmra.mxu1 %v1348_v58 }
 0x38a   : > { %v1328_v41 = vadd.f32 %v1327_v40, %v1130_v54  ;;  %1656 = vmatmul.bf16.vlgmr.msrb.gmra.mxu0 %v1351_v35  ;;  %v1303_v3 = vpop.f32.mrf.mxu1 }
 0x38b   : > { %v1345_v55 = vmax.f32 %v1315_v37, 0.0  ;;  %v1342_v43 = vpop.f32.mrf.mxu0 }
 0x38c   : > { %v1346_v57 = vmax.f32 %v1328_v41, 0.0 }
 0x38d   : > { %v1349_v44 = vpack.c.bf16 %v1345_v55, %v1345_v55 }
 0x38e   : > { %v1350_v5 = vpack.c.bf16 %v1346_v57, %v1346_v57 }
 0x38f   : > { %1630 = vmatmul.bf16.vlgmr.msra.gmra.mxu2 %v1349_v44 }
 0x390   : > { %1643 = vmatmul.bf16.vlgmr.msra.gmra.mxu3 %v1350_v5  ;;  %v1316_v45 = vpop.f32.mrf.mxu2 }
 0x391   : > { %v1329_v46 = vpop.f32.mrf.mxu3 }
 0x406   : > { %v1618_v8 = vpop.f32.mrf.mxu1 }
 0x407   : > { %v1657_v47 = vpop.f32.mrf.mxu0  ;;  %v1619_v56 = vadd.f32 %v1618_v8, %v1416_v48 }
 0x40e   : > { %v1620_v50 = vpop.f32.mrf.mxu1 }
 0x40f   : > { %v1659_v52 = vpop.f32.mrf.mxu0 }
 0x412   : > { %v1631_v60 = vpop.f32.mrf.mxu2 }
 0x413   : > { %v1632_v9 = vadd.f32 %v1631_v60, %v1619_v56  ;;  %v1644_v61 = vpop.f32.mrf.mxu3 }
 0x415   : > { %v1645_v62 = vadd.f32 %v1644_v61, %v1632_v9 }
 0x417   : > { %v1658_v63 = vadd.f32 %v1657_v47, %v1645_v62 }
 0x419   : > { %v1661_v10 = vadd.f32 %v1658_v63, %v3564_v20 }
 0x41a   : > { %v1633_v1 = vpop.f32.mrf.mxu2 }
 0x41b   : > { %v1646_v2 = vpop.f32.mrf.mxu3  ;;  %1678 = vmatmul.f32.vlgmr.msrb.gmra.mxu1 %v1661_v10 }
 0x498   : > { %v1679_v4 = vpop.f32.mrf.mxu1 }
 0x499   : > { %v1682_v6 = vsub.f32 %v1661_v10, %v1679_v4 }
 0x49b   : > { %v1683_v38 = vmul.f32 %v1682_v6, %v1682_v6 }
 0x49d   : > { %1700 = vmatmul.f32.vlgmr.msrb.gmra.mxu2 %v1683_v38 }
 0x520   : > { %v1701_v7 = vpop.f32.mrf.mxu2 }
 0x521   : > { %v1702_v11 = vadd.f32 1e-05, %v1701_v7 }
 0x523   : > { %2558 = vrsqrt.f32 %v1702_v11  ;;  %vm1710_vm4 = vweird.f32 %v1702_v11 }
 0x529   : > { %v2559_v12 = vpop.eup %2558 }
 0x52a   : > { %v1705_v13 = vmul.f32 %v2559_v12, %v1702_v11  ;;  %vm1711_vm3 = vweird.f32 %v2559_v12 }
 0x52b   : > { %vm1712_vm5 = vmor %vm1710_vm4, %vm1711_vm3 }
 0x52c   : > { %v1706_v14 = vmul.f32 %v2559_v12, %v1705_v13 }
 0x52e   : > { %v1707_v15 = vmul.f32 0.5, %v1706_v14 }
 0x530   : > { %v1708_v16 = vsub.f32 1.5, %v1707_v15 }
 0x532   : > { %v1709_v17 = vmul.f32 %v2559_v12, %v1708_v16 }
 0x534   : > { %v1713_v19 = vsel %vm1712_vm5, %v2559_v12, %v1709_v17 }
 0x535   : > { %v1714_v20 = vmul.f32 %v1713_v19, %v1682_v6 }
 0x537   : > { %v1716_v21 = vmul.f32 %v1715_v18, %v1714_v20 }
 0x539   : > { %v1718_v32 = vadd.f32 %v1717_v31, %v1716_v21 }
 0x53b   : > { %1719 = vst [vmem:[%s300_s30] sm:$0xff] %v1718_v32 }
 0x53c PF: > { %s18_s27 = sadd.s32 1, %s2566_s27  }
 0x53d   : > { %p15_p4 = scmp.ge.s32.totalorder %s18_s27, 4  }
 0x53f   :  { %17 = sbr.rel (!%p15_p4) target bundleno = 1 (0x1), region = 82 }

// kernel: block_forward.3
= control target key start
LH: loop header
LB: loop body
LE: loop exit
PB: predicated region body
PF: predicated region fallthrough
CT: control target
= control target key end

     0   :  { %s3278_s1 = inlined_call_operand.vmem [shape: bf16[128,768], index: 1, kind: input, shape index: {}]   ;;  %s3279_s0 = inlined_call_operand.vmem [shape: f32[8,128], index: 0, kind: input, shape index: {}]   ;;  %s3280_s2 = inlined_call_operand.vmem [shape: bf16[256,256], index: 2, kind: input, shape index: {}]   ;;  %s3281_s7 = inlined_call_operand.vmem [shape: f32[8,768], index: 7, kind: input, shape index: {}]   ;;  %s3282_s3 = inlined_call_operand.vmem [shape: bf16[128,128], index: 3, kind: input, shape index: {}]   ;;  %s3283_s6 = inlined_call_operand.vmem [shape: f32[128,128], index: 6, kind: input, shape index: {}]   ;;  %s3284_s4 = inlined_call_operand.vmem [shape: bf16[128,512], index: 4, kind: input, shape index: {}]   ;;  %s3285_s5 = inlined_call_operand.vmem [shape: bf16[512,128], index: 5, kind: input, shape index: {}]   ;;  %s3286_s8 = inlined_call_operand.vmem [shape: f32[8,128], index: 8, kind: output, shape index: {}]  }
   0x1   :  { %v1622_v0 = vld [vmem:[%s3278_s1 + $0x150] sm:$0xf]  ;;  %v2105_v1 = vld [vmem:[%s3278_s1 + $0x164] sm:$0xf0]  ;;  %v2102_v2 = vld [vmem:[%s3278_s1 + $0x154] sm:$0xf] }
   0x2   :  { %v1623_v3 = vor.u32 %v2105_v1, %v1622_v0  ;;  %v1624_v4 = vld [vmem:[%s3278_s1 + $0x168] sm:$0xf0]  ;;  %v1630_v5 = vld [vmem:[%s3278_s1 + $0x158] sm:$0xf]  ;;  %v2106_v6 = vld [vmem:[%s3278_s1 + $0x16c] sm:$0xf0] }
   0x3   :  { %v1627_v7 = vor.u32 %v2102_v2, %v1624_v4  ;;  %v1631_v8 = vor.u32 %v2106_v6, %v1630_v5  ;;  %v2103_v9 = vld [vmem:[%s3278_s1 + $0x15c] sm:$0xf]  ;;  %v1632_v10 = vld [vmem:[%s3278_s1 + $0x170] sm:$0xf0]  ;;  %v1598_v11 = vld [vmem:[%s3278_s1 + $0x120] sm:$0xf] }
   0x4   :  { %331 = vmatpush.bf16.msra.mxu0 %v1623_v3  ;;  %v1635_v12 = vor.u32 %v2103_v9, %v1632_v10  ;;  %v2099_v13 = vld [vmem:[%s3278_s1 + $0x134] sm:$0xf0]  ;;  %v2096_v14 = vld [vmem:[%s3278_s1 + $0x124] sm:$0xf]  ;;  %v1600_v15 = vld [vmem:[%s3278_s1 + $0x138] sm:$0xf0] }
   0x5   :  { %344 = vmatpush.bf16.msra.mxu1 %v1627_v7  ;;  %357 = vmatpush.bf16.msra.mxu2 %v1631_v8  ;;  %v1599_v16 = vor.u32 %v2099_v13, %v1598_v11  ;;  %v1603_v17 = vor.u32 %v2096_v14, %v1600_v15  ;;  %v1606_v18 = vld [vmem:[%s3278_s1 + $0x128] sm:$0xf]  ;;  %v2100_v19 = vld [vmem:[%s3278_s1 + $0x13c] sm:$0xf0]  ;;  %v2097_v20 = vld [vmem:[%s3278_s1 + $0x12c] sm:$0xf] }
   0x6   :  { %370 = vmatpush.bf16.msra.mxu3 %v1635_v12  ;;  %v1607_v21 = vor.u32 %v2100_v19, %v1606_v18  ;;  %v1608_v22 = vld [vmem:[%s3278_s1 + $0x140] sm:$0xf0]  ;;  %v1574_v23 = vld [vmem:[%s3278_s1 + $0xf0] sm:$0xf]  ;;  %v2093_v24 = vld [vmem:[%s3278_s1 + $0x104] sm:$0xf0] }
   0x7   :  { %v1611_v25 = vor.u32 %v2097_v20, %v1608_v22  ;;  %v2090_v26 = vld [vmem:[%s3278_s1 + $0xf4] sm:$0xf]  ;;  %v1576_v27 = vld [vmem:[%s3278_s1 + $0x108] sm:$0xf0]  ;;  %v1582_v28 = vld [vmem:[%s3278_s1 + $0xf8] sm:$0xf]  ;;  %v1575_v29 = vor.u32 %v2093_v24, %v1574_v23 }
   0x8   :  { %332 = vmatpush.bf16.msra.mxu0 %v1599_v16  ;;  %v2094_v30 = vld [vmem:[%s3278_s1 + $0x10c] sm:$0xf0]  ;;  %v2091_v31 = vld [vmem:[%s3278_s1 + $0xfc] sm:$0xf]  ;;  %v1584_v32 = vld [vmem:[%s3278_s1 + $0x110] sm:$0xf0]  ;;  %v1579_v33 = vor.u32 %v2090_v26, %v1576_v27 }
   0x9   :  { %345 = vmatpush.bf16.msra.mxu1 %v1603_v17  ;;  %358 = vmatpush.bf16.msra.mxu2 %v1607_v21  ;;  %v1583_v34 = vor.u32 %v2094_v30, %v1582_v28  ;;  %v1550_v35 = vld [vmem:[%s3278_s1 + $0xc0] sm:$0xf]  ;;  %v2087_v36 = vld [vmem:[%s3278_s1 + $0xd4] sm:$0xf0]  ;;  %v2084_v37 = vld [vmem:[%s3278_s1 + $0xc4] sm:$0xf]  ;;  %v1587_v38 = vor.u32 %v2091_v31, %v1584_v32 }
   0xa   :  { %371 = vmatpush.bf16.msra.mxu3 %v1611_v25  ;;  %v1552_v39 = vld [vmem:[%s3278_s1 + $0xd8] sm:$0xf0]  ;;  %v1558_v40 = vld [vmem:[%s3278_s1 + $0xc8] sm:$0xf]  ;;  %v2088_v41 = vld [vmem:[%s3278_s1 + $0xdc] sm:$0xf0]  ;;  %v1551_v44 = vor.u32 %v2087_v36, %v1550_v35 }
   0xb   :  { %v2085_v42 = vld [vmem:[%s3278_s1 + $0xcc] sm:$0xf]  ;;  %v1560_v43 = vld [vmem:[%s3278_s1 + $0xe0] sm:$0xf0]  ;;  %v1555_v45 = vor.u32 %v2084_v37, %v1552_v39  ;;  %v1559_v46 = vor.u32 %v2088_v41, %v1558_v40  ;;  %v1526_v47 = vld [vmem:[%s3278_s1 + $0x90] sm:$0xf] }
   0xc   :  { %333 = vmatpush.bf16.msra.mxu0 %v1575_v29  ;;  %v2081_v48 = vld [vmem:[%s3278_s1 + $0xa4] sm:$0xf0]  ;;  %v2078_v49 = vld [vmem:[%s3278_s1 + $0x94] sm:$0xf]  ;;  %v1563_v50 = vor.u32 %v2085_v42, %v1560_v43  ;;  %v1528_v51 = vld [vmem:[%s3278_s1 + $0xa8] sm:$0xf0] }
   0xd   :  { %346 = vmatpush.bf16.msra.mxu1 %v1579_v33  ;;  %359 = vmatpush.bf16.msra.mxu2 %v1583_v34  ;;  %v1534_v52 = vld [vmem:[%s3278_s1 + $0x98] sm:$0xf]  ;;  %v2082_v53 = vld [vmem:[%s3278_s1 + $0xac] sm:$0xf0]  ;;  %v2079_v54 = vld [vmem:[%s3278_s1 + $0x9c] sm:$0xf]  ;;  %v1527_v56 = vor.u32 %v2081_v48, %v1526_v47  ;;  %v1531_v57 = vor.u32 %v2078_v49, %v1528_v51 }
   0xe   :  { %372 = vmatpush.bf16.msra.mxu3 %v1587_v38  ;;  %v1536_v55 = vld [vmem:[%s3278_s1 + $0xb0] sm:$0xf0]  ;;  %v1535_v58 = vor.u32 %v2082_v53, %v1534_v52  ;;  %v1502_v59 = vld [vmem:[%s3278_s1 + $0x60] sm:$0xf]  ;;  %v2075_v60 = vld [vmem:[%s3278_s1 + $0x74] sm:$0xf0] }
   0xf   :  { %v2072_v61 = vld [vmem:[%s3278_s1 + $0x64] sm:$0xf]  ;;  %v1539_v62 = vor.u32 %v2079_v54, %v1536_v55  ;;  %v1504_v63 = vld [vmem:[%s3278_s1 + $0x78] sm:$0xf0]  ;;  %v1510_v0 = vld [vmem:[%s3278_s1 + $0x68] sm:$0xf]  ;;  %v1503_v4 = vor.u32 %v2075_v60, %v1502_v59 }
  0x10   :  { %334 = vmatpush.bf16.msra.mxu0 %v1551_v44  ;;  %v2076_v1 = vld [vmem:[%s3278_s1 + $0x7c] sm:$0xf0]  ;;  %v2073_v2 = vld [vmem:[%s3278_s1 + $0x6c] sm:$0xf]  ;;  %v1512_v3 = vld [vmem:[%s3278_s1 + $0x80] sm:$0xf0]  ;;  %v1507_v5 = vor.u32 %v2072_v61, %v1504_v63 }
  0x11   :  { %347 = vmatpush.bf16.msra.mxu1 %v1555_v45  ;;  %360 = vmatpush.bf16.msra.mxu2 %v1559_v46  ;;  %v1511_v6 = vor.u32 %v2076_v1, %v1510_v0  ;;  %v1478_v7 = vld [vmem:[%s3278_s1 + $0x30] sm:$0xf]  ;;  %v2069_v8 = vld [vmem:[%s3278_s1 + $0x44] sm:$0xf0]  ;;  %v2066_v9 = vld [vmem:[%s3278_s1 + $0x34] sm:$0xf]  ;;  %v1515_v10 = vor.u32 %v2073_v2, %v1512_v3 }
  0x12   :  { %373 = vmatpush.bf16.msra.mxu3 %v1563_v50  ;;  %v1480_v11 = vld [vmem:[%s3278_s1 + $0x48] sm:$0xf0]  ;;  %v1486_v12 = vld [vmem:[%s3278_s1 + $0x38] sm:$0xf]  ;;  %v2070_v13 = vld [vmem:[%s3278_s1 + $0x4c] sm:$0xf0]  ;;  %v1479_v16 = vor.u32 %v2069_v8, %v1478_v7 }
  0x13   :  { %v2067_v14 = vld [vmem:[%s3278_s1 + $0x3c] sm:$0xf]  ;;  %v1488_v15 = vld [vmem:[%s3278_s1 + $0x50] sm:$0xf0]  ;;  %v1454_v17 = vld [vmem:[%s3278_s1] sm:$0xf]  ;;  %v1483_v18 = vor.u32 %v2066_v9, %v1480_v11  ;;  %v1487_v19 = vor.u32 %v2070_v13, %v1486_v12 }
  0x14   :  { %335 = vmatpush.bf16.msra.mxu0 %v1527_v56  ;;  %v2063_v20 = vld [vmem:[%s3278_s1 + $0x14] sm:$0xf0]  ;;  %v2060_v21 = vld [vmem:[%s3278_s1 + $0x4] sm:$0xf]  ;;  %v1456_v22 = vld [vmem:[%s3278_s1 + $0x18] sm:$0xf0]  ;;  %v1491_v23 = vor.u32 %v2067_v14, %v1488_v15 }
  0x15   :  { %348 = vmatpush.bf16.msra.mxu1 %v1531_v57  ;;  %361 = vmatpush.bf16.msra.mxu2 %v1535_v58  ;;  %v1462_v24 = vld [vmem:[%s3278_s1 + $0x8] sm:$0xf]  ;;  %v2064_v25 = vld [vmem:[%s3278_s1 + $0x1c] sm:$0xf0]  ;;  %v2061_v26 = vld [vmem:[%s3278_s1 + $0xc] sm:$0xf]  ;;  %v1455_v30 = vor.u32 %v2063_v20, %v1454_v17  ;;  %v1459_v34 = vor.u32 %v2060_v21, %v1456_v22 }
  0x16   :  { %374 = vmatpush.bf16.msra.mxu3 %v1539_v62  ;;  %v1464_v27 = vld [vmem:[%s3278_s1 + $0x20] sm:$0xf0]  ;;  %v1638_v28 = vld [vmem:[%s3278_s1 + $0x160] sm:$0xf]  ;;  %v2107_v29 = vld [vmem:[%s3278_s1 + $0x174] sm:$0xf0]  ;;  %v1463_v35 = vor.u32 %v2064_v25, %v1462_v24 }
  0x17   :  { %v2468_v31 = vld [vmem:[%s3279_s0] sm:$0xff]  ;;  %v1640_v33 = vld [vmem:[%s3278_s1 + $0x178] sm:$0xf0]  ;;  %v1467_v36 = vor.u32 %v2061_v26, %v1464_v27  ;;  %v1639_v37 = vor.u32 %v2107_v29, %v1638_v28  ;;  %v1614_v40 = vld [vmem:[%s3278_s1 + $0x130] sm:$0xf] }
  0x18   :  { %336 = vmatpush.bf16.msra.mxu0 %v1503_v4  ;;  %v2104_v32 = vld [vmem:[%s3278_s1 + $0x164] sm:$0xf]  ;;  %v2478_v38 = vpack.c.bf16 %v2468_v31, %v2468_v31  ;;  %v2101_v41 = vld [vmem:[%s3278_s1 + $0x144] sm:$0xf0]  ;;  %v2098_v42 = vld [vmem:[%s3278_s1 + $0x134] sm:$0xf] }
  0x19   :  { %349 = vmatpush.bf16.msra.mxu1 %v1507_v5  ;;  %362 = vmatpush.bf16.msra.mxu2 %v1511_v6  ;;  %v1643_v39 = vor.u32 %v2104_v32, %v1640_v33  ;;  %v1616_v43 = vld [vmem:[%s3278_s1 + $0x148] sm:$0xf0]  ;;  %v1702_v44 = vld [vmem:[%s3280_s2 + $0x70] sm:$0xf]  ;;  %v2123_v45 = vld [vmem:[%s3280_s2 + $0x74] sm:$0xf0]  ;;  %v1615_v46 = vor.u32 %v2101_v41, %v1614_v40 }
  0x1a   :  { %375 = vmatpush.bf16.msra.mxu3 %v1515_v10  ;;  %v1590_v47 = vld [vmem:[%s3278_s1 + $0x100] sm:$0xf]  ;;  %v1703_v48 = vor.u32 %v2123_v45, %v1702_v44  ;;  %v1766_v49 = vld [vmem:[%s3280_s2 + $0xf0] sm:$0xf]  ;;  %v2139_v50 = vld [vmem:[%s3280_s2 + $0xf4] sm:$0xf0]  ;;  %v1619_v51 = vor.u32 %v2098_v42, %v1616_v43 }
  0x1b   :  { %v2095_v52 = vld [vmem:[%s3278_s1 + $0x114] sm:$0xf0]  ;;  %v2092_v53 = vld [vmem:[%s3278_s1 + $0x104] sm:$0xf]  ;;  %v1592_v54 = vld [vmem:[%s3278_s1 + $0x118] sm:$0xf0]  ;;  %v1767_v55 = vor.u32 %v2139_v50, %v1766_v49 }
  0x1c   :  { %337 = vmatpush.bf16.msra.mxu0 %v1479_v16  ;;  %v1694_v56 = vld [vmem:[%s3280_s2 + $0x60] sm:$0xf]  ;;  %v2121_v57 = vld [vmem:[%s3280_s2 + $0x64] sm:$0xf0]  ;;  %v1591_v61 = vor.u32 %v2095_v52, %v1590_v47  ;;  %v1566_v62 = vld [vmem:[%s3278_s1 + $0xd0] sm:$0xf]  ;;  %v1595_v2 = vor.u32 %v2092_v53, %v1592_v54 }
  0x1d   :  { %350 = vmatpush.bf16.msra.mxu1 %v1483_v18  ;;  %363 = vmatpush.bf16.msra.mxu2 %v1487_v19  ;;  %v1758_v58 = vld [vmem:[%s3280_s2 + $0xe0] sm:$0xf]  ;;  %v1695_v59 = vor.u32 %v2121_v57, %v1694_v56  ;;  %v2137_v60 = vld [vmem:[%s3280_s2 + $0xe4] sm:$0xf0]  ;;  %v1686_v1 = vld [vmem:[%s3280_s2 + $0x50] sm:$0xf] }
  0x1e   :  { %376 = vmatpush.bf16.msra.mxu3 %v1491_v23  ;;  %v2089_v63 = vld [vmem:[%s3278_s1 + $0xe4] sm:$0xf0]  ;;  %v1759_v0 = vor.u32 %v2137_v60, %v1758_v58  ;;  %v2119_v3 = vld [vmem:[%s3280_s2 + $0x54] sm:$0xf0]  ;;  %v1750_v4 = vld [vmem:[%s3280_s2 + $0xd0] sm:$0xf] }
  0x1f   :  { %v2135_v5 = vld [vmem:[%s3280_s2 + $0xd4] sm:$0xf0]  ;;  %v2086_v6 = vld [vmem:[%s3278_s1 + $0xd4] sm:$0xf]  ;;  %v1568_v7 = vld [vmem:[%s3278_s1 + $0xe8] sm:$0xf0]  ;;  %v1687_v8 = vor.u32 %v2119_v3, %v1686_v1  ;;  %v1567_v9 = vor.u32 %v2089_v63, %v1566_v62 }
  0x20   :  { %338 = vmatpush.bf16.msra.mxu0 %v1455_v30  ;;  %v1542_v10 = vld [vmem:[%s3278_s1 + $0xa0] sm:$0xf]  ;;  %v1751_v11 = vor.u32 %v2135_v5, %v1750_v4  ;;  %v2117_v13 = vld [vmem:[%s3280_s2 + $0x44] sm:$0xf0]  ;;  %v1571_v14 = vor.u32 %v2086_v6, %v1568_v7  ;;  %v2083_v15 = vld [vmem:[%s3278_s1 + $0xb4] sm:$0xf0] }
  0x21   :  { %351 = vmatpush.bf16.msra.mxu1 %v1459_v34  ;;  %364 = vmatpush.bf16.msra.mxu2 %v1463_v35  ;;  %v1678_v12 = vld [vmem:[%s3280_s2 + $0x40] sm:$0xf]  ;;  %v2133_v17 = vld [vmem:[%s3280_s2 + $0xc4] sm:$0xf0]  ;;  %v2080_v18 = vld [vmem:[%s3278_s1 + $0xa4] sm:$0xf]  ;;  %v1543_v21 = vor.u32 %v2083_v15, %v1542_v10 }
  0x22   :  { %377 = vmatpush.bf16.msra.mxu3 %v1467_v36  ;;  %v1742_v16 = vld [vmem:[%s3280_s2 + $0xc0] sm:$0xf]  ;;  %v1544_v19 = vld [vmem:[%s3278_s1 + $0xb8] sm:$0xf0]  ;;  %v1679_v20 = vor.u32 %v2117_v13, %v1678_v12  ;;  %v1518_v22 = vld [vmem:[%s3278_s1 + $0x70] sm:$0xf] }
  0x23   :  { %339 = vmatmul.bf16.vlgmr.msra.gmra.mxu0 %v2478_v38  ;;  %v1743_v23 = vor.u32 %v2133_v17, %v1742_v16  ;;  %v1670_v24 = vld [vmem:[%s3280_s2 + $0x30] sm:$0xf]  ;;  %v2115_v25 = vld [vmem:[%s3280_s2 + $0x34] sm:$0xf0]  ;;  %v1547_v26 = vor.u32 %v2080_v18, %v1544_v19  ;;  %v2077_v27 = vld [vmem:[%s3278_s1 + $0x84] sm:$0xf0] }
  0x24   :  { %383 = vmatpush.bf16.msrb.mxu0 %v1639_v37  ;;  %352 = vmatmul.bf16.vlgmr.msra.gmra.mxu1 %v2478_v38  ;;  %v1734_v28 = vld [vmem:[%s3280_s2 + $0xb0] sm:$0xf]  ;;  %v2131_v29 = vld [vmem:[%s3280_s2 + $0xb4] sm:$0xf0]  ;;  %v2074_v30 = vld [vmem:[%s3278_s1 + $0x74] sm:$0xf]  ;;  %v1671_v33 = vor.u32 %v2115_v25, %v1670_v24  ;;  %v1519_v34 = vor.u32 %v2077_v27, %v1518_v22 }
  0x25   :  { %396 = vmatpush.bf16.msrb.mxu1 %v1643_v39  ;;  %365 = vmatmul.bf16.vlgmr.msra.gmra.mxu2 %v2478_v38  ;;  %v1520_v32 = vld [vmem:[%s3278_s1 + $0x88] sm:$0xf0]  ;;  %v1735_v35 = vor.u32 %v2131_v29, %v1734_v28  ;;  %v1494_v37 = vld [vmem:[%s3278_s1 + $0x40] sm:$0xf]  ;;  %v2071_v39 = vld [vmem:[%s3278_s1 + $0x54] sm:$0xf0] }
  0x26   :  { %378 = vmatmul.bf16.vlgmr.msra.gmra.mxu3 %v2478_v38  ;;  %605 = vmatpush.bf16.msrb.mxu2 %v1703_v48  ;;  %v1523_v36 = vor.u32 %v2074_v30, %v1520_v32  ;;  %v2068_v40 = vld [vmem:[%s3278_s1 + $0x44] sm:$0xf]  ;;  %v1496_v41 = vld [vmem:[%s3278_s1 + $0x58] sm:$0xf0]  ;;  %v1495_v42 = vor.u32 %v2071_v39, %v1494_v37  ;;  %v1470_v44 = vld [vmem:[%s3278_s1 + $0x10] sm:$0xf] }
  0x27   :  { %618 = vmatpush.bf16.msrb.mxu3 %v1767_v55  ;;  %v1499_v43 = vor.u32 %v2068_v40, %v1496_v41  ;;  %v2065_v45 = vld [vmem:[%s3278_s1 + $0x24] sm:$0xf0]  ;;  %v1472_v47 = vld [vmem:[%s3278_s1 + $0x28] sm:$0xf0]  ;;  %v2122_v48 = vld [vmem:[%s3280_s2 + $0x74] sm:$0xf] }
  0x28   :  { %384 = vmatpush.bf16.msrb.mxu0 %v1615_v46  ;;  %v2062_v46 = vld [vmem:[%s3278_s1 + $0x14] sm:$0xf]  ;;  %v1704_v49 = vld [vmem:[%s3280_s2 + $0x78] sm:$0xf0]  ;;  %v1471_v52 = vor.u32 %v2065_v45, %v1470_v44  ;;  %v2120_v56 = vld [vmem:[%s3280_s2 + $0x64] sm:$0xf] }
  0x29   :  { %397 = vmatpush.bf16.msrb.mxu1 %v1619_v51  ;;  %v2138_v50 = vld [vmem:[%s3280_s2 + $0xf4] sm:$0xf]  ;;  %v1768_v51 = vld [vmem:[%s3280_s2 + $0xf8] sm:$0xf0]  ;;  %v1475_v53 = vor.u32 %v2062_v46, %v1472_v47  ;;  %v1707_v54 = vor.u32 %v2122_v48, %v1704_v49  ;;  %v1696_v57 = vld [vmem:[%s3280_s2 + $0x68] sm:$0xf0] }
  0x2a   :  { %606 = vmatpush.bf16.msrb.mxu2 %v1695_v59  ;;  %v1771_v55 = vor.u32 %v2138_v50, %v1768_v51  ;;  %v2136_v58 = vld [vmem:[%s3280_s2 + $0xe4] sm:$0xf]  ;;  %v1760_v59 = vld [vmem:[%s3280_s2 + $0xe8] sm:$0xf0]  ;;  %v1699_v60 = vor.u32 %v2120_v56, %v1696_v57  ;;  %v2118_v62 = vld [vmem:[%s3280_s2 + $0x54] sm:$0xf] }
  0x2b   :  { %619 = vmatpush.bf16.msrb.mxu3 %v1759_v0  ;;  %v1688_v63 = vld [vmem:[%s3280_s2 + $0x58] sm:$0xf0]  ;;  %v2134_v0 = vld [vmem:[%s3280_s2 + $0xd4] sm:$0xf]  ;;  %v2116_v4 = vld [vmem:[%s3280_s2 + $0x44] sm:$0xf] }
  0x2c   :  { %385 = vmatpush.bf16.msrb.mxu0 %v1591_v61  ;;  %v1763_v61 = vor.u32 %v2136_v58, %v1760_v59  ;;  %v1752_v1 = vld [vmem:[%s3280_s2 + $0xd8] sm:$0xf0]  ;;  %v1680_v5 = vld [vmem:[%s3280_s2 + $0x48] sm:$0xf0]  ;;  %v2132_v6 = vld [vmem:[%s3280_s2 + $0xc4] sm:$0xf] }
  0x2d   :  { %398 = vmatpush.bf16.msrb.mxu1 %v1595_v2  ;;  %v1691_v2 = vor.u32 %v2118_v62, %v1688_v63  ;;  %v1755_v3 = vor.u32 %v2134_v0, %v1752_v1  ;;  %v1683_v7 = vor.u32 %v2116_v4, %v1680_v5  ;;  %v1672_v10 = vld [vmem:[%s3280_s2 + $0x38] sm:$0xf0]  ;;  %v1662_v15 = vld [vmem:[%s3280_s2 + $0x20] sm:$0xf]  ;;  %v2113_v16 = vld [vmem:[%s3280_s2 + $0x24] sm:$0xf0] }
  0x2e   :  { %607 = vmatpush.bf16.msrb.mxu2 %v1687_v8  ;;  %v1736_v12 = vld [vmem:[%s3280_s2 + $0xb8] sm:$0xf0]  ;;  %v1663_v17 = vor.u32 %v2113_v16, %v1662_v15  ;;  %v1726_v18 = vld [vmem:[%s3280_s2 + $0xa0] sm:$0xf]  ;;  %v2129_v19 = vld [vmem:[%s3280_s2 + $0xa4] sm:$0xf0] }
  0x2f   :  { %620 = vmatpush.bf16.msrb.mxu3 %v1751_v11  ;;  %v2130_v11 = vld [vmem:[%s3280_s2 + $0xb4] sm:$0xf]  ;;  %v1664_v22 = vld [vmem:[%s3280_s2 + $0x28] sm:$0xf0]  ;;  %v1654_v27 = vld [vmem:[%s3280_s2 + $0x10] sm:$0xf] }
  0x30   :  { %386 = vmatpush.bf16.msrb.mxu0 %v1567_v9  ;;  %v2114_v9 = vld [vmem:[%s3280_s2 + $0x34] sm:$0xf]  ;;  %v1728_v25 = vld [vmem:[%s3280_s2 + $0xa8] sm:$0xf0]  ;;  %v2111_v28 = vld [vmem:[%s3280_s2 + $0x14] sm:$0xf0] }
  0x31   :  { %399 = vmatpush.bf16.msrb.mxu1 %v1571_v14  ;;  %v1675_v13 = vor.u32 %v2114_v9, %v1672_v10  ;;  %v1739_v14 = vor.u32 %v2130_v11, %v1736_v12  ;;  %v1718_v29 = vld [vmem:[%s3280_s2 + $0x90] sm:$0xf]  ;;  %v1655_v30 = vor.u32 %v2111_v28, %v1654_v27  ;;  %v2127_v32 = vld [vmem:[%s3280_s2 + $0x94] sm:$0xf0]  ;;  %v1720_v39 = vld [vmem:[%s3280_s2 + $0x98] sm:$0xf0] }
  0x32   :  { %608 = vmatpush.bf16.msrb.mxu2 %v1679_v20  ;;  %v1727_v20 = vor.u32 %v2129_v19, %v1726_v18  ;;  %v1646_v41 = vld [vmem:[%s3280_s2] sm:$0xf]  ;;  %v2125_v45 = vld [vmem:[%s3280_s2 + $0x84] sm:$0xf0]  ;;  %v2108_v46 = vld [vmem:[%s3280_s2 + $0x4] sm:$0xf] }
  0x33   :  { %621 = vmatpush.bf16.msrb.mxu3 %v1743_v23  ;;  %v2128_v23 = vld [vmem:[%s3280_s2 + $0xa4] sm:$0xf]  ;;  %v1648_v47 = vld [vmem:[%s3280_s2 + $0x8] sm:$0xf0]  ;;  %v2775_v57 = vld [vmem:[%s3281_s7 + $0x10] sm:$0xff] }
  0x34   :  { %387 = vmatpush.bf16.msrb.mxu0 %v1543_v21  ;;  %v2112_v21 = vld [vmem:[%s3280_s2 + $0x24] sm:$0xf]  ;;  %v1651_v49 = vor.u32 %v2108_v46, %v1648_v47  ;;  %v1712_v51 = vld [vmem:[%s3280_s2 + $0x88] sm:$0xf0]  ;;  %v2781_v59 = vld [vmem:[%s3281_s7 + $0x18] sm:$0xff] }
  0x35   :  { %400 = vmatpush.bf16.msrb.mxu1 %v1547_v26  ;;  %v1667_v24 = vor.u32 %v2112_v21, %v1664_v22  ;;  %v1731_v26 = vor.u32 %v2128_v23, %v1728_v25  ;;  %v2124_v50 = vld [vmem:[%s3280_s2 + $0x84] sm:$0xf]  ;;  %v88_v62 = vperm.slane %v2781_v59, 0  ;;  %v2147_v16 = vld [vmem:[%s3282_s3 + $0x38] sm:$0xff]  ;;  %v2145_v18 = vld [vmem:[%s3282_s3 + $0x28] sm:$0xff] }
  0x36   :  { %609 = vmatpush.bf16.msrb.mxu2 %v1671_v33  ;;  %v2110_v33 = vld [vmem:[%s3280_s2 + $0x14] sm:$0xf]  ;;  %v2144_v19 = vld [vmem:[%s3282_s3 + $0x20] sm:$0xff]  ;;  %v2141_v22 = vld [vmem:[%s3282_s3 + $0x8] sm:$0xff] }
  0x37   :  { %622 = vmatpush.bf16.msrb.mxu3 %v1735_v35  ;;  %v1656_v35 = vld [vmem:[%s3280_s2 + $0x18] sm:$0xf0]  ;;  %v2142_v21 = vld [vmem:[%s3282_s3 + $0x10] sm:$0xff]  ;;  %v2140_v23 = vld [vmem:[%s3282_s3] sm:$0xff] }
  0x38   :  { %388 = vmatpush.bf16.msrb.mxu0 %v1519_v34  ;;  %v1719_v34 = vor.u32 %v2127_v32, %v1718_v29  ;;  %v1659_v37 = vor.u32 %v2110_v33, %v1656_v35  ;;  %v2822_v27 = vld [vmem:[%s3283_s6 + $0x70] sm:$0xff]  ;;  %v36_v47 = vld [vmem:[%s3281_s7 + $0x28] sm:$0xff] }
  0x39   :  { %401 = vmatpush.bf16.msrb.mxu1 %v1523_v36  ;;  %v2126_v36 = vld [vmem:[%s3280_s2 + $0x94] sm:$0xf] }
  0x3a   :  { %610 = vmatpush.bf16.msrb.mxu2 %v1663_v17  ;;  %v1723_v40 = vor.u32 %v2126_v36, %v1720_v39  ;;  %v2146_v17 = vld [vmem:[%s3282_s3 + $0x30] sm:$0xff]  ;;  %v2836_v36 = vld [vmem:[%s3283_s6 + $0x60] sm:$0xff]  ;;  %v2843_v39 = vld [vmem:[%s3283_s6 + $0x58] sm:$0xff] }
  0x3b   :  { %623 = vmatpush.bf16.msrb.mxu3 %v1727_v20  ;;  %v2143_v20 = vld [vmem:[%s3282_s3 + $0x18] sm:$0xff] }
  0x3c   :  { %389 = vmatpush.bf16.msrb.mxu0 %v1495_v42  ;;  %v2109_v42 = vld [vmem:[%s3280_s2 + $0x4] sm:$0xf0] }
  0x3d   :  { %402 = vmatpush.bf16.msrb.mxu1 %v1499_v43  ;;  %v1710_v43 = vld [vmem:[%s3280_s2 + $0x80] sm:$0xf]  ;;  %v1647_v44 = vor.u32 %v2109_v42, %v1646_v41  ;;  %v2850_v42 = vld [vmem:[%s3283_s6 + $0x50] sm:$0xff] }
  0x3e   :  { %611 = vmatpush.bf16.msrb.mxu2 %v1655_v30  ;;  %v1711_v48 = vor.u32 %v2125_v45, %v1710_v43  ;;  %v2829_v30 = vld [vmem:[%s3283_s6 + $0x68] sm:$0xff]  ;;  %v35_v43 = vld [vmem:[%s3281_s7 + $0x20] sm:$0xff] }
  0x3f   :  { %624 = vmatpush.bf16.msrb.mxu3 %v1719_v34 }
  0x40   :  { %390 = vmatpush.bf16.msrb.mxu0 %v1471_v52  ;;  %v1715_v52 = vor.u32 %v2124_v50, %v1712_v51  ;;  %v89_v50 = vperm.slane %v35_v43, 0  ;;  %v2870_v51 = vld [vmem:[%s3283_s6 + $0x40] sm:$0xff]  ;;  %v1910_v43 = vld [vmem:[%s3284_s4 + $0xc8] sm:$0xf] }
  0x41   :  { %403 = vmatpush.bf16.msrb.mxu1 %v1475_v53  ;;  %v2765_v53 = vld [vmem:[%s3281_s7] sm:$0xff] }
  0x42   :  { %612 = vmatpush.bf16.msrb.mxu2 %v1647_v44  ;;  %v85_v58 = vperm.slane %v2765_v53, 0 }
  0x43   :  { %391 = vmatmul.bf16.vlgmr.msrb.gmra.mxu0 %v2478_v38  ;;  %625 = vmatpush.bf16.msrb.mxu3 %v1711_v48 }
  0x44   :  { %631 = vmatpush.bf16.msra.mxu0 %v1707_v54  ;;  %404 = vmatmul.bf16.vlgmr.msrb.gmra.mxu1 %v2478_v38  ;;  %v1744_v38 = vld [vmem:[%s3280_s2 + $0xc8] sm:$0xf0] }
  0x45   :  { %644 = vmatpush.bf16.msra.mxu1 %v1771_v55  ;;  %v1747_v8 = vor.u32 %v2132_v6, %v1744_v38  ;;  %v2770_v55 = vld [vmem:[%s3281_s7 + $0x8] sm:$0xff] }
  0x46   :  { %736 = vmatpush.bf16.msra.mxu2 %v2147_v16  ;;  %v1918_v16 = vld [vmem:[%s3284_s4 + $0xe0] sm:$0xf] }
  0x48   :  { %632 = vmatpush.bf16.msra.mxu0 %v1699_v60  ;;  %v86_v60 = vperm.slane %v2770_v55, 0 }
  0x49   :  { %645 = vmatpush.bf16.msra.mxu1 %v1763_v61  ;;  %v87_v61 = vperm.slane %v2775_v57, 0 }
  0x4a   :  { %737 = vmatpush.bf16.msra.mxu2 %v2146_v17  ;;  %v2178_v17 = vld [vmem:[%s3284_s4 + $0xec] sm:$0xf0] }
  0x4c   :  { %633 = vmatpush.bf16.msra.mxu0 %v1691_v2 }
  0x4d   :  { %646 = vmatpush.bf16.msra.mxu1 %v1755_v3 }
  0x4e   :  { %738 = vmatpush.bf16.msra.mxu2 %v2145_v18  ;;  %v2176_v18 = vld [vmem:[%s3284_s4 + $0xe4] sm:$0xf] }
  0x50   :  { %634 = vmatpush.bf16.msra.mxu0 %v1683_v7 }
  0x51   :  { %647 = vmatpush.bf16.msra.mxu1 %v1747_v8 }
  0x52   :  { %739 = vmatpush.bf16.msra.mxu2 %v2144_v19  ;;  %v1919_v19 = vor.u32 %v2178_v17, %v1918_v16  ;;  %v1878_v16 = vld [vmem:[%s3284_s4 + $0x88] sm:$0xf]  ;;  %v2167_v17 = vld [vmem:[%s3284_s4 + $0x94] sm:$0xf0] }
  0x54   :  { %635 = vmatpush.bf16.msra.mxu0 %v1675_v13 }
  0x55   :  { %648 = vmatpush.bf16.msra.mxu1 %v1739_v14 }
  0x56   :  { %740 = vmatpush.bf16.msra.mxu2 %v2143_v20  ;;  %v1920_v20 = vld [vmem:[%s3284_s4 + $0xf0] sm:$0xf0] }
  0x58   :  { %636 = vmatpush.bf16.msra.mxu0 %v1667_v24 }
  0x59   :  { %649 = vmatpush.bf16.msra.mxu1 %v1731_v26  ;;  %v2817_v26 = vld [vmem:[%s3283_s6 + $0x78] sm:$0xff] }
  0x5a   :  { %741 = vmatpush.bf16.msra.mxu2 %v2142_v21  ;;  %766 = vmatpush.msra.mxu3 %v2817_v26  ;;  %v2179_v21 = vld [vmem:[%s3284_s4 + $0xf4] sm:$0xf0] }
  0x5c   :  { %637 = vmatpush.bf16.msra.mxu0 %v1659_v37  ;;  %767 = vmatpush.msra.mxu3 %v2822_v27 }
  0x5d   :  { %650 = vmatpush.bf16.msra.mxu1 %v1723_v40 }
  0x5e   :  { %742 = vmatpush.bf16.msra.mxu2 %v2141_v22  ;;  %768 = vmatpush.msra.mxu3 %v2829_v30  ;;  %v1923_v22 = vor.u32 %v2176_v18, %v1920_v20  ;;  %v2165_v20 = vld [vmem:[%s3284_s4 + $0x8c] sm:$0xf] }
  0x60   :  { %638 = vmatpush.bf16.msra.mxu0 %v1651_v49  ;;  %769 = vmatpush.msra.mxu3 %v2836_v36  ;;  %v2863_v49 = vld [vmem:[%s3283_s6 + $0x48] sm:$0xff] }
  0x61   :  { %651 = vmatpush.bf16.msra.mxu1 %v1715_v52  ;;  %v90_v52 = vperm.slane %v36_v47, 0  ;;  %v2173_v47 = vld [vmem:[%s3284_s4 + $0xcc] sm:$0xf] }
  0x62   :  { %743 = vmatpush.bf16.msra.mxu2 %v2140_v23  ;;  %770 = vmatpush.msra.mxu3 %v2843_v39 }
  0x64   :  { %788 = vmatpush.msrb.mxu0 %v2817_v26  ;;  %771 = vmatpush.msra.mxu3 %v2850_v42 }
  0x65   :  { %1020 = vmatpush.bf16.msrb.mxu1 %v1919_v19  ;;  %v1879_v19 = vor.u32 %v2167_v17, %v1878_v16  ;;  %v1806_v16 = vld [vmem:[%s3284_s4] sm:$0xf]  ;;  %v2150_v17 = vld [vmem:[%s3284_s4 + $0xc] sm:$0xf0] }
  0x66   :  { %789 = vmatpush.msrb.mxu0 %v2822_v27  ;;  %772 = vmatpush.msra.mxu3 %v2863_v49 }
  0x68   :  { %790 = vmatpush.msrb.mxu0 %v2829_v30  ;;  %773 = vmatpush.msra.mxu3 %v2870_v51 }
  0x6a   :  { %791 = vmatpush.msrb.mxu0 %v2836_v36 }
  0x6c   :  { %792 = vmatpush.msrb.mxu0 %v2843_v39 }
  0x6e   :  { %793 = vmatpush.msrb.mxu0 %v2850_v42 }
  0x70   :  { %794 = vmatpush.msrb.mxu0 %v2863_v49 }
  0x72   :  { %795 = vmatpush.msrb.mxu0 %v2870_v51 }
  0xa0   :  { %v340_v54 = vpop.f32.mrf.mxu0 }
  0xa1   :  { %v353_v56 = vpop.f32.mrf.mxu1  ;;  %v341_v63 = vadd.f32 %v340_v54, %v85_v58  ;;  %v2877_v54 = vld [vmem:[%s3283_s6 + $0x38] sm:$0xff]  ;;  %v2885_v58 = vld [vmem:[%s3283_s6 + $0x30] sm:$0xff] }
  0xa2   :  { %v354_v0 = vadd.f32 %v353_v56, %v86_v60  ;;  %774 = vmatpush.msra.mxu3 %v2877_v54  ;;  %796 = vmatpush.msrb.mxu0 %v2877_v54 }
  0xa4   :  { %775 = vmatpush.msra.mxu3 %v2885_v58  ;;  %797 = vmatpush.msrb.mxu0 %v2885_v58 }
  0xa8   :  { %v366_v1 = vpop.f32.mrf.mxu2  ;;  %v342_v4 = vpop.f32.mrf.mxu0 }
  0xa9   :  { %v367_v2 = vadd.f32 %v366_v1, %v87_v61  ;;  %v379_v3 = vpop.f32.mrf.mxu3  ;;  %v355_v6 = vpop.f32.mrf.mxu1 }
  0xaa   :  { %v380_v5 = vadd.f32 %v379_v3, %v88_v62  ;;  %v2900_v3 = vld [vmem:[%s3283_s6 + $0x20] sm:$0xff] }
  0xab   :  { %v409_v38 = vmul.f32 %v367_v2, %v341_v63 }
  0xac   :  { %v410_v7 = vmul.f32 %v380_v5, %v354_v0  ;;  %v2893_v0 = vld [vmem:[%s3283_s6 + $0x28] sm:$0xff]  ;;  %v2907_v5 = vld [vmem:[%s3283_s6 + $0x18] sm:$0xff] }
  0xad   :  { %v411_v8 = vpack.c.bf16 %v409_v38, %v409_v38  ;;  %776 = vmatpush.msra.mxu3 %v2893_v0  ;;  %798 = vmatpush.msrb.mxu0 %v2893_v0 }
  0xae   :  { %v412_v9 = vpack.c.bf16 %v410_v7, %v410_v7 }
  0xaf   :  { %613 = vmatmul.bf16.vlgmr.msrb.gmra.mxu2 %v411_v8  ;;  %639 = vmatmul.bf16.vlgmr.msra.gmra.mxu0 %v411_v8  ;;  %v2916_v8 = vld [vmem:[%s3283_s6 + $0x10] sm:$0xff] }
  0xb0   :  { %626 = vmatmul.bf16.vlgmr.msrb.gmra.mxu3 %v412_v9  ;;  %652 = vmatmul.bf16.vlgmr.msra.gmra.mxu1 %v412_v9  ;;  %v368_v10 = vpop.f32.mrf.mxu2  ;;  %v2923_v9 = vld [vmem:[%s3283_s6 + $0x8] sm:$0xff] }
  0xb1   :  { %v381_v11 = vpop.f32.mrf.mxu3  ;;  %777 = vmatpush.msra.mxu3 %v2900_v3  ;;  %799 = vmatpush.msrb.mxu0 %v2900_v3  ;;  %v2930_v10 = vld [vmem:[%s3283_s6] sm:$0xff] }
  0xb2   :  { %v687_v11 = vperm.slane %v2765_v53, 1  ;;  %1033 = vmatpush.bf16.msrb.mxu2 %v1923_v22  ;;  %v1854_v22 = vld [vmem:[%s3284_s4 + $0x60] sm:$0xf] }
  0xb3   :  { %778 = vmatpush.msra.mxu3 %v2907_v5  ;;  %800 = vmatpush.msrb.mxu0 %v2907_v5 }
  0xb5   :  { %779 = vmatpush.msra.mxu3 %v2916_v8  ;;  %801 = vmatpush.msrb.mxu0 %v2916_v8 }
  0xb7   :  { %780 = vmatpush.msra.mxu3 %v2923_v9  ;;  %802 = vmatpush.msrb.mxu0 %v2923_v9 }
  0xb9   :  { %781 = vmatpush.msra.mxu3 %v2930_v10  ;;  %803 = vmatpush.msrb.mxu0 %v2930_v10 }
  0xc0   :  { %v2786_v12 = vpop.f32.mrf.mxu0 }
  0xc1   :  { %v2788_v13 = vpop.f32.mrf.mxu1  ;;  %v393_v56 = vadd.f32 %v2786_v12, %v89_v50 }
  0xc2   :  { %v406_v61 = vadd.f32 %v2788_v13, %v90_v52  ;;  %v1886_v52 = vld [vmem:[%s3284_s4 + $0xa0] sm:$0xf] }
  0xc8   :  { %v394_v14 = vpop.f32.mrf.mxu0 }
  0xc9   :  { %v407_v15 = vpop.f32.mrf.mxu1 }
 0x12c   :  { %v640_v24 = vpop.f32.mrf.mxu0 }
 0x12d   :  { %v653_v25 = vpop.f32.mrf.mxu1 }
 0x12e   :  { %v654_v32 = vadd.f32 %v653_v25, %v640_v24  ;;  %v2177_v24 = vld [vmem:[%s3284_s4 + $0xec] sm:$0xf]  ;;  %v1928_v25 = vld [vmem:[%s3284_s4 + $0xf8] sm:$0xf0] }
 0x132   :  { %v614_v28 = vpop.f32.mrf.mxu2 }
 0x133   :  { %v627_v29 = vpop.f32.mrf.mxu3 }
 0x134   :  { %v628_v33 = vadd.f32 %v627_v29, %v614_v28  ;;  %v642_v34 = vpop.f32.mrf.mxu0  ;;  %v1931_v28 = vor.u32 %v2177_v24, %v1928_v25  ;;  %v2160_v24 = vld [vmem:[%s3284_s4 + $0x64] sm:$0xf] }
 0x135   :  { %v655_v35 = vpop.f32.mrf.mxu1  ;;  %v1902_v34 = vld [vmem:[%s3284_s4 + $0xc0] sm:$0xf] }
 0x136   :  { %v657_v37 = vmax.f32 %v628_v33, %v654_v32  ;;  %1059 = vmatpush.bf16.msra.mxu0 %v1931_v28  ;;  %v2174_v35 = vld [vmem:[%s3284_s4 + $0xcc] sm:$0xf0]  ;;  %v1856_v28 = vld [vmem:[%s3284_s4 + $0x70] sm:$0xf0] }
 0x138   :  { %v658_v40 = vsub.f32 %v628_v33, %v657_v37  ;;  %v661_v41 = vsub.f32 %v654_v32, %v657_v37  ;;  %v2172_v37 = vld [vmem:[%s3284_s4 + $0xc4] sm:$0xf] }
 0x13a   :  { %v659_v44 = vmul.f32 1.442695, %v658_v40  ;;  %v662_v45 = vmul.f32 1.442695, %v661_v41  ;;  %v616_v46 = vpop.f32.mrf.mxu2  ;;  %v1903_v40 = vor.u32 %v2174_v35, %v1902_v34  ;;  %v1904_v41 = vld [vmem:[%s3284_s4 + $0xd0] sm:$0xf0]  ;;  %v1859_v34 = vor.u32 %v2160_v24, %v1856_v28 }
 0x13b   :  { %v629_v48 = vpop.f32.mrf.mxu3  ;;  %v2149_v24 = vld [vmem:[%s3284_s4 + $0xc] sm:$0xf] }
 0x13c   :  { %2212 = vpow2.f32 %v659_v44  ;;  %v2175_v44 = vld [vmem:[%s3284_s4 + $0xd4] sm:$0xf0]  ;;  %v1912_v48 = vld [vmem:[%s3284_s4 + $0xd8] sm:$0xf0]  ;;  %1021 = vmatpush.bf16.msrb.mxu1 %v1903_v40 }
 0x13d   :  { %2214 = vpow2.f32 %v662_v45  ;;  %v1907_v45 = vor.u32 %v2172_v37, %v1904_v41  ;;  %v1911_v46 = vor.u32 %v2175_v44, %v1910_v43  ;;  %v1915_v50 = vor.u32 %v2173_v47, %v1912_v48  ;;  %v2161_v37 = vld [vmem:[%s3284_s4 + $0x6c] sm:$0xf]  ;;  %v1864_v40 = vld [vmem:[%s3284_s4 + $0x78] sm:$0xf0]  ;;  %v1838_v43 = vld [vmem:[%s3284_s4 + $0x40] sm:$0xf] }
 0x13e   :  { %v1867_v41 = vor.u32 %v2161_v37, %v1864_v40  ;;  %v2158_v44 = vld [vmem:[%s3284_s4 + $0x4c] sm:$0xf0]  ;;  %v1840_v47 = vld [vmem:[%s3284_s4 + $0x50] sm:$0xf0]  ;;  %v1846_v48 = vld [vmem:[%s3284_s4 + $0x48] sm:$0xf] }
 0x13f   :  { %1034 = vmatpush.bf16.msrb.mxu2 %v1907_v45  ;;  %1060 = vmatpush.bf16.msra.mxu0 %v1915_v50  ;;  %v2156_v45 = vld [vmem:[%s3284_s4 + $0x44] sm:$0xf]  ;;  %v2159_v50 = vld [vmem:[%s3284_s4 + $0x54] sm:$0xf0]  ;;  %v2186_v40 = vld [vmem:[%s3285_s5 + $0x30] sm:$0xff] }
 0x142   :  { %v2213_v60 = vpop.eup %2212 }
 0x143   :  { %v2215_v62 = vpop.eup %2214  ;;  %v666_v63 = vmul.f32 %v2213_v60, %v393_v56  ;;  %v2170_v56 = vld [vmem:[%s3284_s4 + $0xac] sm:$0xf0] }
 0x144   :  { %v664_v1 = vadd.f32 %v2215_v62, %v2213_v60  ;;  %v667_v2 = vmul.f32 %v2215_v62, %v406_v61  ;;  %v2168_v60 = vld [vmem:[%s3284_s4 + $0xa4] sm:$0xf]  ;;  %v1887_v61 = vor.u32 %v2170_v56, %v1886_v52  ;;  %v1888_v62 = vld [vmem:[%s3284_s4 + $0xb0] sm:$0xf0]  ;;  %v1843_v52 = vor.u32 %v2156_v45, %v1840_v47  ;;  %v2209_v47 = vld [vmem:[%s3285_s5 + $0xe8] sm:$0xff] }
 0x145   :  { %v1847_v56 = vor.u32 %v2159_v50, %v1846_v48  ;;  %v2202_v45 = vld [vmem:[%s3285_s5 + $0xb0] sm:$0xff]  ;;  %v2193_v48 = vld [vmem:[%s3285_s5 + $0x68] sm:$0xff] }
 0x146   :  { %2216 = vrcp.f32 %v664_v1  ;;  %v668_v4 = vadd.f32 %v667_v2, %v666_v63  ;;  %v1894_v63 = vld [vmem:[%s3284_s4 + $0xa8] sm:$0xf]  ;;  %v2171_v1 = vld [vmem:[%s3284_s4 + $0xb4] sm:$0xf0]  ;;  %v1891_v2 = vor.u32 %v2168_v60, %v1888_v62  ;;  %1022 = vmatpush.bf16.msrb.mxu1 %v1887_v61  ;;  %v2157_v60 = vld [vmem:[%s3284_s4 + $0x4c] sm:$0xf] }
 0x147   :  { %v1848_v61 = vld [vmem:[%s3284_s4 + $0x58] sm:$0xf0]  ;;  %v2201_v50 = vld [vmem:[%s3285_s5 + $0xa8] sm:$0xff] }
 0x148   :  { %1035 = vmatpush.bf16.msrb.mxu2 %v1891_v2  ;;  %v1851_v62 = vor.u32 %v2157_v60, %v1848_v61  ;;  %v2152_v2 = vld [vmem:[%s3284_s4 + $0x24] sm:$0xf] }
 0x149   :  { %v2192_v61 = vld [vmem:[%s3285_s5 + $0x60] sm:$0xff] }
 0x14c   :  { %v2217_v6 = vpop.eup %2216 }
 0x14d   :  { %v669_v38 = vmul.f32 %v2217_v6, %v668_v4  ;;  %v1895_v4 = vor.u32 %v2171_v1, %v1894_v63  ;;  %v2169_v6 = vld [vmem:[%s3284_s4 + $0xac] sm:$0xf]  ;;  %v1822_v63 = vld [vmem:[%s3284_s4 + $0x20] sm:$0xf]  ;;  %v2154_v1 = vld [vmem:[%s3284_s4 + $0x2c] sm:$0xf0] }
 0x14f   :  { %v670_v7 = vpack.c.bf16 %v669_v38, %v669_v38  ;;  %v1896_v38 = vld [vmem:[%s3284_s4 + $0xb8] sm:$0xf0] }
 0x151   :  { %744 = vmatmul.bf16.vlgmr.msra.gmra.mxu2 %v670_v7  ;;  %v1899_v7 = vor.u32 %v2169_v6, %v1896_v38  ;;  %v1824_v6 = vld [vmem:[%s3284_s4 + $0x30] sm:$0xf0]  ;;  %v1830_v38 = vld [vmem:[%s3284_s4 + $0x28] sm:$0xf] }
 0x153   :  { %1061 = vmatpush.bf16.msra.mxu0 %v1899_v7  ;;  %v2155_v7 = vld [vmem:[%s3284_s4 + $0x34] sm:$0xf0] }
 0x1d4   :  { %v745_v12 = vpop.f32.mrf.mxu2 }
 0x1d5   :  { %v746_v13 = vadd.f32 %v745_v12, %v687_v11  ;;  %v1870_v11 = vld [vmem:[%s3284_s4 + $0x80] sm:$0xf]  ;;  %v2166_v12 = vld [vmem:[%s3284_s4 + $0x8c] sm:$0xf0] }
 0x1d7   :  { %v765_v14 = vadd.f32 %v746_v13, %v2468_v31  ;;  %v1926_v31 = vld [vmem:[%s3284_s4 + $0xe8] sm:$0xf]  ;;  %v2164_v13 = vld [vmem:[%s3284_s4 + $0x84] sm:$0xf] }
 0x1d8   :  { %v1927_v23 = vor.u32 %v2179_v21, %v1926_v31  ;;  %v1880_v31 = vld [vmem:[%s3284_s4 + $0x98] sm:$0xf0] }
 0x1d9   :  { %782 = vmatmul.f32.vlgmr.msra.gmra.mxu3 %v765_v14  ;;  %v1883_v21 = vor.u32 %v2165_v20, %v1880_v31  ;;  %v1808_v20 = vld [vmem:[%s3284_s4 + $0x10] sm:$0xf0]  ;;  %v1814_v31 = vld [vmem:[%s3284_s4 + $0x8] sm:$0xf] }
 0x1da   :  { %1046 = vmatpush.bf16.msrb.mxu3 %v1927_v23  ;;  %v2162_v23 = vld [vmem:[%s3284_s4 + $0x6c] sm:$0xf0] }
 0x1db   :  { %1062 = vmatpush.bf16.msra.mxu0 %v1883_v21  ;;  %v1855_v25 = vor.u32 %v2162_v23, %v1854_v22  ;;  %v2151_v21 = vld [vmem:[%s3284_s4 + $0x14] sm:$0xf0] }
 0x1dc   :  { %v747_v15 = vpop.f32.mrf.mxu2  ;;  %v1815_v23 = vor.u32 %v2151_v21, %v1814_v31  ;;  %v2181_v21 = vld [vmem:[%s3285_s5 + $0x8] sm:$0xff] }
 0x1dd   :  { %v1872_v15 = vld [vmem:[%s3284_s4 + $0x90] sm:$0xf0] }
 0x1de   :  { %1047 = vmatpush.bf16.msrb.mxu3 %v1911_v46  ;;  %v1875_v18 = vor.u32 %v2164_v13, %v1872_v15  ;;  %v1839_v46 = vor.u32 %v2158_v44, %v1838_v43  ;;  %v2153_v13 = vld [vmem:[%s3284_s4 + $0x2c] sm:$0xf]  ;;  %v2194_v44 = vld [vmem:[%s3285_s5 + $0x70] sm:$0xff] }
 0x1df   :  { %1063 = vmatpush.bf16.msra.mxu0 %v1867_v41  ;;  %v2210_v41 = vld [vmem:[%s3285_s5 + $0xf0] sm:$0xff] }
 0x1e0   :  { %1036 = vmatpush.bf16.msrb.mxu2 %v1875_v18  ;;  %v2148_v18 = vld [vmem:[%s3284_s4 + $0x4] sm:$0xf] }
 0x1e1   :  { %v1811_v22 = vor.u32 %v2148_v18, %v1808_v20  ;;  %v821_v18 = vperm.slane %v2765_v53, 5 }
 0x1e2   :  { %1048 = vmatpush.bf16.msrb.mxu3 %v1895_v4  ;;  %v1823_v4 = vor.u32 %v2154_v1, %v1822_v63 }
 0x1e3   :  { %1064 = vmatpush.bf16.msra.mxu0 %v1851_v62  ;;  %v2200_v62 = vld [vmem:[%s3285_s5 + $0xa0] sm:$0xff] }
 0x1e4   :  { %1037 = vmatpush.bf16.msrb.mxu2 %v1859_v34  ;;  %v2195_v34 = vld [vmem:[%s3285_s5 + $0x78] sm:$0xff] }
 0x1e6   :  { %1049 = vmatpush.bf16.msrb.mxu3 %v1879_v19  ;;  %v1807_v19 = vor.u32 %v2150_v17, %v1806_v16 }
 0x1e8   :  { %1038 = vmatpush.bf16.msrb.mxu2 %v1843_v52  ;;  %v2184_v52 = vld [vmem:[%s3285_s5 + $0x20] sm:$0xff] }
 0x25c   :  { %v783_v29 = vpop.f32.mrf.mxu3 }
 0x25d   :  { %v2960_v32 = vsub.f32 %v765_v14, %v783_v29  ;;  %v1871_v14 = vor.u32 %v2166_v12, %v1870_v11  ;;  %v1862_v29 = vld [vmem:[%s3284_s4 + $0x68] sm:$0xf]  ;;  %v1827_v11 = vor.u32 %v2152_v2, %v1824_v6  ;;  %v1831_v12 = vor.u32 %v2155_v7, %v1830_v38  ;;  %v2183_v2 = vld [vmem:[%s3285_s5 + $0x18] sm:$0xff] }
 0x25e   :  { %v2191_v6 = vld [vmem:[%s3285_s5 + $0x58] sm:$0xff] }
 0x25f   :  { %v787_v33 = vmul.f32 %v2960_v32, %v2960_v32  ;;  %1023 = vmatpush.bf16.msrb.mxu1 %v1871_v14  ;;  %v1832_v14 = vld [vmem:[%s3284_s4 + $0x38] sm:$0xf0]  ;;  %1039 = vmatpush.bf16.msrb.mxu2 %v1827_v11 }
 0x260   :  { %v1835_v15 = vor.u32 %v2153_v13, %v1832_v14  ;;  %v2199_v38 = vld [vmem:[%s3285_s5 + $0x98] sm:$0xff]  ;;  %v2206_v13 = vld [vmem:[%s3285_s5 + $0xd0] sm:$0xff] }
 0x261   :  { %804 = vmatmul.f32.vlgmr.msrb.gmra.mxu0 %v787_v33  ;;  %v2163_v33 = vld [vmem:[%s3284_s4 + $0x74] sm:$0xf0] }
 0x262   :  { %v1863_v35 = vor.u32 %v2163_v33, %v1862_v29  ;;  %1065 = vmatpush.bf16.msra.mxu0 %v1835_v15  ;;  %v2187_v29 = vld [vmem:[%s3285_s5 + $0x38] sm:$0xff]  ;;  %v819_v15 = vperm.slane %v2765_v53, 4 }
 0x263   :  { %1024 = vmatpush.bf16.msrb.mxu1 %v1855_v25  ;;  %v1816_v25 = vld [vmem:[%s3284_s4 + $0x18] sm:$0xf0]  ;;  %1040 = vmatpush.bf16.msrb.mxu2 %v1811_v22  ;;  %v2190_v22 = vld [vmem:[%s3285_s5 + $0x50] sm:$0xff] }
 0x264   :  { %1050 = vmatpush.bf16.msrb.mxu3 %v1863_v35  ;;  %v1819_v28 = vor.u32 %v2149_v24, %v1816_v25  ;;  %v2211_v33 = vld [vmem:[%s3285_s5 + $0xf8] sm:$0xff]  ;;  %v2180_v24 = vld [vmem:[%s3285_s5] sm:$0xff] }
 0x265   :  { %v2203_v35 = vld [vmem:[%s3285_s5 + $0xb8] sm:$0xff]  ;;  %v2204_v25 = vld [vmem:[%s3285_s5 + $0xc0] sm:$0xff] }
 0x266   :  { %1066 = vmatpush.bf16.msra.mxu0 %v1819_v28  ;;  %v2189_v28 = vld [vmem:[%s3285_s5 + $0x48] sm:$0xff] }
 0x267   :  { %1025 = vmatpush.bf16.msrb.mxu1 %v1839_v46  ;;  %1350 = vmatpush.bf16.msra.mxu2 %v2195_v34  ;;  %v2185_v46 = vld [vmem:[%s3285_s5 + $0x28] sm:$0xff]  ;;  %v2196_v34 = vld [vmem:[%s3285_s5 + $0x80] sm:$0xff] }
 0x268   :  { %1051 = vmatpush.bf16.msrb.mxu3 %v1847_v56  ;;  %v2208_v56 = vld [vmem:[%s3285_s5 + $0xe0] sm:$0xff] }
 0x26a   :  { %1376 = vmatpush.bf16.msrb.mxu0 %v2211_v33  ;;  %v2188_v33 = vld [vmem:[%s3285_s5 + $0x40] sm:$0xff] }
 0x26b   :  { %1026 = vmatpush.bf16.msrb.mxu1 %v1823_v4  ;;  %1351 = vmatpush.bf16.msra.mxu2 %v2194_v44  ;;  %v2207_v4 = vld [vmem:[%s3285_s5 + $0xd8] sm:$0xff] }
 0x26c   :  { %1052 = vmatpush.bf16.msrb.mxu3 %v1831_v12  ;;  %v2182_v12 = vld [vmem:[%s3285_s5 + $0x10] sm:$0xff] }
 0x26e   :  { %1377 = vmatpush.bf16.msrb.mxu0 %v2210_v41 }
 0x26f   :  { %1027 = vmatpush.bf16.msrb.mxu1 %v1807_v19  ;;  %1352 = vmatpush.bf16.msra.mxu2 %v2193_v48  ;;  %v1144_v48 = vperm.slane %v2765_v53, 3 }
 0x270   :  { %1053 = vmatpush.bf16.msrb.mxu3 %v1815_v23  ;;  %v2198_v23 = vld [vmem:[%s3285_s5 + $0x90] sm:$0xff] }
 0x272   :  { %1378 = vmatpush.bf16.msrb.mxu0 %v2209_v47 }
 0x273   :  { %1337 = vmatpush.bf16.msra.mxu1 %v2187_v29  ;;  %1353 = vmatpush.bf16.msra.mxu2 %v2192_v61  ;;  %v2197_v29 = vld [vmem:[%s3285_s5 + $0x88] sm:$0xff] }
 0x274   :  { %1363 = vmatpush.bf16.msra.mxu3 %v2203_v35 }
 0x276   :  { %1379 = vmatpush.bf16.msrb.mxu0 %v2208_v56 }
 0x277   :  { %1338 = vmatpush.bf16.msra.mxu1 %v2186_v40  ;;  %1354 = vmatpush.bf16.msra.mxu2 %v2191_v6 }
 0x278   :  { %1364 = vmatpush.bf16.msra.mxu3 %v2202_v45 }
 0x27a   :  { %1380 = vmatpush.bf16.msrb.mxu0 %v2207_v4 }
 0x27b   :  { %1339 = vmatpush.bf16.msra.mxu1 %v2185_v46  ;;  %1355 = vmatpush.bf16.msra.mxu2 %v2190_v22 }
 0x27c   :  { %1365 = vmatpush.bf16.msra.mxu3 %v2201_v50 }
 0x27e   :  { %1381 = vmatpush.bf16.msrb.mxu0 %v2206_v13 }
 0x27f   :  { %1340 = vmatpush.bf16.msra.mxu1 %v2184_v52  ;;  %1356 = vmatpush.bf16.msra.mxu2 %v2189_v28 }
 0x280   :  { %1366 = vmatpush.bf16.msra.mxu3 %v2200_v62 }
 0x283   :  { %1341 = vmatpush.bf16.msra.mxu1 %v2183_v2  ;;  %1357 = vmatpush.bf16.msra.mxu2 %v2188_v33 }
 0x284   :  { %1367 = vmatpush.bf16.msra.mxu3 %v2199_v38 }
 0x287   :  { %1342 = vmatpush.bf16.msra.mxu1 %v2182_v12 }
 0x288   :  { %1368 = vmatpush.bf16.msra.mxu3 %v2198_v23 }
 0x28b   :  { %1343 = vmatpush.bf16.msra.mxu1 %v2181_v21 }
 0x28c   :  { %1369 = vmatpush.bf16.msra.mxu3 %v2197_v29 }
 0x28f   :  { %1344 = vmatpush.bf16.msra.mxu1 %v2180_v24 }
 0x290   :  { %1370 = vmatpush.bf16.msra.mxu3 %v2196_v34 }
 0x2de   :  { %v805_v37 = vpop.f32.mrf.mxu0 }
 0x2df   :  { %v806_v43 = vadd.f32 1e-05, %v805_v37 }
 0x2e1   :  { %2218 = vrsqrt.f32 %v806_v43  ;;  %vm814_vm1 = vweird.f32 %v806_v43 }
 0x2e7   :  { %v2219_v60 = vpop.eup %2218 }
 0x2e8   :  { %v809_v63 = vmul.f32 %v2219_v60, %v806_v43  ;;  %vm815_vm0 = vweird.f32 %v2219_v60 }
 0x2e9   :  { %vm816_vm2 = vmor %vm814_vm1, %vm815_vm0 }
 0x2ea   :  { %v810_v1 = vmul.f32 %v2219_v60, %v809_v63 }
 0x2ec   :  { %v811_v7 = vmul.f32 0.5, %v810_v1 }
 0x2ee   :  { %v812_v11 = vsub.f32 1.5, %v811_v7 }
 0x2f0   :  { %v813_v14 = vmul.f32 %v2219_v60, %v812_v11 }
 0x2f2   :  { %v817_v16 = vsel %vm816_vm2, %v2219_v60, %v813_v14 }
 0x2f3   :  { %v818_v17 = vmul.f32 %v817_v16, %v2960_v32  ;;  %v2205_v32 = vld [vmem:[%s3285_s5 + $0xc8] sm:$0xff] }
 0x2f4   :  { %1382 = vmatpush.bf16.msrb.mxu0 %v2205_v32 }
 0x2f5   :  { %v820_v19 = vmul.f32 %v819_v15, %v818_v17 }
 0x2f7   :  { %v3201_v20 = vadd.f32 %v821_v18, %v820_v19  ;;  %v1443_v18 = vperm.slane %v2765_v53, 6 }
 0x2f8   :  { %1383 = vmatpush.bf16.msrb.mxu0 %v2204_v25 }
 0x2f9   :  { %v823_v31 = vpack.c.bf16 %v3201_v20, %v3201_v20 }
 0x2fb   :  { %1028 = vmatmul.bf16.vlgmr.msrb.gmra.mxu1 %v823_v31  ;;  %1041 = vmatmul.bf16.vlgmr.msrb.gmra.mxu2 %v823_v31 }
 0x2fc   :  { %1054 = vmatmul.bf16.vlgmr.msrb.gmra.mxu3 %v823_v31  ;;  %1067 = vmatmul.bf16.vlgmr.msra.gmra.mxu0 %v823_v31  ;;  %v1445_v31 = vperm.slane %v2765_v53, 7 }
 0x2fd   :  { %1390 = vmatpush.msrb.mxu1 %v2817_v26  ;;  %1412 = vmatpush.msrb.mxu2 %v2817_v26  ;;  %v856_v26 = vperm.slane %v2765_v53, 2 }
 0x2ff   :  { %1391 = vmatpush.msrb.mxu1 %v2822_v27  ;;  %1413 = vmatpush.msrb.mxu2 %v2822_v27  ;;  %v859_v27 = vperm.slane %v2781_v59, 2 }
 0x301   :  { %1392 = vmatpush.msrb.mxu1 %v2829_v30  ;;  %1414 = vmatpush.msrb.mxu2 %v2829_v30 }
 0x303   :  { %1393 = vmatpush.msrb.mxu1 %v2836_v36  ;;  %1415 = vmatpush.msrb.mxu2 %v2836_v36 }
 0x305   :  { %1394 = vmatpush.msrb.mxu1 %v2843_v39  ;;  %1416 = vmatpush.msrb.mxu2 %v2843_v39 }
 0x307   :  { %1395 = vmatpush.msrb.mxu1 %v2850_v42  ;;  %1417 = vmatpush.msrb.mxu2 %v2850_v42 }
 0x309   :  { %1396 = vmatpush.msrb.mxu1 %v2863_v49  ;;  %1418 = vmatpush.msrb.mxu2 %v2863_v49 }
 0x30b   :  { %1397 = vmatpush.msrb.mxu1 %v2870_v51  ;;  %1419 = vmatpush.msrb.mxu2 %v2870_v51  ;;  %v857_v51 = vperm.slane %v2770_v55, 2 }
 0x30d   :  { %1398 = vmatpush.msrb.mxu1 %v2877_v54  ;;  %1420 = vmatpush.msrb.mxu2 %v2877_v54  ;;  %v858_v54 = vperm.slane %v2775_v57, 2 }
 0x30f   :  { %1399 = vmatpush.msrb.mxu1 %v2885_v58  ;;  %1421 = vmatpush.msrb.mxu2 %v2885_v58 }
 0x311   :  { %1400 = vmatpush.msrb.mxu1 %v2893_v0  ;;  %1422 = vmatpush.msrb.mxu2 %v2893_v0 }
 0x313   :  { %1401 = vmatpush.msrb.mxu1 %v2900_v3  ;;  %1423 = vmatpush.msrb.mxu2 %v2900_v3 }
 0x315   :  { %1402 = vmatpush.msrb.mxu1 %v2907_v5  ;;  %1424 = vmatpush.msrb.mxu2 %v2907_v5 }
 0x317   :  { %1403 = vmatpush.msrb.mxu1 %v2916_v8  ;;  %1425 = vmatpush.msrb.mxu2 %v2916_v8 }
 0x319   :  { %1404 = vmatpush.msrb.mxu1 %v2923_v9  ;;  %1426 = vmatpush.msrb.mxu2 %v2923_v9 }
 0x31b   :  { %1405 = vmatpush.msrb.mxu1 %v2930_v10  ;;  %1427 = vmatpush.msrb.mxu2 %v2930_v10 }
 0x378   :  { %v1029_v30 = vpop.f32.mrf.mxu1 }
 0x379   :  { %v1030_v36 = vadd.f32 %v1029_v30, %v856_v26  ;;  %v1068_v39 = vpop.f32.mrf.mxu0 }
 0x37a   :  { %v1069_v42 = vadd.f32 %v1068_v39, %v859_v27 }
 0x37b   :  { %v1072_v49 = vmax.f32 %v1030_v36, 0.0 }
 0x37c   :  { %v1075_v59 = vmax.f32 %v1069_v42, 0.0 }
 0x37d   :  { %v1076_v58 = vpack.c.bf16 %v1072_v49, %v1072_v49 }
 0x37e   :  { %v1079_v35 = vpack.c.bf16 %v1075_v59, %v1075_v59  ;;  %v1042_v0 = vpop.f32.mrf.mxu2 }
 0x37f   :  { %v1043_v37 = vadd.f32 %v1042_v0, %v857_v51  ;;  %v1055_v40 = vpop.f32.mrf.mxu3  ;;  %1345 = vmatmul.bf16.vlgmr.msra.gmra.mxu1 %v1076_v58 }
 0x380   :  { %v1056_v41 = vadd.f32 %v1055_v40, %v858_v54  ;;  %1384 = vmatmul.bf16.vlgmr.msrb.gmra.mxu0 %v1079_v35  ;;  %v1031_v3 = vpop.f32.mrf.mxu1 }
 0x381   :  { %v1073_v55 = vmax.f32 %v1043_v37, 0.0  ;;  %v1070_v43 = vpop.f32.mrf.mxu0 }
 0x382   :  { %v1074_v57 = vmax.f32 %v1056_v41, 0.0 }
 0x383   :  { %v1077_v44 = vpack.c.bf16 %v1073_v55, %v1073_v55 }
 0x384   :  { %v1078_v5 = vpack.c.bf16 %v1074_v57, %v1074_v57 }
 0x385   :  { %1358 = vmatmul.bf16.vlgmr.msra.gmra.mxu2 %v1077_v44 }
 0x386   :  { %1371 = vmatmul.bf16.vlgmr.msra.gmra.mxu3 %v1078_v5  ;;  %v1044_v45 = vpop.f32.mrf.mxu2 }
 0x387   :  { %v1057_v46 = vpop.f32.mrf.mxu3 }
 0x3fc   :  { %v1346_v8 = vpop.f32.mrf.mxu1 }
 0x3fd   :  { %v1385_v47 = vpop.f32.mrf.mxu0  ;;  %v1347_v56 = vadd.f32 %v1346_v8, %v1144_v48 }
 0x404   :  { %v1348_v50 = vpop.f32.mrf.mxu1 }
 0x405   :  { %v1387_v52 = vpop.f32.mrf.mxu0 }
 0x408   :  { %v1359_v60 = vpop.f32.mrf.mxu2 }
 0x409   :  { %v1360_v9 = vadd.f32 %v1359_v60, %v1347_v56  ;;  %v1372_v61 = vpop.f32.mrf.mxu3 }
 0x40b   :  { %v1373_v62 = vadd.f32 %v1372_v61, %v1360_v9 }
 0x40d   :  { %v1386_v63 = vadd.f32 %v1385_v47, %v1373_v62 }
 0x40f   :  { %v1389_v10 = vadd.f32 %v1386_v63, %v3201_v20 }
 0x410   :  { %v1361_v1 = vpop.f32.mrf.mxu2 }
 0x411   :  { %v1374_v2 = vpop.f32.mrf.mxu3  ;;  %1406 = vmatmul.f32.vlgmr.msrb.gmra.mxu1 %v1389_v10 }
 0x48e   :  { %v1407_v4 = vpop.f32.mrf.mxu1 }
 0x48f   :  { %v1410_v6 = vsub.f32 %v1389_v10, %v1407_v4 }
 0x491   :  { %v1411_v38 = vmul.f32 %v1410_v6, %v1410_v6 }
 0x493   :  { %1428 = vmatmul.f32.vlgmr.msrb.gmra.mxu2 %v1411_v38 }
 0x516   :  { %v1429_v7 = vpop.f32.mrf.mxu2 }
 0x517   :  { %v1430_v11 = vadd.f32 1e-05, %v1429_v7 }
 0x519   :  { %2220 = vrsqrt.f32 %v1430_v11  ;;  %vm1438_vm4 = vweird.f32 %v1430_v11 }
 0x51f   :  { %v2221_v12 = vpop.eup %2220 }
 0x520   :  { %v1433_v13 = vmul.f32 %v2221_v12, %v1430_v11  ;;  %vm1439_vm3 = vweird.f32 %v2221_v12 }
 0x521   :  { %vm1440_vm5 = vmor %vm1438_vm4, %vm1439_vm3 }
 0x522   :  { %v1434_v14 = vmul.f32 %v2221_v12, %v1433_v13 }
 0x524   :  { %v1435_v15 = vmul.f32 0.5, %v1434_v14 }
 0x526   :  { %v1436_v16 = vsub.f32 1.5, %v1435_v15 }
 0x528   :  { %v1437_v17 = vmul.f32 %v2221_v12, %v1436_v16 }
 0x52a   :  { %v1441_v19 = vsel %vm1440_vm5, %v2221_v12, %v1437_v17 }
 0x52b   :  { %v1442_v20 = vmul.f32 %v1441_v19, %v1410_v6 }
 0x52d   :  { %v1444_v21 = vmul.f32 %v1443_v18, %v1442_v20 }
 0x52f   :  { %v1446_v32 = vadd.f32 %v1445_v31, %v1444_v21 }
 0x531   :  { %1447 = vst [vmem:[%s3286_s8] sm:$0xff] %v1446_v32 }

</bundles_post_ra>
